<compile_context>
chip_gen: v5e
topology: v5e:2x2
jax: 0.10.0
libtpu: 0.0.40
codegen_flags: <defaults>
</compile_context>

<pallas_src>
import math

import jax
import jax.numpy as jnp
from jax.experimental import pallas as pl
from jax.experimental.pallas import tpu as pltpu


def _round_up(x, m):
    return ((x + m - 1) // m) * m


# ---------------------------------------------------------------------------
# Pallas kernel: in-kernel tap-window construction + one lane-dense MXU GEMM,
# f32 bias + ReLU epilogue.
# ---------------------------------------------------------------------------
def _conv_tap_gemm_kernel(shifts, tile_lanes, apply_relu):
    """shifts: static per-tap lane offsets (dy*W_pad + dx), each <= halo."""
    def kernel(w_ref, b_ref, x_ref, xh_ref, o_ref):
        # (C_in_p, tile_lanes + halo): main lane tile + halo from the next tile.
        full = jnp.concatenate([x_ref[...], xh_ref[...]], axis=-1)
        # In-kernel "im2col": K*K lane-shifted copies stacked on the contraction axis.
        cols = jnp.concatenate(
            [full[:, s:s + tile_lanes] for s in shifts], axis=0)      # (K*K*C_in_p, TL)
        acc = jnp.dot(w_ref[...], cols, preferred_element_type=jnp.float32)
        acc = acc + b_ref[...]                                         # f32 bias
        if apply_relu:
            acc = jnp.maximum(acc, 0.0)
        o_ref[...] = acc.astype(o_ref.dtype)
    return kernel


def conv2d_bias_relu(x, w, b=None, *, relu=True, lane_target=2048,
                     matmul_dtype=jnp.bfloat16, out_dtype=jnp.float32):
    """nn.Conv2d(C_in, C_out, K, stride=1, padding=K//2, bias) + optional ReLU.

    x: (B, C_in, H, W)  ->  (B, C_out, H, W).
    Layout trick: both the padded input and the computed output use a W_pad row stride,
    so tap (dy, dx) reads the flat input at a constant shift dy*W_pad + dx.  Dead
    (padding) output lanes are computed and sliced off afterwards.
    """
    B, C_in, H, W = x.shape
    C_out, _, K, _ = w.shape
    pad = K // 2
    H_pad, W_pad = H + 2 * pad, W + 2 * pad
    Sp = H_pad * W_pad

    # Channel padding for clean sublane packing (16 for bf16, 8 for f32). Inert zeros.
    c_mult = 16 if matmul_dtype == jnp.bfloat16 else 8
    C_in_p = _round_up(C_in, c_mult)

    # --- activations: cast early, pad once, flatten (b, y, x) with W_pad stride -------
    xt = jnp.transpose(x.astype(matmul_dtype), (1, 0, 2, 3))           # (C_in, B, H, W)
    xt = jnp.pad(xt, ((0, C_in_p - C_in), (0, 0), (pad, pad), (pad, pad)))
    x_flat = xt.reshape(C_in_p, B * Sp)                                # (C_in_p, B*Sp)

    # Per-tap lane shifts (row-major over (dy, dx)); halo covers the largest shift.
    shifts = tuple(dy * W_pad + dx for dy in range(K) for dx in range(K))
    halo = _round_up(max(shifts[-1], 1), 128)

    # Lane tiling: large fixed tile, padded up; even tile count for v7x TC balance.
    L_out = B * Sp
    tl = max(halo, _round_up(min(max(lane_target, 4 * halo), L_out), halo))
    n_tiles = pl.cdiv(L_out, tl)
    if n_tiles >= 2 and n_tiles % 2 == 1:
        n_tiles += 1
    L_flat_out = n_tiles * tl
    L_flat_in = L_flat_out + halo                                      # room for halo
    x_flat = jnp.pad(x_flat, ((0, 0), (0, L_flat_in - L_out)))

    # --- weights: (C_out, C_in, K, K) -> (C_out, K*K*C_in_p), tap-major order ----------
    w_p = jnp.pad(w, ((0, 0), (0, C_in_p - C_in), (0, 0), (0, 0)))
    w_col = jnp.transpose(w_p, (0, 2, 3, 1)).reshape(C_out, K * K * C_in_p)
    w_col = w_col.astype(matmul_dtype)
    b_col = (jnp.zeros((C_out, 1), jnp.float32) if b is None
             else b.reshape(C_out, 1).astype(jnp.float32))

    out_flat = pl.pallas_call(
        _conv_tap_gemm_kernel(shifts, tl, relu),
        out_shape=jax.ShapeDtypeStruct((C_out, L_flat_out), out_dtype),
        grid=(n_tiles,),
        in_specs=[
            pl.BlockSpec((C_out, K * K * C_in_p), lambda j: (0, 0)),   # weights, resident
            pl.BlockSpec((C_out, 1), lambda j: (0, 0)),                # f32 bias, resident
            pl.BlockSpec((C_in_p, tl), lambda j: (0, j)),              # main lane tile
            pl.BlockSpec((C_in_p, halo),
                         lambda j: (0, (j + 1) * (tl // halo))),       # small halo block
        ],
        out_specs=pl.BlockSpec((C_out, tl), lambda j: (0, j)),
        compiler_params=pltpu.CompilerParams(
            dimension_semantics=("parallel",),
            vmem_limit_bytes=32 * 1024 * 1024,
        ),
    )(w_col, b_col, x_flat, x_flat)

    # Strip dead lanes (flat padding + padded rows/cols), back to (B, C_out, H, W).
    out = out_flat[:, :L_out].reshape(C_out, B, H_pad, W_pad)[:, :, :H, :W]
    return jnp.transpose(out, (1, 0, 2, 3))


# ---------------------------------------------------------------------------
# Conv_epi_v module: parameters + forward (matches the PyTorch reference).
# ---------------------------------------------------------------------------
def init_conv_epi_v_params(key, c_in, c_out=32, k=3, bias=True):
    kw, kb = jax.random.split(key)
    bound = 1.0 / math.sqrt(c_in * k * k)
    w = jax.random.uniform(kw, (c_out, c_in, k, k), jnp.float32, -bound, bound)
    bb = jax.random.uniform(kb, (c_out,), jnp.float32, -bound, bound) if bias else None
    return {"w": w, "b": bb}


def conv_epi_v_forward(params, x, *, matmul_dtype=jnp.bfloat16):
    """x: (N, u, v, c, h, w) -> (N, u, v, C_out, h, w); 3x3 'same' conv + ReLU over the
    vertical EPI slices (the (u, h) plane), exactly as in the PyTorch Conv_epi_v."""
    N, u, v, c, h, w = x.shape
    C_out = params["w"].shape[0]                                       # reference uses 32
    xb = jnp.transpose(x, (0, 2, 5, 3, 1, 4)).reshape(N * v * w, c, u, h)
    out = conv2d_bias_relu(xb, params["w"], params["b"], relu=True,
                           matmul_dtype=matmul_dtype)
    out = out.reshape(N, v, w, C_out, u, h)
    return jnp.transpose(out, (0, 4, 1, 3, 5, 2))                      # (N,u,v,C_out,h,w)


# Pure-JAX reference (exact f32 conv) for tolerance checks.
def _reference_forward(params, x):
    N, u, v, c, h, w = x.shape
    C_out = params["w"].shape[0]
    xb = jnp.transpose(x, (0, 2, 5, 3, 1, 4)).reshape(N * v * w, c, u, h)
    y = jax.lax.conv_general_dilated(
        xb, params["w"], window_strides=(1, 1), padding="SAME",
        dimension_numbers=("NCHW", "OIHW", "NCHW"),
        precision=jax.lax.Precision.HIGHEST)
    if params["b"] is not None:
        y = y + params["b"].reshape(1, -1, 1, 1)
    y = jax.nn.relu(y)
    y = y.reshape(N, v, w, C_out, u, h)
    return jnp.transpose(y, (0, 4, 1, 3, 5, 2))


# ---------------------------------------------------------------------------
if __name__ == "__main__":
    key = jax.random.PRNGKey(0)
    k_p, k_x = jax.random.split(key)

    # Shapes consistent with MainNet usage: Conv_epi_v(fn=32, 32, 3, stride=1, pad=1, bias=True)
    N, u, v, c, h, w = 2, 3, 3, 32, 8, 8
    params = init_conv_epi_v_params(k_p, c_in=c, c_out=32, k=3, bias=True)
    x = jax.random.uniform(k_x, (N, u, v, c, h, w), jnp.float32)

    fwd = jax.jit(conv_epi_v_forward)
    out = jax.block_until_ready(fwd(params, x))
    assert out.shape == (N, u, v, 32, h, w)
    assert bool(jnp.all(jnp.isfinite(out)))

    ref = jax.block_until_ready(jax.jit(_reference_forward)(params, x))
    err_bf16 = float(jnp.max(jnp.abs(out - ref)))
    assert err_bf16 < 5e-2, f"bf16 kernel vs reference: max abs err = {err_bf16}"

    # Tightened layout-correctness check: same kernel with f32 matmul inputs.
    fwd_f32 = jax.jit(lambda p, xx: conv_epi_v_forward(p, xx, matmul_dtype=jnp.float32))
    out_f32 = jax.block_until_ready(fwd_f32(params, x))
    err_f32 = float(jnp.max(jnp.abs(out_f32 - ref)))
    assert err_f32 < 5e-3, f"f32 kernel vs reference: max abs err = {err_f32}"

    print("KERNEL_OK")
</pallas_src>

<mosaic_0001>
module attributes {stable_mosaic.version = 11 : i64} {
  func.func @kernel(%arg0: i32, %arg1: memref<32x288xbf16, #tpu.memory_space<vmem>>, %arg2: memref<32x1xf32, #tpu.memory_space<vmem>>, %arg3: memref<32x2048xbf16, #tpu.memory_space<vmem>>, %arg4: memref<32x128xbf16, #tpu.memory_space<vmem>>, %arg5: memref<32x2048xf32, #tpu.memory_space<vmem>>) attributes {dimension_semantics = [#tpu.dimension_semantics<parallel>], iteration_bounds = array<i64: 2>, scalar_prefetch = 0 : i64, scratch_operands = 0 : i64, tpu.core_type = #tpu.core_type<tc>, window_params = [{pipeline_mode = #tpu.pipeline_mode<synchronous>, transform_indices = @transform_0, window_bounds = array<i64: 32, 288>}, {pipeline_mode = #tpu.pipeline_mode<synchronous>, transform_indices = @transform_1, window_bounds = array<i64: 32, 1>}, {transform_indices = @transform_2, window_bounds = array<i64: 32, 2048>}, {transform_indices = @transform_3, window_bounds = array<i64: 32, 128>}, {transform_indices = @transform_4, window_bounds = array<i64: 32, 2048>}]} {
    %c0 = arith.constant 0 : index
    %c0_0 = arith.constant 0 : index
    %0 = vector.load %arg3[%c0, %c0_0] : memref<32x2048xbf16, #tpu.memory_space<vmem>>, vector<32x2048xbf16>
    %c0_1 = arith.constant 0 : index
    %c0_2 = arith.constant 0 : index
    %1 = vector.load %arg4[%c0_1, %c0_2] : memref<32x128xbf16, #tpu.memory_space<vmem>>, vector<32x128xbf16>
    %2 = tpu.concatenate %0, %1 in 1 : vector<32x2048xbf16>, vector<32x128xbf16> -> vector<32x2176xbf16>
    %3 = vector.extract_strided_slice %2 {offsets = [0, 0], sizes = [32, 2048], strides = [1, 1]} : vector<32x2176xbf16> to vector<32x2048xbf16>
    %4 = vector.extract_strided_slice %2 {offsets = [0, 1], sizes = [32, 2048], strides = [1, 1]} : vector<32x2176xbf16> to vector<32x2048xbf16>
    %5 = vector.extract_strided_slice %2 {offsets = [0, 2], sizes = [32, 2048], strides = [1, 1]} : vector<32x2176xbf16> to vector<32x2048xbf16>
    %6 = vector.extract_strided_slice %2 {offsets = [0, 10], sizes = [32, 2048], strides = [1, 1]} : vector<32x2176xbf16> to vector<32x2048xbf16>
    %7 = vector.extract_strided_slice %2 {offsets = [0, 11], sizes = [32, 2048], strides = [1, 1]} : vector<32x2176xbf16> to vector<32x2048xbf16>
    %8 = vector.extract_strided_slice %2 {offsets = [0, 12], sizes = [32, 2048], strides = [1, 1]} : vector<32x2176xbf16> to vector<32x2048xbf16>
    %9 = vector.extract_strided_slice %2 {offsets = [0, 20], sizes = [32, 2048], strides = [1, 1]} : vector<32x2176xbf16> to vector<32x2048xbf16>
    %10 = vector.extract_strided_slice %2 {offsets = [0, 21], sizes = [32, 2048], strides = [1, 1]} : vector<32x2176xbf16> to vector<32x2048xbf16>
    %11 = vector.extract_strided_slice %2 {offsets = [0, 22], sizes = [32, 2048], strides = [1, 1]} : vector<32x2176xbf16> to vector<32x2048xbf16>
    %12 = tpu.concatenate %3, %4, %5, %6, %7, %8, %9, %10, %11 in 0 : vector<32x2048xbf16>, vector<32x2048xbf16>, vector<32x2048xbf16>, vector<32x2048xbf16>, vector<32x2048xbf16>, vector<32x2048xbf16>, vector<32x2048xbf16>, vector<32x2048xbf16>, vector<32x2048xbf16> -> vector<288x2048xbf16>
    %c0_3 = arith.constant 0 : index
    %c0_4 = arith.constant 0 : index
    %13 = vector.load %arg1[%c0_3, %c0_4] : memref<32x288xbf16, #tpu.memory_space<vmem>>, vector<32x288xbf16>
    %cst = arith.constant dense<0.000000e+00> : vector<32x2048xf32>
    %14 = tpu.matmul %13, %12, %cst {dimension_numbers = #tpu.dot_dimension_numbers<[1], [0], [0], [1], [0, 0, 1, 1], [], []>} : vector<32x288xbf16>, vector<288x2048xbf16>, vector<32x2048xf32> -> vector<32x2048xf32>
    %c0_5 = arith.constant 0 : index
    %c0_6 = arith.constant 0 : index
    %15 = vector.load %arg2[%c0_5, %c0_6] : memref<32x1xf32, #tpu.memory_space<vmem>>, vector<32x1xf32>
    %16 = vector.broadcast %15 : vector<32x1xf32> to vector<32x2048xf32>
    %17 = arith.addf %14, %16 : vector<32x2048xf32>
    %cst_7 = arith.constant 0.000000e+00 : f32
    %18 = vector.broadcast %cst_7 : f32 to vector<32x2048xf32>
    %19 = arith.maximumf %17, %18 : vector<32x2048xf32>
    %c0_8 = arith.constant 0 : index
    %c0_9 = arith.constant 0 : index
    %20 = vector.load %arg5[%c0_8, %c0_9] : memref<32x2048xf32, #tpu.memory_space<vmem>>, vector<32x2048xf32>
    tpu.vector_store %arg5[%c0_8, %c0_9], %19 {strides = array<i32>} : memref<32x2048xf32, #tpu.memory_space<vmem>>, vector<32x2048xf32>,
    return
  }
  func.func @transform_0(%arg0: i32) -> (i32, i32) {
    %c0_i32 = arith.constant 0 : i32
    %c0_i32_0 = arith.constant 0 : i32
    %c0_i32_1 = arith.constant 0 : i32
    return %c0_i32, %c0_i32_0 : i32, i32
  }
  func.func @transform_1(%arg0: i32) -> (i32, i32) {
    %c0_i32 = arith.constant 0 : i32
    %c0_i32_0 = arith.constant 0 : i32
    %c0_i32_1 = arith.constant 0 : i32
    return %c0_i32, %c0_i32_0 : i32, i32
  }
  func.func @transform_2(%arg0: i32) -> (i32, i32) {
    %c0_i32 = arith.constant 0 : i32
    %c0_i32_0 = arith.constant 0 : i32
    return %c0_i32, %arg0 : i32, i32
  }
  func.func @transform_3(%arg0: i32) -> (i32, i32) {
    %c1_i32 = arith.constant 1 : i32
    %0 = arith.addi %arg0, %c1_i32 : i32
    %c16_i32 = arith.constant 16 : i32
    %1 = arith.muli %0, %c16_i32 : i32
    %c0_i32 = arith.constant 0 : i32
    %c0_i32_0 = arith.constant 0 : i32
    return %c0_i32, %1 : i32, i32
  }
  func.func @transform_4(%arg0: i32) -> (i32, i32) {
    %c0_i32 = arith.constant 0 : i32
    %c0_i32_0 = arith.constant 0 : i32
    return %c0_i32, %arg0 : i32, i32
  }
}

</mosaic_0001>

<bundles_post_ra>
// kernel: conv_epi_v_forward.1
= control target key start
LH: loop header
LB: loop body
LE: loop exit
PB: predicated region body
PF: predicated region fallthrough
CT: control target
= control target key end

     0   :  { %s7048_s0 = inlined_call_operand.vmem [shape: bf16[32,288], index: 0, kind: input, shape index: {}]   ;;  %s7049_s1 = inlined_call_operand.vmem [shape: f32[32,1], index: 1, kind: input, shape index: {}]   ;;  %s7050_s2 = inlined_call_operand.vmem [shape: bf16[32,4224], index: 2, kind: input, shape index: {}, may-alias: {2,3}]   ;;  %s7051_s3 = inlined_call_operand.vmem [shape: bf16[32,4224], index: 3, kind: input, shape index: {}, may-alias: {2,3}]   ;;  %s7052_s4 = inlined_call_operand.vmem [shape: f32[32,4096], index: 4, kind: output, shape index: {}]  }
   0x1   :  { %7131 = sst [smem:[#allocation97_spill]] %s7050_s2 }
   0x2   :  { %s3960_s15 = smov 0   ;;  %s3962_s16 = smov 0  }
   0x3   :  { %s3964_s17 = smov 0   ;;  %s3966_s18 = smov 0  }
   0x4   :  { %s3968_s19 = smov 0  }
   0x5 LB: > { %7132 = sst [smem:[#allocation5_spill]] %s3854_s18  ;;  %s7053_s20 = sadd.s32 4294967295, %s3858_s19   ;;  %s3858_s19 = sphi %s3968_s19, %s7450_s19   ;;  %s3854_s18 = sphi %s3966_s18, %s7447_s18   ;;  %s3850_s17 = sphi %s3964_s17, %s7446_s17   ;;  %s3846_s16 = sphi %s3962_s16, %s7449_s16   ;;  %s3842_s15 = sphi %s3960_s15, %s7448_s15  }
   0x6   : > { %s3987_s21 = sadd.s32 1, %s3858_s19   ;;  %s63_s23 = sadd.s32 1, %s3854_s18 }
   0x7   : > { %s60_s22 = ssub.s32 %s3858_s19, %s3987_s21  ;;  %p70_p1 = scmp.ne.s32.totalorder %s3854_s18, %s3850_s17 }
   0x8   : > { %p61_p0 = scmp.eq.s32.totalorder %s60_s22, 0  ;;  %p71_p2 = scmp.eq.s32.totalorder %s3858_s19, 0 }
   0x9   : > { %s3512_s24 = sshll.u32 %s3858_s19, 4  ;;  %s93_s28 = sadd.s32 1, %s3846_s16 }
   0xa   : > { %s3997_s25 = scalar_select %p61_p0, %s3854_s18, %s63_s23  }
   0xb   : > { %p72_p3 = por %p71_p2, %p70_p1  ;;  %s3513_s26 = sadd.s32 16, %s3512_s24 }
   0xc   : > { %7133 = sst [smem:[#allocation6_spill]] %s3997_s25  ;;  %s3515_s27 = sadd.s32 16, %s3513_s26 }
   0xd   : > { %s90_s29 = ssub.s32 %s3513_s26, %s3515_s27  ;;  %p100_p4 = scmp.ne.s32.totalorder %s3846_s16, %s3842_s15 }
   0xe   : > { %p91_p5 = scmp.eq.s32.totalorder %s90_s29, 0  ;;  %p130_p6 = scmp.eq.s32.totalorder %s7053_s20, 1 }
   0xf   : > { %p4007_p7 = por %p100_p4, %p71_p2  ;;  %p3275_p9 = scmp.ge.s32.totalorder %s3858_s19, 2 }
  0x10   : > { %s4012_s5 = scalar_select %p91_p5, %s3846_s16, %s93_s28  }
  0x11   : > { %p4017_p8 = por %p130_p6, %p70_p1  ;;  %158 = sbr.rel (%p3275_p9) target bundleno = 189 (0xbd), region = 24 }
  0x16   : > { %161 = sbr.rel (!%p72_p3) target bundleno = 181 (0xb5), region = 28  ;;  %s163_s7 = sand.u32 (%p72_p3), 1, %s3854_s18  }
  0x17   : > { %s167_s8 = ssub.s32 (%p72_p3), 33, %s3512_s24  ;;  %s3276_s9 = sshll.u32 (%p72_p3), %s163_s7, 8 }
  0x18   : > { %p168_p10 = scmp.lt.s32.totalorder (%p72_p3), %s167_s8, 16  ;;  %s3516_s10 = sshll.u32 (%p72_p3), %s3858_s19, 6 }
  0x19   : > { %s7136_s2 = sld [smem:[#allocation97_spill]] (%p72_p3)  ;;  %s4031_s23 = scalar_lea.vmem (%p72_p3), [#allocation2], %s3276_s9  }
  0x1b   : > { %s7452_s8 = smov (!%p168_p10, %s167_s8), 16 }
  0x1c   : > { %s3278_s14 = sshll.u32 %s7452_s8, 4  ;;  %s4029_s22 = sshll.u32 %s7452_s8, 2 }
  0x1d   : > { %p3282_p11 = scmp.eq.s32.totalorder %s3278_s14, 0 }
  0x1e   : > { %p178_p12 = scmp.lt.u32.totalorder (!%p3282_p11), %s4029_s22, 8 }
  0x1f   : > { %s4027_s13 = scalar_lea.vmem %s7136_s2, %s3516_s10   ;;  %177 = sbr.rel (%p3282_p11) target bundleno = 181 (0xb5), region = 32 }
  0x24   : > { %181 = sbr.rel (%p178_p12) target bundleno = 169 (0xa9), region = 36  ;;  %s4035_s24 = sand.u32 (!%p178_p12), 7, %s4029_s22  }
  0x25   : > { %p204_p13 = scmp.eq.s32.totalorder (!%p178_p12), %s4035_s24, 0  ;;  %p3283_p0 = scmp.ne.s32.totalorder (!%p178_p12), %s4035_s24, 0 }
  0x29   : > { %207 = sbr.rel (%p3283_p0) target bundleno = 101 (0x65), region = 51  ;;  %s208_s26 = sshrl.u32 (!%p3283_p0), %s4029_s22, 3 }
  0x2a   : > { %s4042_s27 = sshrl.u32 (!%p3283_p0), %s208_s26, 3 }
  0x2b   : > { %p3284_p1 = scmp.le.s32.totalorder (!%p3283_p0), %s4042_s27, 0 }
  0x2e   : > { %3193 = sbr.rel (%p3284_p1) target bundleno = 84 (0x54), region = 221  ;;  %s7137_s28 = smov (!%p3284_p1), %s4031_s23 }
  0x2f   : > { %s7138_s29 = smov (!%p3284_p1), %s4027_s13  ;;  %s4051_s7 = smov (!%p3284_p1), 0  }
  0x30   : > { %s4053_s8 = smov (!%p3284_p1), 0  }
  0x33 LB: >> { %v219_v0 = vld [vmem:[%s3866_s29] sm:$0xff]  ;;  %v221_v1 = vld [vmem:[%s3866_s29 + $0x8] sm:$0xff]  ;;  %v223_v2 = vld [vmem:[%s3866_s29 + $0x10] sm:$0xff]  ;;  %s283_s9 = sadd.s32 1, %s3870_s7  ;;  %s213_s8 = sadd.s32 1, %s3874_s8   ;;  %s3874_s8 = sphi %s4053_s8, %s213_s8   ;;  %s3870_s7 = sphi %s4051_s7, %s7141_s7   ;;  %s3866_s29 = sphi %s7138_s29, %s7140_s29   ;;  %s3862_s28 = sphi %s7137_s28, %s7139_s28  }
  0x34   : >> { %220 = vst [vmem:[%s3862_s28] sm:$0xff] %v219_v0  ;;  %v225_v3 = vld [vmem:[%s3866_s29 + $0x18] sm:$0xff]  ;;  %p284_p2 = scmp.ge.s32.totalorder %s283_s9, %s4042_s27  ;;  %v227_v4 = vld [vmem:[%s3866_s29 + $0x20] sm:$0xff]  ;;  %v229_v5 = vld [vmem:[%s3866_s29 + $0x28] sm:$0xff]  ;;  %p212_p3 = scmp.ge.s32.totalorder %s213_s8, %s4042_s27 }
  0x35   : >> { %222 = vst [vmem:[%s3862_s28 + $0x8] sm:$0xff] %v221_v1  ;;  %v231_v6 = vld [vmem:[%s3866_s29 + $0x30] sm:$0xff]  ;;  %v233_v7 = vld [vmem:[%s3866_s29 + $0x38] sm:$0xff]  ;;  %v235_v8 = vld [vmem:[%s3866_s29 + $0x84] sm:$0xff] }
  0x36   : >> { %224 = vst [vmem:[%s3862_s28 + $0x10] sm:$0xff] %v223_v2  ;;  %s7454_s9 = smov (%p284_p2, %s283_s9), 0  ;;  %v237_v9 = vld [vmem:[%s3866_s29 + $0x8c] sm:$0xff]  ;;  %v239_v10 = vld [vmem:[%s3866_s29 + $0x94] sm:$0xff]  ;;  %v241_v11 = vld [vmem:[%s3866_s29 + $0x9c] sm:$0xff] }
  0x37   : >> { %226 = vst [vmem:[%s3862_s28 + $0x18] sm:$0xff] %v225_v3  ;;  %s3285_s10 = sshll.u32 %s7454_s9, 6  ;;  %v243_v12 = vld [vmem:[%s3866_s29 + $0xa4] sm:$0xff]  ;;  %v245_v13 = vld [vmem:[%s3866_s29 + $0xac] sm:$0xff]  ;;  %v247_v14 = vld [vmem:[%s3866_s29 + $0xb4] sm:$0xff]  ;;  %s7141_s7 = smov %s7454_s9 }
  0x38   : >> { %228 = vst [vmem:[%s3862_s28 + $0x20] sm:$0xff] %v227_v4  ;;  %s4085_s11 = scalar_lea.vmem %s4027_s13, %s3285_s10   ;;  %s4088_s12 = scalar_lea.vmem %s4031_s23, %s3285_s10 [#allocation2]   ;;  %v249_v15 = vld [vmem:[%s3866_s29 + $0xbc] sm:$0xff]  ;;  %v251_v16 = vld [vmem:[%s3866_s29 + $0x108] sm:$0xff]  ;;  %v253_v17 = vld [vmem:[%s3866_s29 + $0x110] sm:$0xff] }
  0x39   : >> { %230 = vst [vmem:[%s3862_s28 + $0x28] sm:$0xff] %v229_v5  ;;  %v255_v18 = vld [vmem:[%s3866_s29 + $0x118] sm:$0xff]  ;;  %v257_v19 = vld [vmem:[%s3866_s29 + $0x120] sm:$0xff]  ;;  %v259_v20 = vld [vmem:[%s3866_s29 + $0x128] sm:$0xff] }
  0x3a   : >> { %232 = vst [vmem:[%s3862_s28 + $0x30] sm:$0xff] %v231_v6  ;;  %v261_v21 = vld [vmem:[%s3866_s29 + $0x130] sm:$0xff]  ;;  %v263_v22 = vld [vmem:[%s3866_s29 + $0x138] sm:$0xff]  ;;  %v265_v23 = vld [vmem:[%s3866_s29 + $0x140] sm:$0xff] }
  0x3b   : >> { %234 = vst [vmem:[%s3862_s28 + $0x38] sm:$0xff] %v233_v7  ;;  %v267_v24 = vld [vmem:[%s3866_s29 + $0x18c] sm:$0xff]  ;;  %v269_v25 = vld [vmem:[%s3866_s29 + $0x194] sm:$0xff]  ;;  %v271_v26 = vld [vmem:[%s3866_s29 + $0x19c] sm:$0xff] }
  0x3c   : >> { %236 = vst [vmem:[%s3862_s28 + $0x40] sm:$0xff] %v235_v8  ;;  %v273_v27 = vld [vmem:[%s3866_s29 + $0x1a4] sm:$0xff]  ;;  %v275_v28 = vld [vmem:[%s3866_s29 + $0x1ac] sm:$0xff]  ;;  %v277_v29 = vld [vmem:[%s3866_s29 + $0x1b4] sm:$0xff] }
  0x3d   : >> { %238 = vst [vmem:[%s3862_s28 + $0x48] sm:$0xff] %v237_v9  ;;  %v279_v30 = vld [vmem:[%s3866_s29 + $0x1bc] sm:$0xff]  ;;  %v281_v31 = vld [vmem:[%s3866_s29 + $0x1c4] sm:$0xff]  ;;  %s7140_s29 = smov %s4085_s11 }
  0x3e   : >> { %240 = vst [vmem:[%s3862_s28 + $0x50] sm:$0xff] %v239_v10 }
  0x3f   : >> { %242 = vst [vmem:[%s3862_s28 + $0x58] sm:$0xff] %v241_v11 }
  0x40   : >> { %244 = vst [vmem:[%s3862_s28 + $0x60] sm:$0xff] %v243_v12 }
  0x41   : >> { %246 = vst [vmem:[%s3862_s28 + $0x68] sm:$0xff] %v245_v13 }
  0x42   : >> { %248 = vst [vmem:[%s3862_s28 + $0x70] sm:$0xff] %v247_v14 }
  0x43   : >> { %250 = vst [vmem:[%s3862_s28 + $0x78] sm:$0xff] %v249_v15 }
  0x44   : >> { %252 = vst [vmem:[%s3862_s28 + $0x80] sm:$0xff] %v251_v16 }
  0x45   : >> { %254 = vst [vmem:[%s3862_s28 + $0x88] sm:$0xff] %v253_v17 }
  0x46   : >> { %256 = vst [vmem:[%s3862_s28 + $0x90] sm:$0xff] %v255_v18 }
  0x47   : >> { %258 = vst [vmem:[%s3862_s28 + $0x98] sm:$0xff] %v257_v19 }
  0x48   : >> { %260 = vst [vmem:[%s3862_s28 + $0xa0] sm:$0xff] %v259_v20 }
  0x49   : >> { %262 = vst [vmem:[%s3862_s28 + $0xa8] sm:$0xff] %v261_v21 }
  0x4a   : >> { %264 = vst [vmem:[%s3862_s28 + $0xb0] sm:$0xff] %v263_v22 }
  0x4b   : >> { %266 = vst [vmem:[%s3862_s28 + $0xb8] sm:$0xff] %v265_v23 }
  0x4c   : >> { %268 = vst [vmem:[%s3862_s28 + $0xc0] sm:$0xff] %v267_v24 }
  0x4d   : >> { %270 = vst [vmem:[%s3862_s28 + $0xc8] sm:$0xff] %v269_v25 }
  0x4e   : >> { %272 = vst [vmem:[%s3862_s28 + $0xd0] sm:$0xff] %v271_v26 }
  0x4f   : >> { %274 = vst [vmem:[%s3862_s28 + $0xd8] sm:$0xff] %v273_v27  ;;  %215 = sbr.rel (!%p212_p3) target bundleno = 51 (0x33), region = 227 }
  0x50   : >> { %276 = vst [vmem:[%s3862_s28 + $0xe0] sm:$0xff] %v275_v28 }
  0x51   : >> { %278 = vst [vmem:[%s3862_s28 + $0xe8] sm:$0xff] %v277_v29 }
  0x52   : >> { %280 = vst [vmem:[%s3862_s28 + $0xf0] sm:$0xff] %v279_v30 }
  0x53   : >> { %282 = vst [vmem:[%s3862_s28 + $0xf8] sm:$0xff] %v281_v31  ;;  %s7139_s28 = smov %s4088_s12 }
  0x54 PF: > { %s4154_s14 = sand.u32 7, %s208_s26   ;;  %s3517_s10 = sshll.u32 %s4042_s27, 6 }
  0x55   : > { %s4158_s20 = scalar_lea.vmem %s4027_s13, %s3517_s10   ;;  %s4161_s2 = scalar_lea.vmem %s4031_s23, %s3517_s10 [#allocation2]  }
  0x56   : > { %p3290_p4 = scmp.le.s32.totalorder %s4154_s14, 0 }
  0x57   : > { %s7142_s8 = smov (!%p3290_p4), %s4161_s2  ;;  %s7143_s28 = smov (!%p3290_p4), %s4158_s20 }
  0x58   : > { %3207 = sbr.rel (%p3290_p4) target bundleno = 101 (0x65), region = 232  ;;  %s4170_s29 = smov (!%p3290_p4), 0  }
  0x59   : > { %s3888_s7 = smov (!%p3290_p4), 0  }
  0x5d LB: >> { %v306_v32 = vld [vmem:[%s3882_s28] sm:$0xff]  ;;  %v310_v34 = vld [vmem:[%s3882_s28 + $0x108] sm:$0xff]  ;;  %s314_s26 = sadd.s32 1, %s3886_s29  ;;  %s300_s7 = sadd.s32 1, %s3890_s7   ;;  %s3890_s7 = sphi %s3888_s7, %s300_s7   ;;  %s3886_s29 = sphi %s4170_s29, %s7144_s29   ;;  %s3882_s28 = sphi %s7143_s28, %s319_s28   ;;  %s3878_s8 = sphi %s7142_s8, %s320_s8  }
  0x5e   : >> { %v308_v33 = vld [vmem:[%s3882_s28 + $0x84] sm:$0xff]  ;;  %307 = vst [vmem:[%s3878_s8] sm:$0xff] %v306_v32  ;;  %v312_v35 = vld [vmem:[%s3882_s28 + $0x18c] sm:$0xff]  ;;  %p315_p5 = scmp.ge.s32.totalorder %s314_s26, %s4154_s14  ;;  %p299_p6 = scmp.ge.s32.totalorder %s300_s7, %s4154_s14 }
  0x5f   : >> { %309 = vst [vmem:[%s3878_s8 + $0x40] sm:$0xff] %v308_v33 }
  0x60   : >> { %311 = vst [vmem:[%s3878_s8 + $0x80] sm:$0xff] %v310_v34  ;;  %s7456_s26 = smov (%p315_p5, %s314_s26), 0  ;;  %302 = sbr.rel (!%p299_p6) target bundleno = 93 (0x5d), region = 238 }
  0x61   : >> { %313 = vst [vmem:[%s3878_s8 + $0xc0] sm:$0xff] %v312_v35  ;;  %s3291_s27 = sshll.u32 %s7456_s26, 3  ;;  %s7144_s29 = smov %s7456_s26 }
  0x62   : >> { %s319_s28 = scalar_lea.vmem %s4158_s20, %s3291_s27   ;;  %s320_s8 = scalar_lea.vmem %s4161_s2, %s3291_s27 [#allocation2]  }
  0x65 PF: > { %323 = sbr.rel (%p204_p13) target bundleno = 169 (0xa9), region = 69  ;;  %s325_s9 = ssub.s32 (!%p204_p13), %s4029_s22, %s4035_s24 }
  0x66   : > { %s329_s11 = sshrl.u32 (!%p204_p13), %s4029_s22, 3  ;;  %s4191_s12 = scalar_lea.vmem (!%p204_p13), %s4027_s13, %s325_s9 }
  0x67   : > { %s4194_s10 = scalar_lea.vmem (!%p204_p13), %s4031_s23, %s325_s9 [#allocation2]  ;;  %s4198_s29 = sshrl.u32 (!%p204_p13), %s329_s11, 3 }
  0x68   : > { %p3293_p9 = scmp.le.s32.totalorder (!%p204_p13), %s4198_s29, 0 }
  0x6a   : > { %3221 = sbr.rel (%p3293_p9) target bundleno = 144 (0x90), region = 243  ;;  %s7145_s2 = smov (!%p3293_p9), %s4031_s23 }
  0x6b   : > { %s7146_s20 = smov (!%p3293_p9), %s4027_s13  ;;  %s4207_s14 = smov (!%p3293_p9), 0  }
  0x6c   : > { %s4209_s8 = smov (!%p3293_p9), 0  }
  0x6f LB: >> { %v340_v36 = vld [vmem:[%s3898_s20] sm:$0xff]  ;;  %v342_v37 = vld [vmem:[%s3898_s20 + $0x8] sm:$0xff]  ;;  %v344_v38 = vld [vmem:[%s3898_s20 + $0x10] sm:$0xff]  ;;  %s404_s28 = sadd.s32 1, %s3902_s14  ;;  %s334_s8 = sadd.s32 1, %s3906_s8   ;;  %s3906_s8 = sphi %s4209_s8, %s334_s8   ;;  %s3902_s14 = sphi %s4207_s14, %s7149_s14   ;;  %s3898_s20 = sphi %s7146_s20, %s7148_s20   ;;  %s3894_s2 = sphi %s7145_s2, %s7147_s2  }
  0x70   : >> { %341 = vst [vmem:[%s3894_s2] sm:$0xff] %v340_v36  ;;  %v346_v39 = vld [vmem:[%s3898_s20 + $0x18] sm:$0xff]  ;;  %p405_p10 = scmp.ge.s32.totalorder %s404_s28, %s4198_s29  ;;  %v348_v40 = vld [vmem:[%s3898_s20 + $0x20] sm:$0xff]  ;;  %v350_v41 = vld [vmem:[%s3898_s20 + $0x28] sm:$0xff]  ;;  %p333_p11 = scmp.ge.s32.totalorder %s334_s8, %s4198_s29 }
  0x71   : >> { %343 = vst [vmem:[%s3894_s2 + $0x8] sm:$0xff] %v342_v37  ;;  %v352_v42 = vld [vmem:[%s3898_s20 + $0x30] sm:$0xff]  ;;  %v354_v43 = vld [vmem:[%s3898_s20 + $0x38] sm:$0xff]  ;;  %v356_v44 = vld [vmem:[%s3898_s20 + $0x84] sm:$0xff] }
  0x72   : >> { %345 = vst [vmem:[%s3894_s2 + $0x10] sm:$0xff] %v344_v38  ;;  %s7458_s28 = smov (%p405_p10, %s404_s28), 0  ;;  %v358_v45 = vld [vmem:[%s3898_s20 + $0x8c] sm:$0xff]  ;;  %v360_v46 = vld [vmem:[%s3898_s20 + $0x94] sm:$0xff]  ;;  %v362_v47 = vld [vmem:[%s3898_s20 + $0x9c] sm:$0xff] }
  0x73   : >> { %347 = vst [vmem:[%s3894_s2 + $0x18] sm:$0xff] %v346_v39  ;;  %s3294_s7 = sshll.u32 %s7458_s28, 6  ;;  %v364_v48 = vld [vmem:[%s3898_s20 + $0xa4] sm:$0xff]  ;;  %v366_v49 = vld [vmem:[%s3898_s20 + $0xac] sm:$0xff]  ;;  %v368_v50 = vld [vmem:[%s3898_s20 + $0xb4] sm:$0xff]  ;;  %s7149_s14 = smov %s7458_s28 }
  0x74   : >> { %349 = vst [vmem:[%s3894_s2 + $0x20] sm:$0xff] %v348_v40  ;;  %s4241_s26 = scalar_lea.vmem %s4027_s13, %s3294_s7   ;;  %s4244_s27 = scalar_lea.vmem %s4031_s23, %s3294_s7 [#allocation2]   ;;  %v370_v51 = vld [vmem:[%s3898_s20 + $0xbc] sm:$0xff]  ;;  %v372_v52 = vld [vmem:[%s3898_s20 + $0x108] sm:$0xff]  ;;  %v374_v53 = vld [vmem:[%s3898_s20 + $0x110] sm:$0xff] }
  0x75   : >> { %351 = vst [vmem:[%s3894_s2 + $0x28] sm:$0xff] %v350_v41  ;;  %v376_v54 = vld [vmem:[%s3898_s20 + $0x118] sm:$0xff]  ;;  %v378_v55 = vld [vmem:[%s3898_s20 + $0x120] sm:$0xff]  ;;  %v380_v56 = vld [vmem:[%s3898_s20 + $0x128] sm:$0xff] }
  0x76   : >> { %353 = vst [vmem:[%s3894_s2 + $0x30] sm:$0xff] %v352_v42  ;;  %v382_v57 = vld [vmem:[%s3898_s20 + $0x130] sm:$0xff]  ;;  %v384_v58 = vld [vmem:[%s3898_s20 + $0x138] sm:$0xff]  ;;  %v386_v59 = vld [vmem:[%s3898_s20 + $0x140] sm:$0xff] }
  0x77   : >> { %355 = vst [vmem:[%s3894_s2 + $0x38] sm:$0xff] %v354_v43  ;;  %v388_v60 = vld [vmem:[%s3898_s20 + $0x18c] sm:$0xff]  ;;  %v390_v61 = vld [vmem:[%s3898_s20 + $0x194] sm:$0xff]  ;;  %v392_v62 = vld [vmem:[%s3898_s20 + $0x19c] sm:$0xff] }
  0x78   : >> { %357 = vst [vmem:[%s3894_s2 + $0x40] sm:$0xff] %v356_v44  ;;  %v394_v63 = vld [vmem:[%s3898_s20 + $0x1a4] sm:$0xff]  ;;  %v396_v0 = vld [vmem:[%s3898_s20 + $0x1ac] sm:$0xff]  ;;  %v398_v1 = vld [vmem:[%s3898_s20 + $0x1b4] sm:$0xff] }
  0x79   : >> { %359 = vst [vmem:[%s3894_s2 + $0x48] sm:$0xff] %v358_v45  ;;  %v400_v2 = vld [vmem:[%s3898_s20 + $0x1bc] sm:$0xff]  ;;  %v402_v3 = vld [vmem:[%s3898_s20 + $0x1c4] sm:$0xff]  ;;  %s7148_s20 = smov %s4241_s26 }
  0x7a   : >> { %361 = vst [vmem:[%s3894_s2 + $0x50] sm:$0xff] %v360_v46 }
  0x7b   : >> { %363 = vst [vmem:[%s3894_s2 + $0x58] sm:$0xff] %v362_v47 }
  0x7c   : >> { %365 = vst [vmem:[%s3894_s2 + $0x60] sm:$0xff] %v364_v48 }
  0x7d   : >> { %367 = vst [vmem:[%s3894_s2 + $0x68] sm:$0xff] %v366_v49 }
  0x7e   : >> { %369 = vst [vmem:[%s3894_s2 + $0x70] sm:$0xff] %v368_v50 }
  0x7f   : >> { %371 = vst [vmem:[%s3894_s2 + $0x78] sm:$0xff] %v370_v51 }
  0x80   : >> { %373 = vst [vmem:[%s3894_s2 + $0x80] sm:$0xff] %v372_v52 }
  0x81   : >> { %375 = vst [vmem:[%s3894_s2 + $0x88] sm:$0xff] %v374_v53 }
  0x82   : >> { %377 = vst [vmem:[%s3894_s2 + $0x90] sm:$0xff] %v376_v54 }
  0x83   : >> { %379 = vst [vmem:[%s3894_s2 + $0x98] sm:$0xff] %v378_v55 }
  0x84   : >> { %381 = vst [vmem:[%s3894_s2 + $0xa0] sm:$0xff] %v380_v56 }
  0x85   : >> { %383 = vst [vmem:[%s3894_s2 + $0xa8] sm:$0xff] %v382_v57 }
  0x86   : >> { %385 = vst [vmem:[%s3894_s2 + $0xb0] sm:$0xff] %v384_v58 }
  0x87   : >> { %387 = vst [vmem:[%s3894_s2 + $0xb8] sm:$0xff] %v386_v59 }
  0x88   : >> { %389 = vst [vmem:[%s3894_s2 + $0xc0] sm:$0xff] %v388_v60 }
  0x89   : >> { %391 = vst [vmem:[%s3894_s2 + $0xc8] sm:$0xff] %v390_v61 }
  0x8a   : >> { %393 = vst [vmem:[%s3894_s2 + $0xd0] sm:$0xff] %v392_v62 }
  0x8b   : >> { %395 = vst [vmem:[%s3894_s2 + $0xd8] sm:$0xff] %v394_v63  ;;  %336 = sbr.rel (!%p333_p11) target bundleno = 111 (0x6f), region = 249 }
  0x8c   : >> { %397 = vst [vmem:[%s3894_s2 + $0xe0] sm:$0xff] %v396_v0 }
  0x8d   : >> { %399 = vst [vmem:[%s3894_s2 + $0xe8] sm:$0xff] %v398_v1 }
  0x8e   : >> { %401 = vst [vmem:[%s3894_s2 + $0xf0] sm:$0xff] %v400_v2 }
  0x8f   : >> { %403 = vst [vmem:[%s3894_s2 + $0xf8] sm:$0xff] %v402_v3  ;;  %s7147_s2 = smov %s4244_s27 }
  0x90 PF: > { %s4310_s9 = sand.u32 7, %s329_s11   ;;  %s3519_s7 = sshll.u32 %s4198_s29, 6 }
  0x91   : > { %s4314_s25 = scalar_lea.vmem %s4027_s13, %s3519_s7   ;;  %s4317_s18 = scalar_lea.vmem %s4031_s23, %s3519_s7 [#allocation2]  }
  0x92   : > { %p3299_p12 = scmp.le.s32.totalorder %s4310_s9, 0 }
  0x93   : > { %s7150_s8 = smov (!%p3299_p12), %s4317_s18  ;;  %s7151_s2 = smov (!%p3299_p12), %s4314_s25 }
  0x94   : > { %3235 = sbr.rel (%p3299_p12) target bundleno = 161 (0xa1), region = 254  ;;  %s3916_s20 = smov (!%p3299_p12), 0  }
  0x95   : > { %s3920_s14 = smov (!%p3299_p12), 0  }
  0x99 LB: >> { %v427_v4 = vld [vmem:[%s3914_s2] sm:$0xff]  ;;  %v431_v6 = vld [vmem:[%s3914_s2 + $0x108] sm:$0xff]  ;;  %s435_s11 = sadd.s32 1, %s3918_s20  ;;  %s421_s14 = sadd.s32 1, %s3922_s14   ;;  %s3922_s14 = sphi %s3920_s14, %s421_s14   ;;  %s3918_s20 = sphi %s3916_s20, %s3917_s20   ;;  %s3914_s2 = sphi %s7151_s2, %s440_s2   ;;  %s3910_s8 = sphi %s7150_s8, %s441_s8  }
  0x9a   : >> { %v429_v5 = vld [vmem:[%s3914_s2 + $0x84] sm:$0xff]  ;;  %428 = vst [vmem:[%s3910_s8] sm:$0xff] %v427_v4  ;;  %v433_v7 = vld [vmem:[%s3914_s2 + $0x18c] sm:$0xff]  ;;  %p436_p13 = scmp.ge.s32.totalorder %s435_s11, %s4310_s9  ;;  %p420_p0 = scmp.ge.s32.totalorder %s421_s14, %s4310_s9 }
  0x9b   : >> { %430 = vst [vmem:[%s3910_s8 + $0x40] sm:$0xff] %v429_v5 }
  0x9c   : >> { %432 = vst [vmem:[%s3910_s8 + $0x80] sm:$0xff] %v431_v6  ;;  %s7460_s11 = smov (%p436_p13, %s435_s11), 0  ;;  %423 = sbr.rel (!%p420_p0) target bundleno = 153 (0x99), region = 260 }
  0x9d   : >> { %434 = vst [vmem:[%s3910_s8 + $0xc0] sm:$0xff] %v433_v7  ;;  %s3300_s29 = sshll.u32 %s7460_s11, 3  ;;  %s3917_s20 = smov %s7460_s11  }
  0x9e   : >> { %s440_s2 = scalar_lea.vmem %s4314_s25, %s3300_s29   ;;  %s441_s8 = scalar_lea.vmem %s4317_s18, %s3300_s29 [#allocation2]  }
  0xa1 PF: > { %s3924_s28 = smov 1  }
  0xa2   : > { %s442_s26 = sshll.u32 %s3924_s28, %s4035_s24 }
  0xa3   : > { %s3302_s27 = sadd.s32 4294967295, %s442_s26 }
  0xa4   : > { %v452_v8 = vld [vmem:[%s4191_s12] sm:%s3302_s27]  ;;  %v456_v10 = vld [vmem:[%s4191_s12 + $0x108] sm:%s3302_s27] }
  0xa5   : > { %v454_v9 = vld [vmem:[%s4191_s12 + $0x84] sm:%s3302_s27]  ;;  %453 = vst [vmem:[%s4194_s10] sm:%s3302_s27] %v452_v8 }
  0xa6   : > { %455 = vst [vmem:[%s4194_s10 + $0x40] sm:%s3302_s27] %v454_v9  ;;  %v458_v11 = vld [vmem:[%s4191_s12 + $0x18c] sm:%s3302_s27] }
  0xa7   : > { %457 = vst [vmem:[%s4194_s10 + $0x80] sm:%s3302_s27] %v456_v10 }
  0xa8   : > { %459 = vst [vmem:[%s4194_s10 + $0xc0] sm:%s3302_s27] %v458_v11 }
  0xa9 PF: > { %p3303_p1 = scmp.ge.u32.totalorder %s4029_s22, 8 }
  0xaa   : > { %s3925_s18 = smov (!%p3303_p1), 1  }
  0xab   : > { %184 = sbr.rel (%p3303_p1) target bundleno = 181 (0xb5), region = 40  ;;  %s185_s25 = sshll.u32 (!%p3303_p1), %s3925_s18, %s4029_s22 }
  0xac   : > { %s3304_s24 = sadd.s32 (!%p3303_p1), 4294967295, %s185_s25 }
  0xb0   : > { %v195_v12 = vld [vmem:[%s4027_s13] sm:%s3304_s24]  ;;  %v199_v14 = vld [vmem:[%s4027_s13 + $0x108] sm:%s3304_s24] }
  0xb1   : > { %v197_v13 = vld [vmem:[%s4027_s13 + $0x84] sm:%s3304_s24]  ;;  %196 = vst [vmem:[%s4031_s23] sm:%s3304_s24] %v195_v12 }
  0xb2   : > { %198 = vst [vmem:[%s4031_s23 + $0x40] sm:%s3304_s24] %v197_v13  ;;  %v201_v15 = vld [vmem:[%s4027_s13 + $0x18c] sm:%s3304_s24] }
  0xb3   : > { %200 = vst [vmem:[%s4031_s23 + $0x80] sm:%s3304_s24] %v199_v14 }
  0xb4   : > { %202 = vst [vmem:[%s4031_s23 + $0xc0] sm:%s3304_s24] %v201_v15 }
  0xb5 PF: > { %463 = sbr.rel (!%p4007_p7) target bundleno = 189 (0xbd), region = 94  ;;  %s465_s12 = sand.u32 (%p4007_p7), 1, %s3846_s16  }
  0xb6   : > { %s3306_s10 = sshll.u32 (%p4007_p7), %s3858_s19, 6  ;;  %s3305_s22 = sshll.u32 (%p4007_p7), %s465_s12, 4 }
  0xb7   : > { %s3154_s8 = scalar_lea.vmem (%p4007_p7), %s7051_s3, %s3306_s10  ;;  %s467_s13 = scalar_lea.vmem (%p4007_p7), [#allocation3], %s3305_s22 }
  0xb8   : > { %v3307_v16 = vld [vmem:[%s3154_s8 + $0x40] sm:$0xf] (%p4007_p7)  ;;  %v3308_v17 = vld [vmem:[%s3154_s8 + $0xc4] sm:$0xf] (%p4007_p7)  ;;  %v3309_v18 = vld [vmem:[%s3154_s8 + $0x148] sm:$0xf] (%p4007_p7) }
  0xb9   : > { %489 = vst [vmem:[%s467_s13] sm:$0xf] (%p4007_p7), %v3307_v16  ;;  %v3310_v19 = vld [vmem:[%s3154_s8 + $0x1cc] sm:$0xf] (%p4007_p7) }
  0xba   : > { %491 = vst [vmem:[%s467_s13 + $0x4] sm:$0xf] %v3308_v17 }
  0xbb   : > { %493 = vst [vmem:[%s467_s13 + $0x8] sm:$0xf] %v3309_v18 }
  0xbc   : > { %495 = vst [vmem:[%s467_s13 + $0xc] sm:$0xf] %v3310_v19 }
  0xbd PF: > { %p3311_p7 = scmp.ge.s32.totalorder %s3858_s19, 1  ;;  %p526_p2 = scmp.lt.s32.totalorder %s3858_s19, 3 }
  0xbf   : > { %p527_p3 = pnand %p3311_p7, %p526_p2 }
  0xc1   : > { %530 = sbr.rel (%p527_p3) target bundleno = 1235 (0x4d3), region = 135 }
  0xc6   : > { %s533_s30 = sand.u32 1, %s3850_s17   ;;  %s3926_s20 = smov 127   ;;  %vm1117_vm0 = vcmask 965632   ;;  %vm1649_vm1 = vcmask 875520   ;;  %vm984_vm2 = vcmask 1031168   ;;  %vm1782_vm3 = vcmask 867328  }
  0xc7   : > { %s3312_s23 = sshll.u32 %s533_s30, 8  ;;  %s540_s14 = sand.u32 1, %s3842_s15   ;;  %vm851_vm4 = vcmask 1039360   ;;  %vm1516_vm5 = vcmask 883712   ;;  %vm1383_vm6 = vcmask 949248   ;;  %vm1250_vm7 = vcmask 957440  }
  0xc8   : > { %s4367_s2 = scalar_lea.vmem [#allocation2], %s3312_s23  ;;  %s3313_s11 = sshll.u32 %s540_s14, 4  ;;  %vm1909_vm8 = vcmask 261120  }
  0xc9   : > { %v3333_v20 = vld [vmem:[%s4367_s2 + $0x10] sm:$0xf]  ;;  %v3325_v22 = vld [vmem:[%s4367_s2 + $0x8] sm:$0xf]  ;;  %v3317_v25 = vld [vmem:[%s4367_s2] sm:$0xf] }
  0xca   : > { %v3531_v21 = vld [vmem:[%s4367_s2 + $0x4c] sm:$0xf0]  ;;  %v3530_v24 = vld [vmem:[%s4367_s2 + $0x44] sm:$0xf0]  ;;  %v3529_v26 = vld [vmem:[%s4367_s2 + $0x3c] sm:$0xf0] }
  0xcb   : > { %v4372_v23 = vor.u32 %v3531_v21, %v3333_v20  ;;  %v4377_v27 = vor.u32 %v3530_v24, %v3325_v22  ;;  %v4379_v28 = vor.u32 %v3529_v26, %v3317_v25  ;;  %v3523_v29 = vld [vmem:[%s4367_s2 + $0x14] sm:$0xf]  ;;  %v3522_v31 = vld [vmem:[%s4367_s2 + $0xc] sm:$0xf]  ;;  %v3521_v33 = vld [vmem:[%s4367_s2 + $0x4] sm:$0xf] }
  0xcc   : > { %v3335_v30 = vld [vmem:[%s4367_s2 + $0x50] sm:$0xf0]  ;;  %v3327_v32 = vld [vmem:[%s4367_s2 + $0x48] sm:$0xf0]  ;;  %v3319_v34 = vld [vmem:[%s4367_s2 + $0x40] sm:$0xf0] }
  0xcd   : > { %791 = vrot.lane.b32.xlu2 %v4372_v23, %s3926_s20  ;;  %787 = vrot.lane.b32.xlu1 %v4377_v27, %s3926_s20  ;;  %v4393_v35 = vor.u32 %v3523_v29, %v3335_v30  ;;  %v4395_v36 = vor.u32 %v3522_v31, %v3327_v32  ;;  %v4397_v37 = vor.u32 %v3521_v33, %v3319_v34  ;;  %v3349_v38 = vld [vmem:[%s4367_s2 + $0x20] sm:$0xf]  ;;  %v3524_v40 = vld [vmem:[%s4367_s2 + $0x1c] sm:$0xf]  ;;  %s4466_s15 = scalar_lea.vmem [#allocation3], %s3313_s11  ;;  %s3927_s29 = smov 126  }
  0xce   : > { %783 = vrot.lane.b32.xlu0 %v4379_v28, %s3926_s20  ;;  %v3533_v39 = vld [vmem:[%s4367_s2 + $0x5c] sm:$0xf0]  ;;  %v3343_v41 = vld [vmem:[%s4367_s2 + $0x58] sm:$0xf0]  ;;  %v3341_v42 = vld [vmem:[%s4367_s2 + $0x18] sm:$0xf] }
  0xcf   : > { %v3532_v43 = vld [vmem:[%s4367_s2 + $0x54] sm:$0xf0]  ;;  %v4411_v44 = vor.u32 %v3533_v39, %v3349_v38  ;;  %v4413_v45 = vor.u32 %v3524_v40, %v3343_v41  ;;  %v3526_v47 = vld [vmem:[%s4367_s2 + $0x2c] sm:$0xf]  ;;  %v3357_v49 = vld [vmem:[%s4367_s2 + $0x28] sm:$0xf] }
  0xd0   : > { %v4415_v46 = vor.u32 %v3532_v43, %v3341_v42  ;;  %v3359_v48 = vld [vmem:[%s4367_s2 + $0x68] sm:$0xf0]  ;;  %v3534_v50 = vld [vmem:[%s4367_s2 + $0x64] sm:$0xf0]  ;;  %v3525_v51 = vld [vmem:[%s4367_s2 + $0x24] sm:$0xf] }
  0xd1   : > { %v3351_v52 = vld [vmem:[%s4367_s2 + $0x60] sm:$0xf0]  ;;  %v4429_v53 = vor.u32 %v3526_v47, %v3359_v48  ;;  %v4431_v54 = vor.u32 %v3534_v50, %v3357_v49  ;;  %v3373_v56 = vld [vmem:[%s4367_s2 + $0x38] sm:$0xf]  ;;  %v3527_v58 = vld [vmem:[%s4367_s2 + $0x34] sm:$0xf] }
  0xd2   : > { %v4433_v55 = vor.u32 %v3525_v51, %v3351_v52  ;;  %v3536_v57 = vld [vmem:[%s4367_s2 + $0x74] sm:$0xf0]  ;;  %v3367_v59 = vld [vmem:[%s4367_s2 + $0x70] sm:$0xf0]  ;;  %v3365_v60 = vld [vmem:[%s4367_s2 + $0x30] sm:$0xf] }
  0xd3   : > { %7152 = vst [vmem:[#allocation7_spill] sm:$0xff] %v4429_v53  ;;  %v3535_v61 = vld [vmem:[%s4367_s2 + $0x6c] sm:$0xf0]  ;;  %v4447_v62 = vor.u32 %v3536_v57, %v3373_v56  ;;  %v4450_v63 = vor.u32 %v3527_v58, %v3367_v59  ;;  %v3381_v1 = vld [vmem:[%s4367_s2 + $0x80] sm:$0xf]  ;;  %s3928_s28 = smov 118  }
  0xd4   : > { %7153 = vst [vmem:[#allocation8_spill] sm:$0xff] %v4431_v54  ;;  %v4452_v0 = vor.u32 %v3535_v61, %v3365_v60  ;;  %v3545_v2 = vld [vmem:[%s4367_s2 + $0xbc] sm:$0xf0]  ;;  %v3528_v3 = vld [vmem:[%s4367_s2 + $0x3c] sm:$0xf]  ;;  %s3929_s26 = smov 107  }
  0xd5   : > { %793 = vrot.lane.b32.xlu2 %v4393_v35, %s3926_s20  ;;  %789 = vrot.lane.b32.xlu1 %v4395_v36, %s3926_s20  ;;  %7154 = vst [vmem:[#allocation9_spill] sm:$0xff] %v4447_v62  ;;  %v3375_v4 = vld [vmem:[%s4367_s2 + $0x78] sm:$0xf0]  ;;  %v4464_v5 = vor.u32 %v3545_v2, %v3381_v1  ;;  %v4469_v6 = vld [vmem:[%s4466_s15] sm:$0xff]  ;;  %s3930_s27 = smov 106   ;;  %s3931_s18 = smov 108  }
  0xd6   : > { %785 = vrot.lane.b32.xlu0 %v4397_v37, %s3926_s20  ;;  %7155 = vst [vmem:[#allocation10_spill] sm:$0xff] %v4450_v63  ;;  %v4471_v7 = vor.u32 %v3528_v3, %v3375_v4  ;;  %v3538_v8 = vld [vmem:[%s4367_s2 + $0x8c] sm:$0xf]  ;;  %v3389_v10 = vld [vmem:[%s4367_s2 + $0x88] sm:$0xf]  ;;  %s3932_s25 = smov 116  }
  0xd7   : > { %7156 = vst [vmem:[#allocation11_spill] sm:$0xff] %v4452_v0  ;;  %v3391_v9 = vld [vmem:[%s4367_s2 + $0xc8] sm:$0xf0]  ;;  %v3546_v11 = vld [vmem:[%s4367_s2 + $0xc4] sm:$0xf0]  ;;  %s3933_s24 = smov 117  }
  0xd8   : > { %7157 = vst [vmem:[#allocation12_spill] sm:$0xff] %v4471_v7  ;;  %v3537_v12 = vld [vmem:[%s4367_s2 + $0x84] sm:$0xf]  ;;  %v4485_v14 = vor.u32 %v3538_v8, %v3391_v9  ;;  %v4487_v15 = vor.u32 %v3546_v11, %v3389_v10  ;;  %v3405_v17 = vld [vmem:[%s4367_s2 + $0x98] sm:$0xf] }
  0xd9   : > { %v3383_v13 = vld [vmem:[%s4367_s2 + $0xc0] sm:$0xf0]  ;;  %v3548_v18 = vld [vmem:[%s4367_s2 + $0xd4] sm:$0xf0]  ;;  %v3539_v19 = vld [vmem:[%s4367_s2 + $0x94] sm:$0xf] }
  0xda   : > { %v4489_v16 = vor.u32 %v3537_v12, %v3383_v13  ;;  %v3399_v20 = vld [vmem:[%s4367_s2 + $0xd0] sm:$0xf0]  ;;  %v3397_v21 = vld [vmem:[%s4367_s2 + $0x90] sm:$0xf]  ;;  %v4503_v24 = vor.u32 %v3548_v18, %v3405_v17  ;;  %v3541_v29 = vld [vmem:[%s4367_s2 + $0xa4] sm:$0xf] }
  0xdb   : > { %v3547_v22 = vld [vmem:[%s4367_s2 + $0xcc] sm:$0xf0]  ;;  %v4505_v25 = vor.u32 %v3539_v19, %v3399_v20  ;;  %v3415_v30 = vld [vmem:[%s4367_s2 + $0xe0] sm:$0xf0]  ;;  %v3413_v31 = vld [vmem:[%s4367_s2 + $0xa0] sm:$0xf] }
  0xdc   : > { %v4507_v26 = vor.u32 %v3547_v22, %v3397_v21  ;;  %v3549_v32 = vld [vmem:[%s4367_s2 + $0xdc] sm:$0xf0]  ;;  %v3540_v33 = vld [vmem:[%s4367_s2 + $0x9c] sm:$0xf]  ;;  %v4521_v38 = vor.u32 %v3541_v29, %v3415_v30  ;;  %v3429_v41 = vld [vmem:[%s4367_s2 + $0xb0] sm:$0xf] }
  0xdd   : > { %799 = vrot.lane.b32.xlu2 %v4411_v44, %s3926_s20  ;;  %797 = vrot.lane.b32.xlu1 %v4413_v45, %s3926_s20  ;;  %v3407_v34 = vld [vmem:[%s4367_s2 + $0xd8] sm:$0xf0]  ;;  %v4523_v39 = vor.u32 %v3549_v32, %v3413_v31  ;;  %v3551_v42 = vld [vmem:[%s4367_s2 + $0xec] sm:$0xf0] }
  0xde   : > { %795 = vrot.lane.b32.xlu0 %v4415_v46, %s3926_s20  ;;  %v4525_v40 = vor.u32 %v3540_v33, %v3407_v34  ;;  %v3542_v43 = vld [vmem:[%s4367_s2 + $0xac] sm:$0xf]  ;;  %v3421_v48 = vld [vmem:[%s4367_s2 + $0xa8] sm:$0xf]  ;;  %v4539_v50 = vor.u32 %v3551_v42, %v3429_v41  ;;  %v3544_v56 = vld [vmem:[%s4367_s2 + $0xbc] sm:$0xf] }
  0xdf   : > { %v3423_v47 = vld [vmem:[%s4367_s2 + $0xe8] sm:$0xf0]  ;;  %v3550_v49 = vld [vmem:[%s4367_s2 + $0xe4] sm:$0xf0]  ;;  %v3439_v57 = vld [vmem:[%s4367_s2 + $0xf8] sm:$0xf0] }
  0xe0   : > { %7158 = vst [vmem:[#allocation13_spill] sm:$0xff] %v4539_v50  ;;  %v4541_v51 = vor.u32 %v3542_v43, %v3423_v47  ;;  %v4543_v52 = vor.u32 %v3550_v49, %v3421_v48  ;;  %v3437_v58 = vld [vmem:[%s4367_s2 + $0xb8] sm:$0xf]  ;;  %v3543_v60 = vld [vmem:[%s4367_s2 + $0xb4] sm:$0xf]  ;;  %v4557_v1 = vor.u32 %v3544_v56, %v3439_v57 }
  0xe1   : > { %v3552_v59 = vld [vmem:[%s4367_s2 + $0xf4] sm:$0xf0]  ;;  %v3431_v61 = vld [vmem:[%s4367_s2 + $0xf0] sm:$0xf0] }
  0xe2   : > { %7159 = vst [vmem:[#allocation14_spill] sm:$0xff] %v4541_v51  ;;  %v4559_v2 = vor.u32 %v3552_v59, %v3437_v58  ;;  %v4561_v3 = vor.u32 %v3543_v60, %v3431_v61  ;;  %v4570_v4 = vld [vmem:[%s4466_s15 + $0x8] sm:$0xff] }
  0xe3   : > { %7160 = vst [vmem:[#allocation15_spill] sm:$0xff] %v4557_v1 }
  0xe4   : > { %7161 = vst [vmem:[#allocation16_spill] sm:$0xff] %v4559_v2 }
  0xe5   : > { %805 = vrot.lane.b32.xlu2 %v4429_v53, %s3926_s20  ;;  %803 = vrot.lane.b32.xlu1 %v4431_v54, %s3926_s20  ;;  %7162 = vst [vmem:[#allocation17_spill] sm:$0xff] %v4561_v3 }
  0xe6   : > { %801 = vrot.lane.b32.xlu0 %v4433_v55, %s3926_s20 }
  0xed   : > { %811 = vrot.lane.b32.xlu2 %v4447_v62, %s3926_s20  ;;  %809 = vrot.lane.b32.xlu1 %v4450_v63, %s3926_s20 }
  0xee   : > { %807 = vrot.lane.b32.xlu0 %v4452_v0, %s3926_s20 }
  0xf5   : > { %817 = vrot.lane.b32.xlu2 %v4464_v5, %s3926_s20  ;;  %815 = vrot.lane.b32.xlu1 %v4469_v6, %s3926_s20 }
  0xf6   : > { %813 = vrot.lane.b32.xlu0 %v4471_v7, %s3926_s20 }
  0xfd   : > { %823 = vrot.lane.b32.xlu2 %v4485_v14, %s3926_s20  ;;  %821 = vrot.lane.b32.xlu1 %v4487_v15, %s3926_s20 }
  0xfe   : > { %819 = vrot.lane.b32.xlu0 %v4489_v16, %s3926_s20 }
 0x105   : > { %829 = vrot.lane.b32.xlu2 %v4503_v24, %s3926_s20  ;;  %827 = vrot.lane.b32.xlu1 %v4505_v25, %s3926_s20 }
 0x106   : > { %825 = vrot.lane.b32.xlu0 %v4507_v26, %s3926_s20 }
 0x10d   : > { %835 = vrot.lane.b32.xlu2 %v4521_v38, %s3926_s20  ;;  %833 = vrot.lane.b32.xlu1 %v4523_v39, %s3926_s20 }
 0x10e   : > { %831 = vrot.lane.b32.xlu0 %v4525_v40, %s3926_s20 }
 0x115   : > { %841 = vrot.lane.b32.xlu2 %v4539_v50, %s3926_s20  ;;  %839 = vrot.lane.b32.xlu1 %v4541_v51, %s3926_s20 }
 0x116   : > { %837 = vrot.lane.b32.xlu0 %v4543_v52, %s3926_s20 }
 0x11d   : > { %847 = vrot.lane.b32.xlu2 %v4557_v1, %s3926_s20  ;;  %845 = vrot.lane.b32.xlu1 %v4559_v2, %s3926_s20 }
 0x11e   : > { %843 = vrot.lane.b32.xlu0 %v4561_v3, %s3926_s20 }
 0x125   : > { %918 = vrot.lane.b32.xlu2 %v4397_v37, %s3927_s29  ;;  %916 = vrot.lane.b32.xlu1 %v4379_v28, %s3927_s29 }
 0x126   : > { %849 = vrot.lane.b32.xlu0 %v4570_v4, %s3926_s20 }
 0x127   : > { %v4578_v8 = vpop.permute.xlu2 %791 }
 0x12d   : > { %924 = vrot.lane.b32.xlu2 %v4372_v23, %s3927_s29  ;;  %922 = vrot.lane.b32.xlu1 %v4395_v36, %s3927_s29 }
 0x12e   : > { %920 = vrot.lane.b32.xlu0 %v4377_v27, %s3927_s29 }
 0x12f   : > { %v4586_v9 = vpop.permute.xlu2 %793 }
 0x135   : > { %930 = vrot.lane.b32.xlu2 %v4413_v45, %s3927_s29  ;;  %928 = vrot.lane.b32.xlu1 %v4415_v46, %s3927_s29 }
 0x136   : > { %926 = vrot.lane.b32.xlu0 %v4393_v35, %s3927_s29 }
 0x137   : > { %v4594_v10 = vpop.permute.xlu2 %799 }
 0x138   : > { %7163 = vst [vmem:[#allocation18_spill] sm:$0xff] %v4594_v10 }
 0x13d   : > { %936 = vrot.lane.b32.xlu2 %v4431_v54, %s3927_s29  ;;  %934 = vrot.lane.b32.xlu1 %v4433_v55, %s3927_s29 }
 0x13e   : > { %932 = vrot.lane.b32.xlu0 %v4411_v44, %s3927_s29 }
 0x13f   : > { %v4602_v11 = vpop.permute.xlu2 %805  ;;  %v4604_v12 = vpop.permute.xlu1 %787 }
 0x140   : > { %7164 = vst [vmem:[#allocation19_spill] sm:$0xff] %v4602_v11  ;;  %v4606_v13 = vpop.permute.xlu0 %783 }
 0x145   : > { %942 = vrot.lane.b32.xlu2 %v4450_v63, %s3927_s29  ;;  %940 = vrot.lane.b32.xlu1 %v4452_v0, %s3927_s29 }
 0x146   : > { %938 = vrot.lane.b32.xlu0 %v4429_v53, %s3927_s29 }
 0x147   : > { %v4614_v17 = vpop.permute.xlu2 %811  ;;  %v4616_v18 = vpop.permute.xlu1 %789 }
 0x148   : > { %7165 = vst [vmem:[#allocation20_spill] sm:$0xff] %v4614_v17  ;;  %v4618_v19 = vpop.permute.xlu0 %785 }
 0x14d   : > { %948 = vrot.lane.b32.xlu2 %v4469_v6, %s3927_s29  ;;  %946 = vrot.lane.b32.xlu1 %v4471_v7, %s3927_s29 }
 0x14e   : > { %944 = vrot.lane.b32.xlu0 %v4447_v62, %s3927_s29 }
 0x14f   : > { %v4626_v20 = vpop.permute.xlu2 %817  ;;  %v4628_v21 = vpop.permute.xlu1 %797 }
 0x150   : > { %7166 = vst [vmem:[#allocation21_spill] sm:$0xff] %v4628_v21  ;;  %v4630_v22 = vpop.permute.xlu0 %795 }
 0x151   : > { %7167 = vst [vmem:[#allocation22_spill] sm:$0xff] %v4630_v22 }
 0x155   : > { %954 = vrot.lane.b32.xlu2 %v4487_v15, %s3927_s29  ;;  %952 = vrot.lane.b32.xlu1 %v4489_v16, %s3927_s29 }
 0x156   : > { %950 = vrot.lane.b32.xlu0 %v4464_v5, %s3927_s29 }
 0x157   : > { %v4638_v29 = vpop.permute.xlu2 %823  ;;  %v4640_v30 = vpop.permute.xlu1 %803 }
 0x158   : > { %7168 = vst [vmem:[#allocation23_spill] sm:$0xff] %v4640_v30  ;;  %v4642_v31 = vpop.permute.xlu0 %801 }
 0x159   : > { %7169 = vst [vmem:[#allocation24_spill] sm:$0xff] %v4642_v31 }
 0x15d   : > { %960 = vrot.lane.b32.xlu2 %v4505_v25, %s3927_s29  ;;  %958 = vrot.lane.b32.xlu1 %v4507_v26, %s3927_s29 }
 0x15e   : > { %956 = vrot.lane.b32.xlu0 %v4485_v14, %s3927_s29 }
 0x15f   : > { %v4650_v32 = vpop.permute.xlu2 %829  ;;  %v4652_v33 = vpop.permute.xlu1 %809 }
 0x160   : > { %7170 = vst [vmem:[#allocation25_spill] sm:$0xff] %v4650_v32  ;;  %v4654_v34 = vpop.permute.xlu0 %807 }
 0x161   : > { %7171 = vst [vmem:[#allocation26_spill] sm:$0xff] %v4652_v33 }
 0x162   : > { %7172 = vst [vmem:[#allocation27_spill] sm:$0xff] %v4654_v34 }
 0x165   : > { %966 = vrot.lane.b32.xlu2 %v4523_v39, %s3927_s29  ;;  %964 = vrot.lane.b32.xlu1 %v4525_v40, %s3927_s29 }
 0x166   : > { %962 = vrot.lane.b32.xlu0 %v4503_v24, %s3927_s29 }
 0x167   : > { %v4662_v41 = vpop.permute.xlu2 %835  ;;  %v4664_v42 = vpop.permute.xlu1 %815 }
 0x168   : > { %7173 = vst [vmem:[#allocation28_spill] sm:$0xff] %v4662_v41  ;;  %v4666_v43 = vpop.permute.xlu0 %813 }
 0x169   : > { %7174 = vst [vmem:[#allocation29_spill] sm:$0xff] %v4664_v42 }
 0x16a   : > { %7175 = vst [vmem:[#allocation30_spill] sm:$0xff] %v4666_v43 }
 0x16d   : > { %972 = vrot.lane.b32.xlu2 %v4541_v51, %s3927_s29  ;;  %970 = vrot.lane.b32.xlu1 %v4543_v52, %s3927_s29 }
 0x16e   : > { %968 = vrot.lane.b32.xlu0 %v4521_v38, %s3927_s29 }
 0x16f   : > { %v4674_v47 = vpop.permute.xlu2 %841  ;;  %v4676_v48 = vpop.permute.xlu1 %821 }
 0x170   : > { %7176 = vst [vmem:[#allocation31_spill] sm:$0xff] %v4674_v47  ;;  %v4678_v49 = vpop.permute.xlu0 %819 }
 0x175   : > { %978 = vrot.lane.b32.xlu2 %v4559_v2, %s3927_s29  ;;  %976 = vrot.lane.b32.xlu1 %v4561_v3, %s3927_s29 }
 0x176   : > { %974 = vrot.lane.b32.xlu0 %v4539_v50, %s3927_s29 }
 0x177   : > { %v4686_v56 = vpop.permute.xlu2 %847  ;;  %v4688_v57 = vpop.permute.xlu1 %827 }
 0x178   : > { %7177 = vst [vmem:[#allocation32_spill] sm:$0xff] %v4686_v56  ;;  %v4690_v58 = vpop.permute.xlu0 %825 }
 0x17d   : > { %1049 = vrot.lane.b32.xlu2 %v4379_v28, %s3928_s28  ;;  %982 = vrot.lane.b32.xlu1 %v4570_v4, %s3927_s29 }
 0x17e   : > { %980 = vrot.lane.b32.xlu0 %v4557_v1, %s3927_s29  ;;  %s6546_s29 = sshll.u32 %s533_s30, 9  ;;  %s7445_s30 = sadd.s32 (%p4017_p8), 4294967295, %s3858_s19  }
 0x17f   : > { %v4698_v59 = vpop.permute.xlu2 %918  ;;  %v4700_v60 = vpop.permute.xlu1 %833  ;;  %s6579_s17 = scalar_lea.vmem [#allocation4], %s6546_s29  ;;  %s3561_s12 = sshll.u32 (%p4017_p8), %s7445_s30, 7 }
 0x180   : > { %7178 = vst [vmem:[#allocation33_spill] sm:$0xff] %v4700_v60  ;;  %v4702_v61 = vpop.permute.xlu0 %831  ;;  %s6904_s6 = scalar_lea.vmem (%p4017_p8), %s7052_s4, %s3561_s12 }
 0x181   : > { %7179 = vst [vmem:[#allocation34_spill] sm:$0xff] %v4702_v61 }
 0x185   : > { %1055 = vrot.lane.b32.xlu2 %v4395_v36, %s3928_s28  ;;  %1053 = vrot.lane.b32.xlu1 %v4377_v27, %s3928_s28 }
 0x186   : > { %1051 = vrot.lane.b32.xlu0 %v4397_v37, %s3928_s28 }
 0x187   : > { %v4710_v42 = vpop.permute.xlu2 %924  ;;  %v4712_v4 = vpop.permute.xlu1 %839 }
 0x188   : > { %7180 = vst [vmem:[#allocation35_spill] sm:$0xff] %v4712_v4  ;;  %v4714_v43 = vpop.permute.xlu0 %837 }
 0x189   : > { %7181 = vst [vmem:[#allocation36_spill] sm:$0xff] %v4714_v43 }
 0x18d   : > { %1061 = vrot.lane.b32.xlu2 %v4415_v46, %s3928_s28  ;;  %1059 = vrot.lane.b32.xlu1 %v4393_v35, %s3928_s28 }
 0x18e   : > { %1057 = vrot.lane.b32.xlu0 %v4372_v23, %s3928_s28 }
 0x18f   : > { %v4722_v56 = vpop.permute.xlu2 %930  ;;  %v4724_v17 = vpop.permute.xlu1 %845 }
 0x190   : > { %7182 = vst [vmem:[#allocation37_spill] sm:$0xff] %v4722_v56  ;;  %v4726_v33 = vpop.permute.xlu0 %843 }
 0x191   : > { %7183 = vst [vmem:[#allocation38_spill] sm:$0xff] %v4724_v17 }
 0x192   : > { %7184 = vst [vmem:[#allocation39_spill] sm:$0xff] %v4726_v33 }
 0x195   : > { %1067 = vrot.lane.b32.xlu2 %v4433_v55, %s3928_s28  ;;  %1065 = vrot.lane.b32.xlu1 %v4411_v44, %s3928_s28 }
 0x196   : > { %1063 = vrot.lane.b32.xlu0 %v4413_v45, %s3928_s28 }
 0x197   : > { %v4734_v34 = vpop.permute.xlu2 %936  ;;  %v4736_v47 = vpop.permute.xlu1 %916 }
 0x198   : > { %7185 = vst [vmem:[#allocation40_spill] sm:$0xff] %v4734_v34  ;;  %v4738_v11 = vpop.permute.xlu0 %849 }
 0x199   : > { %7186 = vst [vmem:[#allocation41_spill] sm:$0xff] %v4738_v11 }
 0x19d   : > { %1073 = vrot.lane.b32.xlu2 %v4452_v0, %s3928_s28  ;;  %1071 = vrot.lane.b32.xlu1 %v4429_v53, %s3928_s28 }
 0x19e   : > { %1069 = vrot.lane.b32.xlu0 %v4431_v54, %s3928_s28 }
 0x19f   : > { %v4746_v17 = vpop.permute.xlu2 %942  ;;  %v4748_v33 = vpop.permute.xlu1 %922 }
 0x1a0   : > { %7187 = vst [vmem:[#allocation42_spill] sm:$0xff] %v4746_v17  ;;  %v4750_v4 = vpop.permute.xlu0 %920 }
 0x1a5   : > { %1079 = vrot.lane.b32.xlu2 %v4471_v7, %s3928_s28  ;;  %1077 = vrot.lane.b32.xlu1 %v4447_v62, %s3928_s28 }
 0x1a6   : > { %1075 = vrot.lane.b32.xlu0 %v4450_v63, %s3928_s28 }
 0x1a7   : > { %v4758_v11 = vpop.permute.xlu2 %948  ;;  %v4760_v1 = vpop.permute.xlu1 %928 }
 0x1a8   : > { %7188 = vst [vmem:[#allocation43_spill] sm:$0xff] %v4758_v11  ;;  %v4762_v30 = vpop.permute.xlu0 %926 }
 0x1a9   : > { %7189 = vst [vmem:[#allocation44_spill] sm:$0xff] %v4760_v1 }
 0x1ad   : > { %1085 = vrot.lane.b32.xlu2 %v4489_v16, %s3928_s28  ;;  %1083 = vrot.lane.b32.xlu1 %v4464_v5, %s3928_s28 }
 0x1ae   : > { %1081 = vrot.lane.b32.xlu0 %v4469_v6, %s3928_s28 }
 0x1af   : > { %v4770_v17 = vpop.permute.xlu2 %954  ;;  %v4772_v7 = vpop.permute.xlu1 %934 }
 0x1b0   : > { %7190 = vst [vmem:[#allocation45_spill] sm:$0xff] %v4772_v7  ;;  %v4774_v43 = vpop.permute.xlu0 %932 }
 0x1b1   : > { %7191 = vst [vmem:[#allocation46_spill] sm:$0xff] %v4774_v43 }
 0x1b5   : > { %1617 = vrot.lane.b32.xlu2 %v4489_v16, %s3929_s26  ;;  %1615 = vrot.lane.b32.xlu1 %v4464_v5, %s3929_s26 }
 0x1b6   : > { %1087 = vrot.lane.b32.xlu0 %v4487_v15, %s3928_s28 }
 0x1b7   : > { %v4782_v11 = vpop.permute.xlu2 %960  ;;  %v4784_v34 = vpop.permute.xlu1 %940 }
 0x1b8   : > { %7192 = vst [vmem:[#allocation47_spill] sm:$0xff] %v4784_v34  ;;  %v4786_v6 = vpop.permute.xlu0 %938 }
 0x1b9   : > { %7193 = vst [vmem:[#allocation48_spill] sm:$0xff] %v4786_v6 }
 0x1bd   : > { %1581 = vrot.lane.b32.xlu2 %v4379_v28, %s3929_s26  ;;  %1750 = vrot.lane.b32.xlu1 %v4489_v16, %s3930_s27 }
 0x1be   : > { %1748 = vrot.lane.b32.xlu0 %v4464_v5, %s3930_s27 }
 0x1bf   : > { %v4794_v63 = vpop.permute.xlu2 %966  ;;  %v4796_v62 = vpop.permute.xlu1 %946 }
 0x1c0   : > { %7194 = vst [vmem:[#allocation49_spill] sm:$0xff] %v4794_v63  ;;  %v4798_v2 = vpop.permute.xlu0 %944 }
 0x1c1   : > { %7195 = vst [vmem:[#allocation50_spill] sm:$0xff] %v4796_v62 }
 0x1c2   : > { %7196 = vst [vmem:[#allocation51_spill] sm:$0xff] %v4798_v2 }
 0x1c5   : > { %1716 = vrot.lane.b32.xlu2 %v4397_v37, %s3930_s27  ;;  %1714 = vrot.lane.b32.xlu1 %v4379_v28, %s3930_s27 }
 0x1c6   : > { %1583 = vrot.lane.b32.xlu0 %v4397_v37, %s3929_s26 }
 0x1c7   : > { %v4806_v34 = vpop.permute.xlu2 %972  ;;  %v4808_v6 = vpop.permute.xlu1 %952 }
 0x1c8   : > { %7197 = vst [vmem:[#allocation52_spill] sm:$0xff] %v4806_v34  ;;  %v4810_v31 = vpop.permute.xlu0 %950 }
 0x1c9   : > { %v1001_v1 = vsel %vm984_vm2, %v4810_v31, %v4808_v6 }
 0x1cd   : > { %1619 = vrot.lane.b32.xlu2 %v4487_v15, %s3929_s26  ;;  %1484 = vrot.lane.b32.xlu1 %v4489_v16, %s3931_s18 }
 0x1ce   : > { %1482 = vrot.lane.b32.xlu0 %v4464_v5, %s3931_s18 }
 0x1cf   : > { %v4818_v62 = vpop.permute.xlu2 %978  ;;  %v4820_v2 = vpop.permute.xlu1 %958 }
 0x1d0   : > { %7198 = vst [vmem:[#allocation53_spill] sm:$0xff] %v4818_v62  ;;  %v4822_v10 = vpop.permute.xlu0 %956 }
 0x1d5   : > { %1585 = vrot.lane.b32.xlu2 %v4377_v27, %s3929_s26  ;;  %1450 = vrot.lane.b32.xlu1 %v4397_v37, %s3931_s18 }
 0x1d6   : > { %1448 = vrot.lane.b32.xlu0 %v4379_v28, %s3931_s18 }
 0x1d7   : > { %v4830_v34 = vpop.permute.xlu2 %1049  ;;  %v4832_v41 = vpop.permute.xlu1 %964 }
 0x1d8   : > { %7199 = vst [vmem:[#allocation54_spill] sm:$0xff] %v4832_v41  ;;  %v4834_v60 = vpop.permute.xlu0 %962 }
 0x1dd   : > { %1486 = vrot.lane.b32.xlu2 %v4487_v15, %s3931_s18  ;;  %1351 = vrot.lane.b32.xlu1 %v4489_v16, %s3932_s25 }
 0x1de   : > { %1349 = vrot.lane.b32.xlu0 %v4464_v5, %s3932_s25 }
 0x1df   : > { %v4842_v62 = vpop.permute.xlu2 %1055  ;;  %v4844_v7 = vpop.permute.xlu1 %970 }
 0x1e0   : > { %7200 = vst [vmem:[#allocation55_spill] sm:$0xff] %v4844_v7  ;;  %v4846_v43 = vpop.permute.xlu0 %968 }
 0x1e1   : > { %7201 = vst [vmem:[#allocation56_spill] sm:$0xff] %v4846_v43 }
 0x1e5   : > { %1452 = vrot.lane.b32.xlu2 %v4377_v27, %s3931_s18  ;;  %1317 = vrot.lane.b32.xlu1 %v4397_v37, %s3932_s25 }
 0x1e6   : > { %1315 = vrot.lane.b32.xlu0 %v4379_v28, %s3932_s25 }
 0x1e7   : > { %v4854_v63 = vpop.permute.xlu2 %1061  ;;  %v4856_v3 = vpop.permute.xlu1 %976 }
 0x1e8   : > { %7202 = vst [vmem:[#allocation57_spill] sm:$0xff] %v4856_v3  ;;  %v4858_v0 = vpop.permute.xlu0 %974 }
 0x1e9   : > { %7203 = vst [vmem:[#allocation58_spill] sm:$0xff] %v4858_v0 }
 0x1ed   : > { %1353 = vrot.lane.b32.xlu2 %v4487_v15, %s3932_s25  ;;  %1218 = vrot.lane.b32.xlu1 %v4489_v16, %s3933_s24 }
 0x1ee   : > { %1216 = vrot.lane.b32.xlu0 %v4464_v5, %s3933_s24 }
 0x1ef   : > { %v4866_v7 = vpop.permute.xlu2 %1067  ;;  %v4868_v43 = vpop.permute.xlu1 %982 }
 0x1f0   : > { %7204 = vst [vmem:[#allocation59_spill] sm:$0xff] %v4866_v7  ;;  %v4870_v50 = vpop.permute.xlu0 %980 }
 0x1f1   : > { %7205 = vst [vmem:[#allocation60_spill] sm:$0xff] %v4868_v43 }
 0x1f2   : > { %7206 = vst [vmem:[#allocation61_spill] sm:$0xff] %v4870_v50 }
 0x1f5   : > { %1319 = vrot.lane.b32.xlu2 %v4377_v27, %s3932_s25  ;;  %1184 = vrot.lane.b32.xlu1 %v4397_v37, %s3933_s24 }
 0x1f6   : > { %1182 = vrot.lane.b32.xlu0 %v4379_v28, %s3933_s24 }
 0x1f7   : > { %v4878_v3 = vpop.permute.xlu2 %1073  ;;  %v4880_v0 = vpop.permute.xlu1 %1053 }
 0x1f8   : > { %7207 = vst [vmem:[#allocation62_spill] sm:$0xff] %v4878_v3  ;;  %v1052_v21 = vpop.permute.xlu0 %1051 }
 0x1fd   : > { %1220 = vrot.lane.b32.xlu2 %v4487_v15, %s3933_s24  ;;  %1089 = vrot.lane.b32.xlu1 %v4485_v14, %s3928_s28 }
 0x1fe   : > { %1621 = vrot.lane.b32.xlu0 %v4485_v14, %s3929_s26 }
 0x1ff   : > { %v4888_v43 = vpop.permute.xlu2 %1079  ;;  %v4890_v50 = vpop.permute.xlu1 %1059 }
 0x200   : > { %7208 = vst [vmem:[#allocation63_spill] sm:$0xff] %v4888_v43  ;;  %v4892_v7 = vpop.permute.xlu0 %1057 }
 0x205   : > { %1488 = vrot.lane.b32.xlu2 %v4485_v14, %s3931_s18  ;;  %1186 = vrot.lane.b32.xlu1 %v4377_v27, %s3933_s24 }
 0x206   : > { %1587 = vrot.lane.b32.xlu0 %v4395_v36, %s3929_s26 }
 0x207   : > { %v1086_v3 = vpop.permute.xlu2 %1085  ;;  %v4900_v61 = vpop.permute.xlu1 %1065 }
 0x208   : > { %7209 = vst [vmem:[#allocation64_spill] sm:$0xff] %v4900_v61  ;;  %v4902_v56 = vpop.permute.xlu0 %1063 }
 0x209   : > { %7210 = vst [vmem:[#allocation65_spill] sm:$0xff] %v4902_v56 }
 0x20d   : > { %1321 = vrot.lane.b32.xlu2 %v4395_v36, %s3932_s25  ;;  %1355 = vrot.lane.b32.xlu1 %v4485_v14, %s3932_s25 }
 0x20e   : > { %1454 = vrot.lane.b32.xlu0 %v4395_v36, %s3931_s18 }
 0x20f   : > { %v4910_v43 = vpop.permute.xlu2 %1617  ;;  %v4912_v53 = vpop.permute.xlu1 %1071 }
 0x210   : > { %7211 = vst [vmem:[#allocation66_spill] sm:$0xff] %v4912_v53  ;;  %v4914_v41 = vpop.permute.xlu0 %1069 }
 0x211   : > { %7212 = vst [vmem:[#allocation67_spill] sm:$0xff] %v4914_v41 }
 0x215   : > { %1623 = vrot.lane.b32.xlu2 %v4507_v26, %s3929_s26  ;;  %1188 = vrot.lane.b32.xlu1 %v4395_v36, %s3933_s24 }
 0x216   : > { %1222 = vrot.lane.b32.xlu0 %v4485_v14, %s3933_s24 }
 0x217   : > { %v1582_v61 = vpop.permute.xlu2 %1581  ;;  %v4922_v56 = vpop.permute.xlu1 %1077 }
 0x218   : > { %7213 = vst [vmem:[#allocation68_spill] sm:$0xff] %v4922_v56  ;;  %v4924_v51 = vpop.permute.xlu0 %1075  ;;  %v1118_v56 = vsel %vm1117_vm0, %v4830_v34, %v1052_v21 }
 0x219   : > { %7214 = vst [vmem:[#allocation69_spill] sm:$0xff] %v4924_v51 }
 0x21d   : > { %1589 = vrot.lane.b32.xlu2 %v4372_v23, %s3929_s26  ;;  %1754 = vrot.lane.b32.xlu1 %v4485_v14, %s3930_s27 }
 0x21e   : > { %1752 = vrot.lane.b32.xlu0 %v4487_v15, %s3930_s27 }
 0x21f   : > { %v4932_v53 = vpop.permute.xlu2 %1716  ;;  %v1084_v41 = vpop.permute.xlu1 %1083 }
 0x220   : > { %v4934_v22 = vpop.permute.xlu0 %1081  ;;  %v1134_v54 = vsel %vm1117_vm0, %v1084_v41, %v1086_v3 }
 0x221   : > { %7215 = vst [vmem:[#allocation70_spill] sm:$0xff] %v4934_v22  ;;  %1916 = vmatpush.bf16.msra.mxu0 %v1134_v54 }
 0x225   : > { %1091 = vrot.lane.b32.xlu2 %v4507_v26, %s3928_s28  ;;  %1720 = vrot.lane.b32.xlu1 %v4395_v36, %s3930_s27 }
 0x226   : > { %1718 = vrot.lane.b32.xlu0 %v4377_v27, %s3930_s27  ;;  %1917 = vmatpush.bf16.msra.mxu0 %v1118_v56 }
 0x227   : > { %v4945_v51 = vpop.permute.xlu2 %1619  ;;  %v1616_v22 = vpop.permute.xlu1 %1615 }
 0x228   : > { %v4947_v32 = vpop.permute.xlu0 %1087  ;;  %v1666_v54 = vsel %vm1649_vm1, %v1616_v22, %v4910_v43  ;;  %v1119_v22 = vsel %vm1117_vm0, %v1052_v21, %v4880_v0  ;;  %v1002_v21 = vsel %vm984_vm2, %v4808_v6, %v4770_v17 }
 0x229   : > { %v1135_v41 = vsel %vm1117_vm0, %v1086_v3, %v4947_v32  ;;  %1935 = vmatpush.bf16.msra.mxu1 %v1666_v54  ;;  %v985_v3 = vsel %vm984_vm2, %v4736_v47, %v4698_v59  ;;  %v868_v54 = vsel %vm851_vm4, %v4626_v20, %v4678_v49  ;;  %v852_v20 = vsel %vm851_vm4, %v4606_v13, %v4618_v19 }
 0x22a   : > { %1973 = vmatpush.bf16.msra.mxu3 %v1135_v41  ;;  %1918 = vmatpush.bf16.msra.mxu0 %v1001_v1  ;;  %v986_v47 = vsel %vm984_vm2, %v4698_v59, %v4750_v4  ;;  %v869_v13 = vsel %vm851_vm4, %v4678_v49, %v4676_v48  ;;  %v1667_v59 = vsel %vm1649_vm1, %v4910_v43, %v4945_v51 }
 0x22b   : > { %v853_v49 = vsel %vm851_vm4, %v4618_v19, %v4604_v12 }
 0x22d   : > { %1456 = vrot.lane.b32.xlu2 %v4372_v23, %s3931_s18  ;;  %1490 = vrot.lane.b32.xlu1 %v4507_v26, %s3931_s18 }
 0x22e   : > { %1093 = vrot.lane.b32.xlu0 %v4505_v25, %s3928_s28  ;;  %1919 = vmatpush.bf16.msra.mxu0 %v985_v3 }
 0x22f   : > { %1974 = vmatpush.bf16.msra.mxu3 %v1119_v22  ;;  %v4967_v1 = vpop.permute.xlu2 %1585  ;;  %v4969_v31 = vpop.permute.xlu1 %1750 }
 0x230   : > { %v1749_v34 = vpop.permute.xlu0 %1748 }
 0x231   : > { %v1799_v56 = vsel %vm1782_vm3, %v1749_v34, %v4969_v31 }
 0x232   : > { %1960 = vmatpush.bf16.msra.mxu2 %v1799_v56  ;;  %1920 = vmatpush.bf16.msra.mxu0 %v868_v54 }
 0x233   : > { %1975 = vmatpush.bf16.msra.mxu3 %v1002_v21 }
 0x235   : > { %1756 = vrot.lane.b32.xlu2 %v4507_v26, %s3930_s27  ;;  %1323 = vrot.lane.b32.xlu1 %v4372_v23, %s3932_s25 }
 0x236   : > { %1357 = vrot.lane.b32.xlu0 %v4507_v26, %s3932_s25  ;;  %1921 = vmatpush.bf16.msra.mxu0 %v852_v20 }
 0x237   : > { %1976 = vmatpush.bf16.msra.mxu3 %v986_v47  ;;  %v4991_v6 = vpop.permute.xlu2 %1486  ;;  %v1715_v41 = vpop.permute.xlu1 %1714 }
 0x238   : > { %v1584_v3 = vpop.permute.xlu0 %1583  ;;  %v1783_v22 = vsel %vm1782_vm3, %v1715_v41, %v4932_v53 }
 0x239   : > { %v1650_v34 = vsel %vm1649_vm1, %v1582_v61, %v1584_v3  ;;  %1961 = vmatpush.bf16.msra.mxu2 %v1783_v22  ;;  %v1651_v43 = vsel %vm1649_vm1, %v1584_v3, %v4967_v1 }
 0x23a   : > { %1936 = vmatpush.bf16.msra.mxu1 %v1650_v34  ;;  %1922 = vmatpush.bf16.msra.mxu0 %v4464_v5 }
 0x23b   : > { %1977 = vmatpush.bf16.msra.mxu3 %v869_v13 }
 0x23d   : > { %1992 = vmatpush.bf16.msrb.mxu2 %v1667_v59  ;;  %1095 = vrot.lane.b32.xlu2 %v4503_v24, %s3928_s28 }
 0x23e   : > { %1722 = vrot.lane.b32.xlu1 %v4372_v23, %s3930_s27  ;;  %1224 = vrot.lane.b32.xlu0 %v4507_v26, %s3933_s24 }
 0x23f   : > { %1978 = vmatpush.bf16.msra.mxu3 %v853_v49  ;;  %v5014_v5 = vpop.permute.xlu2 %1452  ;;  %v1485_v61 = vpop.permute.xlu1 %1484  ;;  %1923 = vmatpush.bf16.msra.mxu0 %v4379_v28 }
 0x240   : > { %v1483_v56 = vpop.permute.xlu0 %1482  ;;  %v1534_v21 = vsel %vm1516_vm5, %v1485_v61, %v4991_v6 }
 0x241   : > { %1993 = vmatpush.bf16.msrb.mxu2 %v1651_v43  ;;  %v1533_v54 = vsel %vm1516_vm5, %v1483_v56, %v1485_v61  ;;  %v3461_v56 = vld [vmem:[%s7048_s0 + $0x8] sm:$0xf] }
 0x242   : > { %1937 = vmatpush.bf16.msra.mxu1 %v1533_v54  ;;  %v3557_v54 = vld [vmem:[%s7048_s0 + $0x10] sm:$0xf0] }
 0x243   : > { %1979 = vmatpush.bf16.msra.mxu3 %v4489_v16 }
 0x245   : > { %1994 = vmatpush.bf16.msrb.mxu2 %v1534_v21  ;;  %1627 = vrot.lane.b32.xlu2 %v4503_v24, %s3929_s26  ;;  %v5067_v21 = vor.u32 %v3557_v54, %v3461_v56  ;;  %v3560_v54 = vld [vmem:[%s7048_s0 + $0x28] sm:$0xf0] }
 0x246   : > { %1625 = vrot.lane.b32.xlu1 %v4505_v25, %s3929_s26  ;;  %1190 = vrot.lane.b32.xlu0 %v4372_v23, %s3933_s24 }
 0x247   : > { %v5027_v19 = vpop.permute.xlu2 %1353  ;;  %1980 = vmatpush.bf16.msra.mxu3 %v4397_v37  ;;  %v1451_v28 = vpop.permute.xlu1 %1450  ;;  %3475 = vmatmul.msk.bf16.vlgmr.msra.gmra.mxu2 %vm1909_vm8, %v5067_v21 }
 0x248   : > { %v1449_v20 = vpop.permute.xlu0 %1448  ;;  %v1518_v16 = vsel %vm1516_vm5, %v1451_v28, %v5014_v5 }
 0x249   : > { %v1517_v47 = vsel %vm1516_vm5, %v1449_v20, %v1451_v28  ;;  %1995 = vmatpush.bf16.msrb.mxu2 %v1518_v16 }
 0x24a   : > { %1938 = vmatpush.bf16.msra.mxu1 %v1517_v47 }
 0x24d   : > { %1492 = vrot.lane.b32.xlu2 %v4505_v25, %s3931_s18 }
 0x24e   : > { %1593 = vrot.lane.b32.xlu1 %v4415_v46, %s3929_s26  ;;  %1591 = vrot.lane.b32.xlu0 %v4393_v35, %s3929_s26 }
 0x24f   : > { %v5039_v37 = vpop.permute.xlu2 %1319  ;;  %v1352_v41 = vpop.permute.xlu1 %1351 }
 0x250   : > { %v1350_v3 = vpop.permute.xlu0 %1349  ;;  %v1401_v34 = vsel %vm1383_vm6, %v1352_v41, %v5027_v19 }
 0x251   : > { %v1400_v22 = vsel %vm1383_vm6, %v1350_v3, %v1352_v41  ;;  %1996 = vmatpush.bf16.msrb.mxu2 %v1401_v34 }
 0x252   : > { %1939 = vmatpush.bf16.msra.mxu1 %v1400_v22 }
 0x255   : > { %1460 = vrot.lane.b32.xlu2 %v4415_v46, %s3931_s18 }
 0x256   : > { %1458 = vrot.lane.b32.xlu1 %v4393_v35, %s3931_s18  ;;  %1494 = vrot.lane.b32.xlu0 %v4503_v24, %s3931_s18 }
 0x257   : > { %v5050_v13 = vpop.permute.xlu2 %1220  ;;  %v1318_v59 = vpop.permute.xlu1 %1317 }
 0x258   : > { %v1316_v49 = vpop.permute.xlu0 %1315  ;;  %v1385_v61 = vsel %vm1383_vm6, %v1318_v59, %v5039_v37 }
 0x259   : > { %v1384_v43 = vsel %vm1383_vm6, %v1316_v49, %v1318_v59  ;;  %1997 = vmatpush.bf16.msrb.mxu2 %v1385_v61  ;;  %v3555_v49 = vld [vmem:[%s7048_s0 + $0x4] sm:$0xf]  ;;  %v3473_v61 = vld [vmem:[%s7048_s0 + $0x20] sm:$0xf] }
 0x25a   : > { %1940 = vmatpush.bf16.msra.mxu1 %v1384_v43  ;;  %v3455_v43 = vld [vmem:[%s7048_s0 + $0xc] sm:$0xf0] }
 0x25b   : > { %v5100_v56 = vor.u32 %v3555_v49, %v3455_v43 }
 0x25d   : > { %1758 = vrot.lane.b32.xlu2 %v4505_v25, %s3930_s27  ;;  %7216 = vst [vmem:[#allocation71_spill] sm:$0xff] %v5100_v56 }
 0x25e   : > { %1361 = vrot.lane.b32.xlu1 %v4503_v24, %s3932_s25  ;;  %1359 = vrot.lane.b32.xlu0 %v4505_v25, %s3932_s25 }
 0x25f   : > { %v5069_v28 = vpop.permute.xlu2 %1488  ;;  %v1219_v20 = vpop.permute.xlu1 %1218 }
 0x260   : > { %v1217_v47 = vpop.permute.xlu0 %1216  ;;  %v1268_v41 = vsel %vm1250_vm7, %v1219_v20, %v5050_v13 }
 0x261   : > { %v1267_v16 = vsel %vm1250_vm7, %v1217_v47, %v1219_v20  ;;  %1998 = vmatpush.bf16.msrb.mxu2 %v1268_v41  ;;  %v3453_v20 = vld [vmem:[%s7048_s0] sm:$0xf]  ;;  %v3556_v41 = vld [vmem:[%s7048_s0 + $0x8] sm:$0xf0] }
 0x262   : > { %1941 = vmatpush.bf16.msra.mxu1 %v1267_v16  ;;  %v5110_v16 = vor.u32 %v3560_v54, %v3473_v61  ;;  %v5120_v49 = vor.u32 %v3556_v41, %v3453_v20 }
 0x264   : > { %7217 = vst [vmem:[#allocation72_spill] sm:$0xff] %v5110_v16  ;;  %3476 = vmatmul.msk.bf16.gmra.mxu2 %vm1909_vm8, %v5110_v16  ;;  %1981 = vmatmul.bf16.vlgmr.msra.gmra.mxu3 %v5120_v49 }
 0x265   : > { %1629 = vrot.lane.b32.xlu2 %v4525_v40, %s3929_s26  ;;  %7218 = vst [vmem:[#allocation73_spill] sm:$0xff] %v5120_v49  ;;  %1924 = vmatmul.bf16.vlgmr.msra.gmra.mxu0 %v5120_v49 }
 0x266   : > { %1327 = vrot.lane.b32.xlu1 %v4415_v46, %s3932_s25  ;;  %1325 = vrot.lane.b32.xlu0 %v4393_v35, %s3932_s25 }
 0x267   : > { %v5082_v3 = vpop.permute.xlu2 %1321  ;;  %v1185_v22 = vpop.permute.xlu1 %1184 }
 0x268   : > { %v1183_v34 = vpop.permute.xlu0 %1182 }
 0x269   : > { %v1251_v59 = vsel %vm1250_vm7, %v1183_v34, %v1185_v22 }
 0x26a   : > { %1942 = vmatpush.bf16.msra.mxu1 %v1251_v59 }
 0x26d   : > { %1226 = vrot.lane.b32.xlu2 %v4505_v25, %s3933_s24  ;;  %1943 = vmatmul.bf16.vlgmr.msra.gmra.mxu1 %v5100_v56 }
 0x26e   : > { %1097 = vrot.lane.b32.xlu1 %v4525_v40, %s3928_s28  ;;  %1724 = vrot.lane.b32.xlu0 %v4393_v35, %s3930_s27 }
 0x26f   : > { %v5108_v47 = vpop.permute.xlu2 %1623  ;;  %v5115_v34 = vpop.permute.xlu1 %1089 }
 0x270   : > { %v5117_v59 = vpop.permute.xlu0 %1621  ;;  %v1136_v43 = vsel %vm1117_vm0, %v4947_v32, %v5115_v34 }
 0x271   : > { %v1668_v61 = vsel %vm1649_vm1, %v4945_v51, %v5117_v59  ;;  %2030 = vmatpush.bf16.msrb.mxu1 %v1136_v43  ;;  %v1120_v51 = vsel %vm1117_vm0, %v4880_v0, %v4842_v62  ;;  %v987_v0 = vsel %vm984_vm2, %v4750_v4, %v4748_v33 }
 0x272   : > { %2049 = vmatpush.bf16.msrb.mxu3 %v1668_v61  ;;  %v1003_v61 = vsel %vm984_vm2, %v4770_v17, %v4822_v10  ;;  %v3465_v17 = vld [vmem:[%s7048_s0 + $0x18] sm:$0xf] }
 0x275   : > { %1192 = vrot.lane.b32.xlu2 %v4393_v35, %s3933_s24  ;;  %2031 = vmatpush.bf16.msrb.mxu1 %v1120_v51 }
 0x276   : > { %1595 = vrot.lane.b32.xlu1 %v4413_v45, %s3929_s26  ;;  %1228 = vrot.lane.b32.xlu0 %v4503_v24, %s3933_s24 }
 0x277   : > { %v5141_v32 = vpop.permute.xlu2 %1589  ;;  %v1187_v54 = vpop.permute.xlu1 %1186 }
 0x278   : > { %v5143_v20 = vpop.permute.xlu0 %1587  ;;  %v1252_v41 = vsel %vm1250_vm7, %v1185_v22, %v1187_v54  ;;  %v3559_v22 = vld [vmem:[%s7048_s0 + $0x20] sm:$0xf0] }
 0x279   : > { %v1652_v43 = vsel %vm1649_vm1, %v4967_v1, %v5143_v20  ;;  %1999 = vmatpush.bf16.msrb.mxu2 %v1252_v41  ;;  %2032 = vmatpush.bf16.msrb.mxu1 %v1003_v61  ;;  %v1535_v1 = vsel %vm1516_vm5, %v4991_v6, %v5069_v28  ;;  %v5176_v4 = vor.u32 %v3559_v22, %v3465_v17  ;;  %v3558_v22 = vld [vmem:[%s7048_s0 + $0x1c] sm:$0xf] }
 0x27a   : > { %2050 = vmatpush.bf16.msrb.mxu3 %v1652_v43  ;;  %v870_v61 = vsel %vm851_vm4, %v4676_v48, %v4638_v29 }
 0x27b   : > { %1986 = vmatmul.bf16.gmra.mxu3 %v5176_v4  ;;  %1929 = vmatmul.bf16.gmra.mxu0 %v5176_v4 }
 0x27c   : > { %2000 = vmatmul.bf16.vlgmr.msrb.gmra.mxu2 %v5100_v56 }
 0x27d   : > { %1462 = vrot.lane.b32.xlu2 %v4413_v45, %s3931_s18  ;;  %2033 = vmatpush.bf16.msrb.mxu1 %v987_v0 }
 0x27e   : > { %1496 = vrot.lane.b32.xlu1 %v4525_v40, %s3931_s18  ;;  %1194 = vrot.lane.b32.xlu0 %v4415_v46, %s3933_s24 }
 0x27f   : > { %2051 = vmatpush.bf16.msrb.mxu3 %v1535_v1  ;;  %v5170_v51 = vpop.permute.xlu2 %1091  ;;  %v5172_v41 = vpop.permute.xlu1 %1355 }
 0x280   : > { %v5174_v43 = vpop.permute.xlu0 %1454  ;;  %v1402_v48 = vsel %vm1383_vm6, %v5027_v19, %v5172_v41  ;;  %v1386_v19 = vsel %vm1383_vm6, %v5039_v37, %v5082_v3 }
 0x281   : > { %v1519_v6 = vsel %vm1516_vm5, %v5014_v5, %v5174_v43  ;;  %2034 = vmatpush.bf16.msrb.mxu1 %v870_v61  ;;  %v854_v5 = vsel %vm851_vm4, %v4604_v12, %v4616_v18  ;;  %v3467_v12 = vld [vmem:[%s7048_s0 + $0x24] sm:$0xf0] }
 0x283   : > { %2052 = vmatpush.bf16.msrb.mxu3 %v1519_v6  ;;  %v5214_v6 = vor.u32 %v3558_v22, %v3467_v12 }
 0x285   : > { %1230 = vrot.lane.b32.xlu2 %v4525_v40, %s3933_s24  ;;  %2035 = vmatpush.bf16.msrb.mxu1 %v854_v5 }
 0x286   : > { %1329 = vrot.lane.b32.xlu1 %v4413_v45, %s3932_s25  ;;  %1363 = vrot.lane.b32.xlu0 %v4525_v40, %s3932_s25 }
 0x287   : > { %2053 = vmatpush.bf16.msrb.mxu3 %v1402_v48  ;;  %v5199_v0 = vpop.permute.xlu2 %1456  ;;  %v5201_v1 = vpop.permute.xlu1 %1188  ;;  %1948 = vmatmul.bf16.gmra.mxu1 %v5214_v6 }
 0x288   : > { %v5203_v17 = vpop.permute.xlu0 %1222 }
 0x289   : > { %2036 = vmatpush.bf16.msrb.mxu1 %v4487_v15  ;;  %v1269_v37 = vsel %vm1250_vm7, %v5050_v13, %v5203_v17  ;;  %v1669_v15 = vsel %vm1649_vm1, %v5117_v59, %v5108_v47  ;;  %v1653_v59 = vsel %vm1649_vm1, %v5143_v20, %v5141_v32 }
 0x28b   : > { %2054 = vmatpush.bf16.msrb.mxu3 %v1386_v19 }
 0x28c   : > { %2005 = vmatmul.bf16.gmra.mxu2 %v5214_v6 }
 0x28d   : > { %1760 = vrot.lane.b32.xlu2 %v4503_v24, %s3930_s27  ;;  %2037 = vmatpush.bf16.msrb.mxu1 %v4377_v27  ;;  %v1253_v27 = vsel %vm1250_vm7, %v1187_v54, %v5201_v1 }
 0x28e   : > { %1631 = vrot.lane.b32.xlu1 %v4523_v39, %s3929_s26  ;;  %1196 = vrot.lane.b32.xlu0 %v4413_v45, %s3933_s24 }
 0x28f   : > { %2055 = vmatpush.bf16.msrb.mxu3 %v1269_v37  ;;  %v5231_v61 = vpop.permute.xlu2 %1756  ;;  %v1755_v5 = vpop.permute.xlu1 %1754 }
 0x290   : > { %v1753_v48 = vpop.permute.xlu0 %1752  ;;  %v1802_v22 = vsel %vm1782_vm3, %v1755_v5, %v5231_v61 }
 0x291   : > { %2106 = vmatpush.bf16.msra.mxu1 %v1669_v15  ;;  %v1800_v12 = vsel %vm1782_vm3, %v4969_v31, %v1753_v48  ;;  %v1801_v13 = vsel %vm1782_vm3, %v1753_v48, %v1755_v5  ;;  %v1137_v15 = vsel %vm1117_vm0, %v5115_v34, %v5170_v51 }
 0x292   : > { %2017 = vmatpush.bf16.msrb.mxu0 %v1800_v12  ;;  %2074 = vmatpush.bf16.msra.mxu2 %v1801_v13 }
 0x293   : > { %2056 = vmatpush.bf16.msrb.mxu3 %v1253_v27 }
 0x295   : > { %2107 = vmatpush.bf16.msra.mxu1 %v1653_v59  ;;  %1726 = vrot.lane.b32.xlu2 %v4415_v46, %s3930_s27 }
 0x296   : > { %1597 = vrot.lane.b32.xlu1 %v4411_v44, %s3929_s26  ;;  %1762 = vrot.lane.b32.xlu0 %v4525_v40, %s3930_s27 }
 0x297   : > { %2131 = vmatpush.bf16.msra.mxu3 %v1802_v22  ;;  %v5250_v31 = vpop.permute.xlu2 %1095  ;;  %v1721_v54 = vpop.permute.xlu1 %1720  ;;  %2038 = vmatmul.bf16.vlgmr.msrb.gmra.mxu1 %v5120_v49 }
 0x298   : > { %2057 = vmatmul.bf16.vlgmr.msrb.gmra.mxu3 %v5100_v56  ;;  %v1719_v19 = vpop.permute.xlu0 %1718 }
 0x299   : > { %v1784_v20 = vsel %vm1782_vm3, %v4932_v53, %v1719_v19  ;;  %v1785_v37 = vsel %vm1782_vm3, %v1719_v19, %v1721_v54  ;;  %v1121_v53 = vsel %vm1117_vm0, %v4842_v62, %v4892_v7  ;;  %v1004_v62 = vsel %vm984_vm2, %v4822_v10, %v4820_v2 }
 0x29a   : > { %2018 = vmatpush.bf16.msrb.mxu0 %v1784_v20  ;;  %2075 = vmatpush.bf16.msra.mxu2 %v1785_v37  ;;  %v988_v10 = vsel %vm984_vm2, %v4748_v33, %v4710_v42  ;;  %v871_v33 = vsel %vm851_vm4, %v4638_v29, %v4690_v58  ;;  %v989_v29 = vsel %vm984_vm2, %v4710_v42, %v4762_v30 }
 0x29d   : > { %1101 = vrot.lane.b32.xlu2 %v4521_v38, %s3928_s28  ;;  %3477 = vmatmul.msk.bf16.vlgmr.msrb.gmra.mxu0 %vm1909_vm8, %v5067_v21 }
 0x29e   : > { %2087 = vmatpush.bf16.msra.mxu0 %v1137_v15  ;;  %1099 = vrot.lane.b32.xlu1 %v4523_v39, %s3928_s28 }
 0x29f   : > { %1728 = vrot.lane.b32.xlu0 %v4413_v45, %s3930_s27  ;;  %v5271_v34 = vpop.permute.xlu2 %1627  ;;  %v5273_v5 = vpop.permute.xlu1 %1490  ;;  %3479 = vmatmul.msk.bf16.vlgmr.msra.gmra.mxu2 %vm1909_vm8, %v5067_v21 }
 0x2a0   : > { %v1094_v48 = vpop.permute.xlu0 %1093  ;;  %v1536_v12 = vsel %vm1516_vm5, %v5069_v28, %v5273_v5  ;;  %v1520_v28 = vsel %vm1516_vm5, %v5174_v43, %v5199_v0 }
 0x2a1   : > { %v1138_v22 = vsel %vm1117_vm0, %v5170_v51, %v1094_v48  ;;  %2108 = vmatpush.bf16.msra.mxu1 %v1536_v12  ;;  %v1122_v51 = vsel %vm1117_vm0, %v4892_v7, %v4890_v50  ;;  %v1005_v7 = vsel %vm984_vm2, %v4820_v2, %v4782_v11  ;;  %v1139_v15 = vsel %vm1117_vm0, %v1094_v48, %v5250_v31 }
 0x2a2   : > { %2088 = vmatpush.bf16.msra.mxu0 %v1121_v53  ;;  %2144 = vmatpush.bf16.msrb.mxu2 %v1138_v22 }
 0x2a5   : > { %1365 = vrot.lane.b32.xlu2 %v4523_v39, %s3932_s25  ;;  %2109 = vmatpush.bf16.msra.mxu1 %v1520_v28 }
 0x2a6   : > { %2089 = vmatpush.bf16.msra.mxu0 %v1004_v62  ;;  %1464 = vrot.lane.b32.xlu1 %v4411_v44, %s3931_s18 }
 0x2a7   : > { %1498 = vrot.lane.b32.xlu0 %v4523_v39, %s3931_s18  ;;  %2145 = vmatpush.bf16.msrb.mxu2 %v1122_v51  ;;  %v5300_v13 = vpop.permute.xlu2 %1492  ;;  %v5302_v27 = vpop.permute.xlu1 %1323  ;;  %v7222_v51 = vld [vmem:[#allocation22_spill] sm:$0xff] }
 0x2a8   : > { %v5304_v59 = vpop.permute.xlu0 %1357  ;;  %2062 = vmatmul.bf16.gmra.mxu3 %v5214_v6  ;;  %2043 = vmatmul.bf16.gmra.mxu1 %v5176_v4  ;;  %v1387_v2 = vsel %vm1383_vm6, %v5082_v3, %v5302_v27  ;;  %v1537_v28 = vsel %vm1516_vm5, %v5273_v5, %v5300_v13 }
 0x2a9   : > { %v1403_v43 = vsel %vm1383_vm6, %v5172_v41, %v5304_v59  ;;  %v855_v41 = vsel %vm851_vm4, %v4616_v18, %v4578_v8  ;;  %v872_v18 = vsel %vm851_vm4, %v4690_v58, %v4688_v57  ;;  %v856_v58 = vsel %vm851_vm4, %v4578_v8, %v4586_v9 }
 0x2aa   : > { %2090 = vmatpush.bf16.msra.mxu0 %v988_v10  ;;  %2110 = vmatpush.bf16.msra.mxu1 %v1403_v43 }
 0x2ab   : > { %2146 = vmatpush.bf16.msrb.mxu2 %v1005_v7 }
 0x2ad   : > { %1232 = vrot.lane.b32.xlu2 %v4523_v39, %s3933_s24  ;;  %3478 = vmatmul.msk.bf16.gmra.mxu0 %vm1909_vm8, %v5110_v16 }
 0x2ae   : > { %2091 = vmatpush.bf16.msra.mxu0 %v871_v33  ;;  %1764 = vrot.lane.b32.xlu1 %v4523_v39, %s3930_s27 }
 0x2af   : > { %1331 = vrot.lane.b32.xlu0 %v4411_v44, %s3932_s25  ;;  %2111 = vmatpush.bf16.msra.mxu1 %v1387_v2  ;;  %v5334_v19 = vpop.permute.xlu2 %1460 }
 0x2b0   : > { %2147 = vmatpush.bf16.msrb.mxu2 %v989_v29  ;;  %v5336_v20 = vpop.permute.xlu1 %1722  ;;  %v5338_v37 = vpop.permute.xlu0 %1224 }
 0x2b1   : > { %v1270_v3 = vsel %vm1250_vm7, %v5203_v17, %v5338_v37  ;;  %v1786_v42 = vsel %vm1782_vm3, %v1721_v54, %v5336_v20  ;;  %3480 = vmatmul.msk.bf16.gmra.mxu2 %vm1909_vm8, %v5110_v16  ;;  %v1123_v17 = vsel %vm1117_vm0, %v4890_v50, %v4854_v63  ;;  %v1006_v50 = vsel %vm984_vm2, %v4782_v11, %v4834_v60 }
 0x2b2   : > { %2092 = vmatpush.bf16.msra.mxu0 %v855_v41  ;;  %2132 = vmatpush.bf16.msra.mxu3 %v1786_v42 }
 0x2b3   : > { %2112 = vmatpush.bf16.msra.mxu1 %v1270_v3 }
 0x2b4   : > { %2148 = vmatpush.bf16.msrb.mxu2 %v872_v18  ;;  %v7223_v18 = vld [vmem:[#allocation14_spill] sm:$0xff] }
 0x2b5   : > { %1198 = vrot.lane.b32.xlu2 %v4411_v44, %s3933_s24 }
 0x2b6   : > { %2201 = vmatpush.bf16.msrb.mxu3 %v1139_v15  ;;  %2093 = vmatpush.bf16.msra.mxu0 %v4485_v14 }
 0x2b7   : > { %1103 = vrot.lane.b32.xlu1 %v4543_v52, %s3928_s28  ;;  %1730 = vrot.lane.b32.xlu0 %v4411_v44, %s3930_s27  ;;  %v5365_v54 = vpop.permute.xlu2 %1758 }
 0x2b8   : > { %2149 = vmatpush.bf16.msrb.mxu2 %v856_v58  ;;  %v1626_v14 = vpop.permute.xlu1 %1625  ;;  %v1803_v53 = vsel %vm1782_vm3, %v5231_v61, %v5365_v54  ;;  %v5370_v48 = vpop.permute.xlu0 %1190  ;;  %3481 = vmatmul.msk.bf16.vlgmr.msra.gmra.mxu3 %vm1909_vm8, %v5067_v21 }
 0x2b9   : > { %v1670_v8 = vsel %vm1649_vm1, %v5108_v47, %v1626_v14  ;;  %v1254_v22 = vsel %vm1250_vm7, %v5201_v1, %v5370_v48 }
 0x2ba   : > { %2202 = vmatpush.bf16.msrb.mxu3 %v1123_v17  ;;  %2094 = vmatpush.bf16.msra.mxu0 %v4395_v36  ;;  %v1671_v36 = vsel %vm1649_vm1, %v1626_v14, %v5271_v34 }
 0x2bb   : > { %2113 = vmatpush.bf16.msra.mxu1 %v1254_v22 }
 0x2bc   : > { %2150 = vmatpush.bf16.msrb.mxu2 %v4507_v26  ;;  %v7219_v26 = vld [vmem:[#allocation44_spill] sm:$0xff] }
 0x2bd   : > { %1599 = vrot.lane.b32.xlu2 %v4433_v55, %s3929_s26  ;;  %v990_v11 = vsel %vm984_vm2, %v4762_v30, %v7219_v26  ;;  %2095 = vmatmul.bf16.vlgmr.msra.gmra.mxu0 %v5120_v49 }
 0x2be   : > { %2163 = vmatpush.bf16.msrb.mxu0 %v1670_v8  ;;  %2203 = vmatpush.bf16.msrb.mxu3 %v1006_v50 }
 0x2bf   : > { %2188 = vmatpush.bf16.msrb.mxu1 %v1803_v53  ;;  %1635 = vrot.lane.b32.xlu1 %v4543_v52, %s3929_s26  ;;  %v5397_v47 = vpop.permute.xlu2 %1629 }
 0x2c0   : > { %2114 = vmatmul.bf16.vlgmr.msra.gmra.mxu1 %v5100_v56  ;;  %1633 = vrot.lane.b32.xlu0 %v4521_v38, %s3929_s26  ;;  %v5400_v1 = vpop.permute.xlu1 %1593  ;;  %v1592_v61 = vpop.permute.xlu0 %1591 }
 0x2c1   : > { %2151 = vmatpush.bf16.msrb.mxu2 %v4372_v23  ;;  %v1654_v12 = vsel %vm1649_vm1, %v5141_v32, %v1592_v61  ;;  %v1655_v62 = vsel %vm1649_vm1, %v1592_v61, %v5400_v1  ;;  %v7220_v23 = vld [vmem:[#allocation25_spill] sm:$0xff]  ;;  %v7221_v32 = vld [vmem:[#allocation8_spill] sm:$0xff] }
 0x2c2   : > { %2204 = vmatpush.bf16.msrb.mxu3 %v990_v11  ;;  %2164 = vmatpush.bf16.msrb.mxu0 %v1654_v12  ;;  %v873_v30 = vsel %vm851_vm4, %v4688_v57, %v7220_v23  ;;  %v857_v57 = vsel %vm851_vm4, %v4586_v9, %v7222_v51  ;;  %v7225_v11 = vld [vmem:[#allocation54_spill] sm:$0xff] }
 0x2c3   : > { %v1007_v61 = vsel %vm984_vm2, %v4834_v60, %v7225_v11 }
 0x2c4   : > { %2152 = vmatmul.bf16.vlgmr.msrb.gmra.mxu2 %v5120_v49 }
 0x2c5   : > { %2220 = vmatpush.bf16.msra.mxu2 %v1671_v36  ;;  %1502 = vrot.lane.b32.xlu2 %v4543_v52, %s3931_s18 }
 0x2c6   : > { %2205 = vmatpush.bf16.msrb.mxu3 %v873_v30  ;;  %2165 = vmatpush.bf16.msrb.mxu0 %v1537_v28 }
 0x2c7   : > { %1500 = vrot.lane.b32.xlu1 %v4521_v38, %s3931_s18  ;;  %v5422_v10 = vpop.permute.xlu2 %1226 }
 0x2c8   : > { %1601 = vrot.lane.b32.xlu0 %v7221_v32, %s3929_s26  ;;  %v1459_v43 = vpop.permute.xlu1 %1458  ;;  %v5424_v7 = vpop.permute.xlu0 %1494  ;;  %3482 = vmatmul.msk.bf16.gmra.mxu3 %vm1909_vm8, %v5110_v16 }
 0x2c9   : > { %2221 = vmatpush.bf16.msra.mxu2 %v1655_v62  ;;  %v1521_v33 = vsel %vm1516_vm5, %v5199_v0, %v1459_v43  ;;  %v1538_v2 = vsel %vm1516_vm5, %v5300_v13, %v5424_v7  ;;  %v1522_v9 = vsel %vm1516_vm5, %v1459_v43, %v5334_v19  ;;  %v7228_v43 = vld [vmem:[#allocation34_spill] sm:$0xff] }
 0x2ca   : > { %2206 = vmatpush.bf16.msrb.mxu3 %v857_v57  ;;  %2166 = vmatpush.bf16.msrb.mxu0 %v1521_v33  ;;  %v5544_v33 = vpop.f32.mrf.mxu2 }
 0x2cd   : > { %2222 = vmatpush.bf16.msra.mxu2 %v1538_v2  ;;  %1367 = vrot.lane.b32.xlu2 %v4521_v38, %s3932_s25 }
 0x2ce   : > { %2207 = vmatpush.bf16.msrb.mxu3 %v4505_v25  ;;  %2100 = vmatmul.bf16.gmra.mxu0 %v5176_v4  ;;  %v1672_v25 = vsel %vm1649_vm1, %v5271_v34, %v5397_v47 }
 0x2cf   : > { %1468 = vrot.lane.b32.xlu1 %v7221_v32, %s3931_s18  ;;  %v5443_v0 = vpop.permute.xlu2 %1192 }
 0x2d0   : > { %2119 = vmatmul.bf16.gmra.mxu1 %v5214_v6  ;;  %1466 = vrot.lane.b32.xlu0 %v4433_v55, %s3931_s18  ;;  %v5449_v5 = vpop.permute.xlu1 %1361  ;;  %v1360_v13 = vpop.permute.xlu0 %1359  ;;  %v1255_v8 = vsel %vm1250_vm7, %v5370_v48, %v5443_v0 }
 0x2d1   : > { %2223 = vmatpush.bf16.msra.mxu2 %v1522_v9  ;;  %v1404_v29 = vsel %vm1383_vm6, %v5304_v59, %v1360_v13  ;;  %v1405_v41 = vsel %vm1383_vm6, %v1360_v13, %v5449_v5 }
 0x2d2   : > { %2208 = vmatpush.bf16.msrb.mxu3 %v4393_v35  ;;  %2167 = vmatpush.bf16.msrb.mxu0 %v1404_v29 }
 0x2d4   : > { %2157 = vmatmul.bf16.gmra.mxu2 %v5176_v4 }
 0x2d5   : > { %2224 = vmatpush.bf16.msra.mxu2 %v1405_v41  ;;  %1333 = vrot.lane.b32.xlu2 %v4433_v55, %s3932_s25 }
 0x2d6   : > { %2277 = vmatpush.bf16.msra.mxu3 %v1672_v25 }
 0x2d7   : > { %1766 = vrot.lane.b32.xlu1 %v4521_v38, %s3930_s27  ;;  %v5463_v35 = vpop.permute.xlu2 %1462 }
 0x2d8   : > { %1369 = vrot.lane.b32.xlu0 %v4543_v52, %s3932_s25  ;;  %v5465_v34 = vpop.permute.xlu1 %1327  ;;  %v1326_v59 = vpop.permute.xlu0 %1325  ;;  %2209 = vmatmul.bf16.vlgmr.msrb.gmra.mxu3 %v5120_v49 }
 0x2d9   : > { %v1388_v3 = vsel %vm1383_vm6, %v5302_v27, %v1326_v59  ;;  %v1389_v42 = vsel %vm1383_vm6, %v1326_v59, %v5465_v34  ;;  %v1271_v27 = vsel %vm1250_vm7, %v5338_v37, %v5422_v10 }
 0x2da   : > { %2168 = vmatpush.bf16.msrb.mxu0 %v1388_v3  ;;  %2225 = vmatpush.bf16.msra.mxu2 %v1389_v42 }
 0x2dd   : > { %1732 = vrot.lane.b32.xlu2 %v4433_v55, %s3930_s27 }
 0x2de   : > { %2169 = vmatpush.bf16.msrb.mxu0 %v1271_v27 }
 0x2df   : > { %1637 = vrot.lane.b32.xlu1 %v7223_v18, %s3929_s26  ;;  %v5481_v15 = vpop.permute.xlu2 %1230 }
 0x2e0   : > { %1335 = vrot.lane.b32.xlu0 %v7221_v32, %s3932_s25  ;;  %v5483_v58 = vpop.permute.xlu1 %1097  ;;  %v1725_v17 = vpop.permute.xlu0 %1724 }
 0x2e1   : > { %v1140_v14 = vsel %vm1117_vm0, %v5250_v31, %v5483_v58  ;;  %v1787_v53 = vsel %vm1782_vm3, %v5336_v20, %v1725_v17  ;;  %v7224_v31 = vld [vmem:[#allocation65_spill] sm:$0xff] }
 0x2e2   : > { %2189 = vmatpush.bf16.msrb.mxu1 %v1787_v53  ;;  %2170 = vmatpush.bf16.msrb.mxu0 %v1255_v8  ;;  %v1124_v20 = vsel %vm1117_vm0, %v4854_v63, %v7224_v31  ;;  %v5595_v3 = vpop.f32.mrf.mxu0 }
 0x2e5   : > { %1236 = vrot.lane.b32.xlu2 %v4543_v52, %s3933_s24  ;;  %3483 = vmatmul.msk.bf16.vlgmr.msrb.gmra.mxu1 %vm1909_vm8, %v5067_v21 }
 0x2e6   : > { %2258 = vmatpush.bf16.msra.mxu1 %v1140_v14  ;;  %2171 = vmatmul.bf16.vlgmr.msrb.gmra.mxu0 %v5100_v56 }
 0x2e7   : > { %1234 = vrot.lane.b32.xlu1 %v4521_v38, %s3933_s24  ;;  %v5504_v37 = vpop.permute.xlu2 %1760 }
 0x2e8   : > { %1105 = vrot.lane.b32.xlu0 %v7223_v18, %s3928_s28  ;;  %v5507_v48 = vpop.permute.xlu1 %1595  ;;  %v1804_v22 = vsel %vm1782_vm3, %v5365_v54, %v5504_v37  ;;  %v1229_v50 = vpop.permute.xlu0 %1228  ;;  %2214 = vmatmul.bf16.gmra.mxu3 %v5176_v4  ;;  %v7226_v54 = vld [vmem:[#allocation7_spill] sm:$0xff] }
 0x2e9   : > { %2245 = vmatpush.bf16.msra.mxu0 %v1804_v22  ;;  %v1656_v36 = vsel %vm1649_vm1, %v5400_v1, %v5507_v48  ;;  %v1272_v63 = vsel %vm1250_vm7, %v5422_v10, %v1229_v50  ;;  %v7227_v1 = vld [vmem:[#allocation37_spill] sm:$0xff]  ;;  %v1273_v59 = vsel %vm1250_vm7, %v1229_v50, %v5481_v15 }
 0x2ea   : > { %2259 = vmatpush.bf16.msra.mxu1 %v1124_v20  ;;  %2278 = vmatpush.bf16.msra.mxu3 %v1656_v36  ;;  %v991_v12 = vsel %vm984_vm2, %v7219_v26, %v7227_v1  ;;  %v874_v26 = vsel %vm851_vm4, %v7220_v23, %v7228_v43  ;;  %v7229_v23 = vld [vmem:[#allocation21_spill] sm:$0xff]  ;;  %v5624_v8 = vpop.f32.mrf.mxu0  ;;  %v5630_v22 = vpop.f32.mrf.mxu1 }
 0x2eb   : > { %2226 = vmatpush.bf16.msra.mxu2 %v1272_v63  ;;  %v858_v2 = vsel %vm851_vm4, %v7222_v51, %v7229_v23  ;;  %v5572_v51 = vpop.f32.mrf.mxu2  ;;  %7233 = vst [vmem:[#allocation8_spill] sm:$0xff] %v5624_v8 }
 0x2ec   : > { %7230 = vst [vmem:[#allocation44_spill] sm:$0xff] %v5572_v51 }
 0x2ed   : > { %1202 = vrot.lane.b32.xlu2 %v7221_v32, %s3933_s24 }
 0x2ee   : > { %2260 = vmatpush.bf16.msra.mxu1 %v1007_v61 }
 0x2ef   : > { %1200 = vrot.lane.b32.xlu1 %v4433_v55, %s3933_s24  ;;  %v5530_v62 = vpop.permute.xlu2 %1726 }
 0x2f0   : > { %1603 = vrot.lane.b32.xlu0 %v7226_v54, %s3929_s26  ;;  %v5532_v30 = vpop.permute.xlu1 %1496  ;;  %v1195_v60 = vpop.permute.xlu0 %1194  ;;  %v1788_v28 = vsel %vm1782_vm3, %v1725_v17, %v5530_v62 }
 0x2f1   : > { %2246 = vmatpush.bf16.msra.mxu0 %v1788_v28  ;;  %v1539_v57 = vsel %vm1516_vm5, %v5424_v7, %v5532_v30  ;;  %v1256_v10 = vsel %vm1250_vm7, %v5443_v0, %v1195_v60  ;;  %v1523_v7 = vsel %vm1516_vm5, %v5334_v19, %v5463_v35 }
 0x2f2   : > { %2261 = vmatpush.bf16.msra.mxu1 %v991_v12  ;;  %2279 = vmatpush.bf16.msra.mxu3 %v1539_v57 }
 0x2f3   : > { %2227 = vmatpush.bf16.msra.mxu2 %v1256_v10  ;;  %v7238_v10 = vld [vmem:[#allocation17_spill] sm:$0xff] }
 0x2f5   : > { %1371 = vrot.lane.b32.xlu2 %v7223_v18, %s3932_s25  ;;  %3484 = vmatmul.msk.bf16.gmra.mxu1 %vm1909_vm8, %v5110_v16 }
 0x2f6   : > { %2262 = vmatpush.bf16.msra.mxu1 %v874_v26  ;;  %2228 = vmatmul.bf16.vlgmr.msra.gmra.mxu2 %v5100_v56 }
 0x2f7   : > { %1470 = vrot.lane.b32.xlu1 %v7226_v54, %s3931_s18  ;;  %2280 = vmatpush.bf16.msra.mxu3 %v1523_v7  ;;  %v5559_v9 = vpop.permute.xlu2 %1101  ;;  %v7240_v7 = vld [vmem:[#allocation59_spill] sm:$0xff] }
 0x2f8   : > { %1504 = vrot.lane.b32.xlu0 %v7223_v18, %s3931_s18  ;;  %v5561_v0 = vpop.permute.xlu1 %1329  ;;  %v5563_v25 = vpop.permute.xlu0 %1363  ;;  %2176 = vmatmul.bf16.gmra.mxu0 %v5214_v6 }
 0x2f9   : > { %v1406_v19 = vsel %vm1383_vm6, %v5449_v5, %v5563_v25  ;;  %v1390_v13 = vsel %vm1383_vm6, %v5465_v34, %v5561_v0  ;;  %v5597_v34 = vpop.f32.mrf.mxu2  ;;  %v5649_v28 = vpop.f32.mrf.mxu0 }
 0x2fa   : > { %2263 = vmatpush.bf16.msra.mxu1 %v858_v2  ;;  %7231 = vst [vmem:[#allocation25_spill] sm:$0xff] %v5597_v34 }
 0x2fb   : > { %2281 = vmatpush.bf16.msra.mxu3 %v1406_v19  ;;  %7236 = vst [vmem:[#allocation14_spill] sm:$0xff] %v5649_v28 }
 0x2fd   : > { %1204 = vrot.lane.b32.xlu2 %v7226_v54, %s3933_s24 }
 0x2fe   : > { %2264 = vmatpush.bf16.msra.mxu1 %v4503_v24 }
 0x2ff   : > { %1238 = vrot.lane.b32.xlu1 %v7223_v18, %s3933_s24  ;;  %2282 = vmatpush.bf16.msra.mxu3 %v1390_v13  ;;  %v5583_v5 = vpop.permute.xlu2 %1365 }
 0x300   : > { %1337 = vrot.lane.b32.xlu0 %v7226_v54, %s3932_s25  ;;  %v5586_v24 = vpop.permute.xlu1 %1631  ;;  %v5588_v29 = vpop.permute.xlu0 %1196 }
 0x301   : > { %v1673_v41 = vsel %vm1649_vm1, %v5397_v47, %v5586_v24  ;;  %v1257_v47 = vsel %vm1250_vm7, %v1195_v60, %v5588_v29  ;;  %v5626_v20 = vpop.f32.mrf.mxu2  ;;  %v5647_v60 = vpop.f32.mrf.mxu3 }
 0x302   : > { %2265 = vmatpush.bf16.msra.mxu1 %v4415_v46  ;;  %v7232_v46 = vld [vmem:[#allocation13_spill] sm:$0xff]  ;;  %7234 = vst [vmem:[#allocation22_spill] sm:$0xff] %v5626_v20  ;;  %v7284_v20 = vld [vmem:[#allocation12_spill] sm:$0xff] }
 0x303   : > { %2283 = vmatpush.bf16.msra.mxu3 %v1273_v59 }
 0x305   : > { %1770 = vrot.lane.b32.xlu2 %v7223_v18, %s3930_s27  ;;  %2266 = vmatmul.bf16.vlgmr.msra.gmra.mxu1 %v5120_v49 }
 0x306   : > { %2334 = vmatpush.bf16.msrb.mxu1 %v1673_v41  ;;  %2233 = vmatmul.bf16.gmra.mxu2 %v5214_v6 }
 0x307   : > { %1768 = vrot.lane.b32.xlu1 %v4543_v52, %s3930_s27  ;;  %2284 = vmatpush.bf16.msra.mxu3 %v1257_v47  ;;  %v5608_v42 = vpop.permute.xlu2 %1232  ;;  %v7242_v47 = vld [vmem:[#allocation49_spill] sm:$0xff] }
 0x308   : > { %1639 = vrot.lane.b32.xlu0 %v7232_v46, %s3929_s26  ;;  %v5610_v27 = vpop.permute.xlu1 %1597  ;;  %v5612_v17 = vpop.permute.xlu0 %1762  ;;  %3485 = vmatmul.msk.bf16.vlgmr.msra.gmra.mxu0 %vm1909_vm8, %v5067_v21 }
 0x309   : > { %v1805_v14 = vsel %vm1782_vm3, %v5504_v37, %v5612_v17  ;;  %v1657_v53 = vsel %vm1649_vm1, %v5507_v48, %v5610_v27  ;;  %v7235_v37 = vld [vmem:[#allocation11_spill] sm:$0xff]  ;;  %v5651_v57 = vpop.f32.mrf.mxu2  ;;  %v5681_v59 = vpop.f32.mrf.mxu3 }
 0x30a   : > { %2335 = vmatpush.bf16.msrb.mxu1 %v1657_v53  ;;  %2302 = vmatpush.bf16.msrb.mxu2 %v1805_v14  ;;  %7241 = vst [vmem:[#allocation54_spill] sm:$0xff] %v5681_v59  ;;  %v1008_v14 = vsel %vm984_vm2, %v7225_v11, %v7242_v47  ;;  %v7243_v53 = vld [vmem:[#allocation56_spill] sm:$0xff]  ;;  %v7247_v11 = vld [vmem:[#allocation46_spill] sm:$0xff] }
 0x30b   : > { %2285 = vmatmul.bf16.vlgmr.msra.gmra.mxu3 %v5100_v56 }
 0x30d   : > { %1736 = vrot.lane.b32.xlu2 %v7226_v54, %s3930_s27 }
 0x30f   : > { %1734 = vrot.lane.b32.xlu1 %v7221_v32, %s3930_s27  ;;  %v5636_v48 = vpop.permute.xlu2 %1198 }
 0x310   : > { %1605 = vrot.lane.b32.xlu0 %v7235_v37, %s3929_s26  ;;  %v1100_v50 = vpop.permute.xlu1 %1099 }
 0x311   : > { %v5638_v36 = vpop.permute.xlu0 %1728  ;;  %v1141_v63 = vsel %vm1117_vm0, %v5483_v58, %v1100_v50  ;;  %v1142_v61 = vsel %vm1117_vm0, %v1100_v50, %v5559_v9  ;;  %v5657_v58 = vpop.f32.mrf.mxu1  ;;  %v1009_v50 = vsel %vm984_vm2, %v7242_v47, %v7243_v53 }
 0x312   : > { %v1789_v12 = vsel %vm1782_vm3, %v5530_v62, %v5638_v36  ;;  %2315 = vmatpush.bf16.msrb.mxu0 %v1141_v63  ;;  %7237 = vst [vmem:[#allocation65_spill] sm:$0xff] %v5657_v58  ;;  %v7239_v62 = vld [vmem:[#allocation64_spill] sm:$0xff]  ;;  %v5689_v63 = vpop.f32.mrf.mxu0 }
 0x313   : > { %2303 = vmatpush.bf16.msrb.mxu2 %v1789_v12  ;;  %v1125_v26 = vsel %vm1117_vm0, %v7224_v31, %v7239_v62  ;;  %v1126_v2 = vsel %vm1117_vm0, %v7239_v62, %v7240_v7  ;;  %7244 = vst [vmem:[#allocation7_spill] sm:$0xff] %v5689_v63  ;;  %v992_v12 = vsel %vm984_vm2, %v7227_v1, %v7247_v11 }
 0x315   : > { %1506 = vrot.lane.b32.xlu2 %v7232_v46, %s3931_s18  ;;  %2271 = vmatmul.bf16.gmra.mxu1 %v5176_v4 }
 0x316   : > { %3487 = vmatmul.msk.bf16.vlgmr.msrb.gmra.mxu2 %vm1909_vm8, %v5067_v21  ;;  %2316 = vmatpush.bf16.msrb.mxu0 %v1125_v26  ;;  %v7248_v26 = vld [vmem:[#allocation45_spill] sm:$0xff] }
 0x317   : > { %2372 = vmatpush.bf16.msra.mxu2 %v1142_v61  ;;  %1109 = vrot.lane.b32.xlu1 %v7238_v10, %s3928_s28  ;;  %v5669_v19 = vpop.permute.xlu2 %1599  ;;  %v5691_v61 = vpop.f32.mrf.mxu2 }
 0x318   : > { %1107 = vrot.lane.b32.xlu0 %v7232_v46, %s3928_s28  ;;  %v5671_v13 = vpop.permute.xlu1 %1464  ;;  %3486 = vmatmul.msk.bf16.gmra.mxu0 %vm1909_vm8, %v5110_v16  ;;  %7245 = vst [vmem:[#allocation37_spill] sm:$0xff] %v5691_v61 }
 0x319   : > { %v5673_v41 = vpop.permute.xlu0 %1498  ;;  %v1524_v62 = vsel %vm1516_vm5, %v5463_v35, %v5671_v13  ;;  %v7250_v35 = vld [vmem:[#allocation33_spill] sm:$0xff] }
 0x31a   : > { %v1540_v31 = vsel %vm1516_vm5, %v5532_v30, %v5673_v41  ;;  %2317 = vmatpush.bf16.msrb.mxu0 %v1008_v14  ;;  %v5696_v30 = vpop.f32.mrf.mxu1  ;;  %v5731_v51 = vpop.f32.mrf.mxu0 }
 0x31b   : > { %2373 = vmatpush.bf16.msra.mxu2 %v1126_v2  ;;  %2336 = vmatpush.bf16.msrb.mxu1 %v1540_v31  ;;  %7246 = vst [vmem:[#allocation34_spill] sm:$0xff] %v5696_v30  ;;  %v993_v2 = vsel %vm984_vm2, %v7247_v11, %v7248_v26  ;;  %v1407_v11 = vsel %vm1383_vm6, %v5563_v25, %v5583_v5  ;;  %v7254_v25 = vld [vmem:[#allocation18_spill] sm:$0xff] }
 0x31c   : > { %2290 = vmatmul.bf16.gmra.mxu3 %v5214_v6 }
 0x31d   : > { %1339 = vrot.lane.b32.xlu2 %v7235_v37, %s3932_s25 }
 0x31e   : > { %2318 = vmatpush.bf16.msrb.mxu0 %v992_v12  ;;  %v875_v12 = vsel %vm851_vm4, %v7228_v43, %v7250_v35 }
 0x31f   : > { %2374 = vmatpush.bf16.msra.mxu2 %v1009_v50  ;;  %1373 = vrot.lane.b32.xlu1 %v7232_v46, %s3932_s25  ;;  %v5711_v31 = vpop.permute.xlu2 %1502  ;;  %v5720_v50 = vpop.f32.mrf.mxu3 }
 0x320   : > { %1472 = vrot.lane.b32.xlu0 %v7235_v37, %s3931_s18  ;;  %2337 = vmatpush.bf16.msrb.mxu1 %v1524_v62  ;;  %v5713_v47 = vpop.permute.xlu1 %1764  ;;  %7249 = vst [vmem:[#allocation21_spill] sm:$0xff] %v5720_v50  ;;  %v7251_v62 = vld [vmem:[#allocation28_spill] sm:$0xff] }
 0x321   : > { %v5715_v14 = vpop.permute.xlu0 %1331  ;;  %v1806_v1 = vsel %vm1782_vm3, %v5612_v17, %v5713_v47  ;;  %v5733_v17 = vpop.f32.mrf.mxu2 }
 0x322   : > { %2359 = vmatpush.bf16.msrb.mxu3 %v1806_v1  ;;  %2319 = vmatpush.bf16.msrb.mxu0 %v875_v12  ;;  %7252 = vst [vmem:[#allocation13_spill] sm:$0xff] %v5733_v17  ;;  %v5737_v43 = vpop.f32.mrf.mxu1  ;;  %v859_v1 = vsel %vm851_vm4, %v7229_v23, %v7254_v25  ;;  %v7255_v12 = vld [vmem:[#allocation24_spill] sm:$0xff] }
 0x323   : > { %2375 = vmatpush.bf16.msra.mxu2 %v993_v2  ;;  %v876_v2 = vsel %vm851_vm4, %v7250_v35, %v7251_v62  ;;  %7253 = vst [vmem:[#allocation11_spill] sm:$0xff] %v5737_v43  ;;  %v1391_v35 = vsel %vm1383_vm6, %v5561_v0, %v5715_v14 }
 0x324   : > { %2338 = vmatpush.bf16.msrb.mxu1 %v1407_v11  ;;  %v860_v11 = vsel %vm851_vm4, %v7254_v25, %v7255_v12  ;;  %v1274_v25 = vsel %vm1250_vm7, %v5481_v15, %v5608_v42  ;;  %v7259_v15 = vld [vmem:[#allocation16_spill] sm:$0xff] }
 0x325   : > { %1738 = vrot.lane.b32.xlu2 %v7235_v37, %s3930_s27 }
 0x326   : > { %3488 = vmatmul.msk.bf16.gmra.mxu2 %vm1909_vm8, %v5110_v16  ;;  %2320 = vmatpush.bf16.msrb.mxu0 %v859_v1 }
 0x327   : > { %2376 = vmatpush.bf16.msra.mxu2 %v876_v2  ;;  %1240 = vrot.lane.b32.xlu1 %v7232_v46, %s3933_s24  ;;  %v5754_v2 = vpop.permute.xlu2 %1367  ;;  %v5766_v1 = vpop.f32.mrf.mxu3 }
 0x328   : > { %1772 = vrot.lane.b32.xlu0 %v7232_v46, %s3930_s27  ;;  %2339 = vmatpush.bf16.msrb.mxu1 %v1391_v35  ;;  %7256 = vst [vmem:[#allocation17_spill] sm:$0xff] %v5766_v1  ;;  %v5771_v35 = vpop.f32.mrf.mxu0 }
 0x329   : > { %v5756_v61 = vpop.permute.xlu1 %1103  ;;  %v5758_v58 = vpop.permute.xlu0 %1730  ;;  %7257 = vst [vmem:[#allocation64_spill] sm:$0xff] %v5771_v35 }
 0x32a   : > { %v1143_v23 = vsel %vm1117_vm0, %v5559_v9, %v5756_v61  ;;  %v1790_v0 = vsel %vm1782_vm3, %v5638_v36, %v5758_v58  ;;  %2321 = vmatpush.bf16.msrb.mxu0 %v4525_v40  ;;  %v5781_v9 = vpop.f32.mrf.mxu1  ;;  %v1258_v40 = vsel %vm1250_vm7, %v5588_v29, %v5636_v48  ;;  %v7260_v36 = vld [vmem:[#allocation67_spill] sm:$0xff] }
 0x32b   : > { %2377 = vmatpush.bf16.msra.mxu2 %v860_v11  ;;  %2360 = vmatpush.bf16.msrb.mxu3 %v1790_v0  ;;  %v5773_v11 = vpop.f32.mrf.mxu2 }
 0x32c   : > { %2340 = vmatpush.bf16.msrb.mxu1 %v1274_v25  ;;  %7258 = vst [vmem:[#allocation59_spill] sm:$0xff] %v5773_v11 }
 0x32d   : > { %1641 = vrot.lane.b32.xlu2 %v7238_v10, %s3929_s26 }
 0x32e   : > { %3489 = vmatmul.msk.bf16.vlgmr.msrb.gmra.mxu3 %vm1909_vm8, %v5067_v21  ;;  %2322 = vmatpush.bf16.msrb.mxu0 %v4413_v45 }
 0x32f   : > { %2429 = vmatpush.bf16.msra.mxu3 %v1143_v23  ;;  %2378 = vmatpush.bf16.msra.mxu2 %v4523_v39  ;;  %v1127_v39 = vsel %vm1117_vm0, %v7240_v7, %v7260_v36  ;;  %v5793_v23 = vpop.permute.xlu2 %1333  ;;  %v5803_v59 = vpop.f32.mrf.mxu3  ;;  %v7261_v7 = vld [vmem:[#allocation55_spill] sm:$0xff] }
 0x330   : > { %1206 = vrot.lane.b32.xlu1 %v7235_v37, %s3933_s24  ;;  %1111 = vrot.lane.b32.xlu0 %v7259_v15, %s3928_s28  ;;  %v5809_v45 = vpop.f32.mrf.mxu0 }
 0x331   : > { %2341 = vmatpush.bf16.msrb.mxu1 %v1258_v40  ;;  %v5795_v0 = vpop.permute.xlu1 %1635  ;;  %v1010_v40 = vsel %vm984_vm2, %v7243_v53, %v7261_v7  ;;  %2323 = vmatmul.bf16.vlgmr.msrb.gmra.mxu0 %v5120_v49  ;;  %7262 = vst [vmem:[#allocation49_spill] sm:$0xff] %v5809_v45  ;;  %v1658_v53 = vsel %vm1649_vm1, %v5610_v27, %v5669_v19  ;;  %v7268_v27 = vld [vmem:[#allocation36_spill] sm:$0xff] }
 0x332   : > { %v1634_v25 = vpop.permute.xlu0 %1633 }
 0x333   : > { %2430 = vmatpush.bf16.msra.mxu3 %v1127_v39  ;;  %2379 = vmatpush.bf16.msra.mxu2 %v4411_v44  ;;  %v1674_v35 = vsel %vm1649_vm1, %v5586_v24, %v1634_v25  ;;  %v1675_v29 = vsel %vm1649_vm1, %v1634_v25, %v5795_v0  ;;  %v5811_v44 = vpop.f32.mrf.mxu2  ;;  %v7263_v24 = vld [vmem:[#allocation9_spill] sm:$0xff]  ;;  %v5816_v39 = vpop.f32.mrf.mxu1  ;;  %v7266_v25 = vld [vmem:[#allocation40_spill] sm:$0xff] }
 0x334   : > { %2391 = vmatpush.bf16.msra.mxu0 %v1674_v35  ;;  %2342 = vmatmul.bf16.vlgmr.msrb.gmra.mxu1 %v5100_v56  ;;  %7264 = vst [vmem:[#allocation56_spill] sm:$0xff] %v5816_v39  ;;  %v7265_v35 = vld [vmem:[#allocation10_spill] sm:$0xff] }
 0x335   : > { %1609 = vrot.lane.b32.xlu2 %v7263_v24, %s3929_s26 }
 0x336   : > { %2380 = vmatmul.bf16.vlgmr.msra.gmra.mxu2 %v5120_v49 }
 0x337   : > { %2448 = vmatpush.bf16.msrb.mxu2 %v1675_v29  ;;  %2431 = vmatpush.bf16.msra.mxu3 %v1010_v40  ;;  %v994_v29 = vsel %vm984_vm2, %v7248_v26, %v7266_v25  ;;  %v5829_v40 = vpop.permute.xlu2 %1732  ;;  %v5838_v17 = vpop.f32.mrf.mxu3  ;;  %v877_v26 = vsel %vm851_vm4, %v7251_v62, %v7268_v27 }
 0x338   : > { %1607 = vrot.lane.b32.xlu1 %v7265_v35, %s3929_s26  ;;  %1643 = vrot.lane.b32.xlu0 %v7259_v15, %s3929_s26  ;;  %7267 = vst [vmem:[#allocation46_spill] sm:$0xff] %v5838_v17 }
 0x339   : > { %2392 = vmatpush.bf16.msra.mxu0 %v1658_v53  ;;  %v1501_v39 = vpop.permute.xlu1 %1500  ;;  %v5843_v53 = vpop.f32.mrf.mxu0 }
 0x33a   : > { %v5831_v8 = vpop.permute.xlu0 %1601  ;;  %v1541_v45 = vsel %vm1516_vm5, %v5673_v41, %v1501_v39  ;;  %7269 = vst [vmem:[#allocation45_spill] sm:$0xff] %v5843_v53  ;;  %v1542_v41 = vsel %vm1516_vm5, %v1501_v39, %v5711_v31 }
 0x33b   : > { %2432 = vmatpush.bf16.msra.mxu3 %v994_v29  ;;  %v1659_v34 = vsel %vm1649_vm1, %v5669_v19, %v5831_v8  ;;  %v5845_v29 = vpop.f32.mrf.mxu2  ;;  %v5851_v19 = vpop.f32.mrf.mxu1 }
 0x33c   : > { %2449 = vmatpush.bf16.msrb.mxu2 %v1659_v34  ;;  %7270 = vst [vmem:[#allocation33_spill] sm:$0xff] %v5845_v29  ;;  %v7272_v34 = vld [vmem:[#allocation23_spill] sm:$0xff] }
 0x33d   : > { %2393 = vmatpush.bf16.msra.mxu0 %v1541_v45  ;;  %1474 = vrot.lane.b32.xlu2 %v7265_v35, %s3931_s18  ;;  %7271 = vst [vmem:[#allocation28_spill] sm:$0xff] %v5851_v19  ;;  %v861_v62 = vsel %vm851_vm4, %v7255_v12, %v7272_v34 }
 0x33e   : > { %3490 = vmatmul.msk.bf16.gmra.mxu3 %vm1909_vm8, %v5110_v16 }
 0x33f   : > { %2433 = vmatpush.bf16.msra.mxu3 %v877_v26  ;;  %v5862_v45 = vpop.permute.xlu2 %1236  ;;  %v5870_v30 = vpop.f32.mrf.mxu3 }
 0x340   : > { %1510 = vrot.lane.b32.xlu1 %v7259_v15, %s3931_s18  ;;  %1508 = vrot.lane.b32.xlu0 %v7238_v10, %s3931_s18  ;;  %7273 = vst [vmem:[#allocation18_spill] sm:$0xff] %v5870_v30 }
 0x341   : > { %2450 = vmatpush.bf16.msrb.mxu2 %v1542_v41  ;;  %v5864_v39 = vpop.permute.xlu1 %1468  ;;  %v5873_v12 = vpop.f32.mrf.mxu0  ;;  %2328 = vmatmul.bf16.gmra.mxu0 %v5176_v4 }
 0x342   : > { %v1467_v26 = vpop.permute.xlu0 %1466 }
 0x343   : > { %2434 = vmatpush.bf16.msra.mxu3 %v861_v62  ;;  %v1525_v29 = vsel %vm1516_vm5, %v5671_v13, %v1467_v26  ;;  %v1526_v17 = vsel %vm1516_vm5, %v1467_v26, %v5864_v39  ;;  %v5875_v41 = vpop.f32.mrf.mxu2  ;;  %v5881_v13 = vpop.f32.mrf.mxu1 }
 0x344   : > { %2394 = vmatpush.bf16.msra.mxu0 %v1525_v29  ;;  %7274 = vst [vmem:[#allocation24_spill] sm:$0xff] %v5875_v41  ;;  %2347 = vmatmul.bf16.gmra.mxu1 %v5214_v6 }
 0x345   : > { %2451 = vmatpush.bf16.msrb.mxu2 %v1526_v17  ;;  %1377 = vrot.lane.b32.xlu2 %v7259_v15, %s3932_s25  ;;  %7275 = vst [vmem:[#allocation16_spill] sm:$0xff] %v5881_v13 }
 0x346   : > { %2385 = vmatmul.bf16.gmra.mxu2 %v5176_v4 }
 0x347   : > { %2435 = vmatpush.bf16.msra.mxu3 %v4521_v38  ;;  %v1408_v38 = vsel %vm1383_vm6, %v5583_v5, %v5754_v2  ;;  %v5891_v17 = vpop.permute.xlu2 %1202  ;;  %v5904_v30 = vpop.f32.mrf.mxu3  ;;  %v1392_v5 = vsel %vm1383_vm6, %v5715_v14, %v5793_v23  ;;  %v1791_v14 = vsel %vm1782_vm3, %v5758_v58, %v5829_v40 }
 0x348   : > { %1375 = vrot.lane.b32.xlu1 %v7238_v10, %s3932_s25  ;;  %1476 = vrot.lane.b32.xlu0 %v7263_v24, %s3931_s18  ;;  %7276 = vst [vmem:[#allocation67_spill] sm:$0xff] %v5904_v30 }
 0x349   : > { %2395 = vmatpush.bf16.msra.mxu0 %v1408_v38  ;;  %v5894_v29 = vpop.permute.xlu1 %1766 }
 0x34a   : > { %v5896_v62 = vpop.permute.xlu0 %1369  ;;  %v1807_v26 = vsel %vm1782_vm3, %v5713_v47, %v5894_v29 }
 0x34b   : > { %2436 = vmatpush.bf16.msra.mxu3 %v4433_v55  ;;  %v1409_v41 = vsel %vm1383_vm6, %v5754_v2, %v5896_v62  ;;  %2416 = vmatpush.bf16.msra.mxu1 %v1807_v26  ;;  %v5909_v55 = vpop.f32.mrf.mxu0  ;;  %v5911_v38 = vpop.f32.mrf.mxu2 }
 0x34c   : > { %2452 = vmatpush.bf16.msrb.mxu2 %v1409_v41  ;;  %7277 = vst [vmem:[#allocation55_spill] sm:$0xff] %v5909_v55  ;;  %v5915_v47 = vpop.f32.mrf.mxu1 }
 0x34d   : > { %2396 = vmatpush.bf16.msra.mxu0 %v1392_v5  ;;  %7278 = vst [vmem:[#allocation9_spill] sm:$0xff] %v5911_v38  ;;  %1343 = vrot.lane.b32.xlu2 %v7263_v24, %s3932_s25 }
 0x34e   : > { %2437 = vmatmul.bf16.vlgmr.msra.gmra.mxu3 %v5120_v49 }
 0x34f   : > { %2417 = vmatpush.bf16.msra.mxu1 %v1791_v14  ;;  %v5925_v2 = vpop.permute.xlu2 %1371  ;;  %v5937_v19 = vpop.f32.mrf.mxu3  ;;  %v7279_v14 = vld [vmem:[#allocation15_spill] sm:$0xff] }
 0x350   : > { %1341 = vrot.lane.b32.xlu1 %v7265_v35, %s3932_s25  ;;  %1774 = vrot.lane.b32.xlu0 %v7238_v10, %s3930_s27  ;;  %v1410_v13 = vsel %vm1383_vm6, %v5896_v62, %v5925_v2 }
 0x351   : > { %v5927_v41 = vpop.permute.xlu1 %1637 }
 0x352   : > { %v5929_v26 = vpop.permute.xlu0 %1335  ;;  %v1676_v5 = vsel %vm1649_vm1, %v5795_v0, %v5927_v41 }
 0x353   : > { %v1393_v55 = vsel %vm1383_vm6, %v5793_v23, %v5929_v26  ;;  %2505 = vmatpush.bf16.msrb.mxu3 %v1676_v5  ;;  %v5939_v58 = vpop.f32.mrf.mxu2  ;;  %v5945_v50 = vpop.f32.mrf.mxu0 }
 0x354   : > { %2453 = vmatpush.bf16.msrb.mxu2 %v1393_v55  ;;  %3491 = vmatmul.msk.bf16.vlgmr.msra.gmra.mxu1 %vm1909_vm8, %v5067_v21  ;;  %7280 = vst [vmem:[#allocation10_spill] sm:$0xff] %v5945_v50  ;;  %v5947_v28 = vpop.f32.mrf.mxu1 }
 0x355   : > { %1113 = vrot.lane.b32.xlu2 %v7279_v14, %s3928_s28  ;;  %7281 = vst [vmem:[#allocation40_spill] sm:$0xff] %v5947_v28 }
 0x357   : > { %v5953_v23 = vpop.permute.xlu2 %1204  ;;  %v5964_v38 = vpop.f32.mrf.mxu3 }
 0x358   : > { %1740 = vrot.lane.b32.xlu1 %v7265_v35, %s3930_s27  ;;  %1645 = vrot.lane.b32.xlu0 %v7279_v14, %s3929_s26  ;;  %7282 = vst [vmem:[#allocation36_spill] sm:$0xff] %v5964_v38 }
 0x359   : > { %v1235_v0 = vpop.permute.xlu1 %1234 }
 0x35a   : > { %v5955_v55 = vpop.permute.xlu0 %1105  ;;  %v1275_v50 = vsel %vm1250_vm7, %v5608_v42, %v1235_v0  ;;  %v1276_v28 = vsel %vm1250_vm7, %v1235_v0, %v5862_v45  ;;  %v7286_v42 = vld [vmem:[#allocation66_spill] sm:$0xff] }
 0x35b   : > { %v1144_v5 = vsel %vm1117_vm0, %v5756_v61, %v5955_v55  ;;  %2397 = vmatpush.bf16.msra.mxu0 %v1275_v50  ;;  %2454 = vmatpush.bf16.msrb.mxu2 %v1276_v28  ;;  %v5966_v53 = vpop.f32.mrf.mxu2  ;;  %v1128_v28 = vsel %vm1117_vm0, %v7260_v36, %v7286_v42  ;;  %v5982_v50 = vpop.f32.mrf.mxu0  ;;  %v7289_v36 = vld [vmem:[#allocation52_spill] sm:$0xff] }
 0x35c   : > { %2486 = vmatpush.bf16.msrb.mxu1 %v1144_v5  ;;  %7283 = vst [vmem:[#allocation23_spill] sm:$0xff] %v5966_v53  ;;  %v5970_v30 = vpop.f32.mrf.mxu1 }
 0x35d   : > { %1611 = vrot.lane.b32.xlu2 %v7284_v20, %s3929_s26  ;;  %7285 = vst [vmem:[#allocation74_spill] sm:$0xff] %v5970_v30 }
 0x35e   : > { %2442 = vmatmul.bf16.gmra.mxu3 %v5176_v4  ;;  %7287 = vst [vmem:[#allocation66_spill] sm:$0xff] %v5982_v50 }
 0x35f   : > { %v5980_v61 = vpop.permute.xlu2 %1770  ;;  %v5993_v11 = vpop.f32.mrf.mxu3 }
 0x360   : > { %1244 = vrot.lane.b32.xlu1 %v7259_v15, %s3933_s24  ;;  %1242 = vrot.lane.b32.xlu0 %v7238_v10, %s3933_s24  ;;  %7288 = vst [vmem:[#allocation75_spill] sm:$0xff] %v5993_v11 }
 0x361   : > { %2487 = vmatpush.bf16.msrb.mxu1 %v1128_v28  ;;  %v1201_v0 = vpop.permute.xlu1 %1200  ;;  %v1011_v28 = vsel %vm984_vm2, %v7261_v7, %v7289_v36  ;;  %v7292_v7 = vld [vmem:[#allocation48_spill] sm:$0xff] }
 0x362   : > { %v5984_v5 = vpop.permute.xlu0 %1603  ;;  %v1259_v38 = vsel %vm1250_vm7, %v5636_v48, %v1201_v0  ;;  %v1260_v53 = vsel %vm1250_vm7, %v1201_v0, %v5891_v17 }
 0x363   : > { %v1660_v30 = vsel %vm1649_vm1, %v5831_v8, %v5984_v5  ;;  %2398 = vmatpush.bf16.msra.mxu0 %v1259_v38  ;;  %2455 = vmatpush.bf16.msrb.mxu2 %v1260_v53  ;;  %v6005_v8 = vpop.f32.mrf.mxu2  ;;  %v6024_v11 = vpop.f32.mrf.mxu0 }
 0x364   : > { %2506 = vmatpush.bf16.msrb.mxu3 %v1660_v30  ;;  %3492 = vmatmul.msk.bf16.gmra.mxu1 %vm1909_vm8, %v5110_v16  ;;  %v6003_v48 = vpop.f32.mrf.mxu1  ;;  %7291 = vst [vmem:[#allocation76_spill] sm:$0xff] %v6005_v8  ;;  %v995_v30 = vsel %vm984_vm2, %v7266_v25, %v7292_v7  ;;  %v7293_v8 = vld [vmem:[#allocation35_spill] sm:$0xff] }
 0x365   : > { %2488 = vmatpush.bf16.msrb.mxu1 %v1011_v28  ;;  %1512 = vrot.lane.b32.xlu2 %v7279_v14, %s3931_s18  ;;  %7290 = vst [vmem:[#allocation52_spill] sm:$0xff] %v6003_v48  ;;  %v878_v48 = vsel %vm851_vm4, %v7268_v27, %v7293_v8 }
 0x366   : > { %2399 = vmatmul.bf16.vlgmr.msra.gmra.mxu0 %v5100_v56  ;;  %2456 = vmatmul.bf16.vlgmr.msrb.gmra.mxu2 %v5100_v56 }
 0x367   : > { %v6014_v53 = vpop.permute.xlu2 %1736  ;;  %v6029_v25 = vpop.f32.mrf.mxu3 }
 0x368   : > { %1210 = vrot.lane.b32.xlu1 %v7263_v24, %s3933_s24  ;;  %1208 = vrot.lane.b32.xlu0 %v7265_v35, %s3933_s24  ;;  %7294 = vst [vmem:[#allocation48_spill] sm:$0xff] %v6029_v25 }
 0x369   : > { %2489 = vmatpush.bf16.msrb.mxu1 %v995_v30  ;;  %v6017_v38 = vpop.permute.xlu1 %1470 }
 0x36a   : > { %v6019_v0 = vpop.permute.xlu0 %1504 }
 0x36b   : > { %v1543_v28 = vsel %vm1516_vm5, %v5711_v31, %v6019_v0  ;;  %v7296_v31 = vld [vmem:[#allocation19_spill] sm:$0xff]  ;;  %v6047_v25 = vpop.f32.mrf.mxu2 }
 0x36c   : > { %2507 = vmatpush.bf16.msrb.mxu3 %v1543_v28  ;;  %v6033_v30 = vpop.f32.mrf.mxu1  ;;  %v862_v27 = vsel %vm851_vm4, %v7272_v34, %v7296_v31  ;;  %7297 = vst [vmem:[#allocation19_spill] sm:$0xff] %v6047_v25  ;;  %v6059_v34 = vpop.f32.mrf.mxu0 }
 0x36d   : > { %2490 = vmatpush.bf16.msrb.mxu1 %v878_v48  ;;  %1345 = vrot.lane.b32.xlu2 %v7284_v20, %s3932_s25  ;;  %7295 = vst [vmem:[#allocation35_spill] sm:$0xff] %v6033_v30  ;;  %v1527_v48 = vsel %vm1516_vm5, %v5864_v39, %v6017_v38  ;;  %v6062_v39 = vld [vmem:[%s4466_s15 + $0x8] sm:$0xff] }
 0x36e   : > { %7298 = vst [vmem:[#allocation77_spill] sm:$0xff] %v6059_v34 }
 0x36f   : > { %v6045_v28 = vpop.permute.xlu2 %1506  ;;  %v6056_v1 = vpop.f32.mrf.mxu3 }
 0x370   : > { %1379 = vrot.lane.b32.xlu1 %v7279_v14, %s3932_s25  ;;  %1478 = vrot.lane.b32.xlu0 %v7284_v20, %s3931_s18 }
 0x371   : > { %2491 = vmatpush.bf16.msrb.mxu1 %v862_v27  ;;  %2508 = vmatpush.bf16.msrb.mxu3 %v1527_v48  ;;  %v6049_v43 = vpop.permute.xlu1 %1238 }
 0x372   : > { %v6051_v50 = vpop.permute.xlu0 %1337 }
 0x375   : > { %2509 = vmatpush.bf16.msrb.mxu3 %v1410_v13  ;;  %2492 = vmatpush.bf16.msrb.mxu1 %v4543_v52  ;;  %v1394_v13 = vsel %vm1383_vm6, %v5929_v26, %v6051_v50  ;;  %v6074_v52 = vpop.f32.mrf.mxu1 }
 0x376   : > { %1647 = vrot.lane.b32.xlu2 %v6062_v39, %s3929_s26  ;;  %2404 = vmatmul.bf16.gmra.mxu0 %v5214_v6  ;;  %7299 = vst [vmem:[#allocation78_spill] sm:$0xff] %v6074_v52 }
 0x377   : > { %v6076_v62 = vpop.permute.xlu2 %1339  ;;  %2461 = vmatmul.bf16.gmra.mxu2 %v5214_v6  ;;  %v6094_v52 = vpop.f32.mrf.mxu3 }
 0x378   : > { %1212 = vrot.lane.b32.xlu1 %v7284_v20, %s3933_s24  ;;  %1246 = vrot.lane.b32.xlu0 %v7279_v14, %s3933_s24  ;;  %7300 = vst [vmem:[#allocation79_spill] sm:$0xff] %v6094_v52 }
 0x379   : > { %2510 = vmatpush.bf16.msrb.mxu3 %v1394_v13  ;;  %2493 = vmatpush.bf16.msrb.mxu1 %v7221_v32  ;;  %v1769_v27 = vpop.permute.xlu1 %1768  ;;  %v6089_v13 = vpop.f32.mrf.mxu2  ;;  %v1277_v32 = vsel %vm1250_vm7, %v5862_v45, %v6049_v43  ;;  %v1261_v45 = vsel %vm1250_vm7, %v5891_v17, %v5953_v23 }
 0x37a   : > { %v6079_v48 = vpop.permute.xlu0 %1639  ;;  %v1808_v34 = vsel %vm1782_vm3, %v5894_v29, %v1769_v27  ;;  %v1809_v25 = vsel %vm1782_vm3, %v1769_v27, %v5980_v61  ;;  %v6098_v29 = vld [vmem:[%s4466_s15] sm:$0xff]  ;;  %v3934_v27 = vmov 0  }
 0x37b   : > { %v1677_v26 = vsel %vm1649_vm1, %v5927_v41, %v6079_v48  ;;  %2473 = vmatpush.bf16.msrb.mxu0 %v1808_v34  ;;  %2530 = vmatpush.bf16.msra.mxu2 %v1809_v25  ;;  %v6102_v41 = vpop.f32.mrf.mxu0 }
 0x37c   : > { %2494 = vmatmul.bf16.vlgmr.msrb.gmra.mxu1 %v5120_v49  ;;  %7301 = vst [vmem:[#allocation80_spill] sm:$0xff] %v6102_v41  ;;  %3753 = vset.pattern.permute.xlu1 %v3934_v27 }
 0x37d   : > { %2511 = vmatpush.bf16.msrb.mxu3 %v1277_v32  ;;  %2562 = vmatpush.bf16.msra.mxu1 %v1677_v26  ;;  %v6111_v25 = vpop.f32.mrf.mxu1 }
 0x37e   : > { %1613 = vrot.lane.b32.xlu2 %v6098_v29, %s3929_s26  ;;  %7302 = vst [vmem:[#allocation81_spill] sm:$0xff] %v6111_v25  ;;  %3752 = vset.pattern.permute.xlu0 %v3934_v27 }
 0x37f   : > { %v6113_v34 = vpop.permute.xlu2 %1738  ;;  %3751 = vset.pattern.permute.xlu2 %v3934_v27 }
 0x380   : > { %1778 = vrot.lane.b32.xlu1 %v7279_v14, %s3930_s27  ;;  %1776 = vrot.lane.b32.xlu0 %v7259_v15, %s3930_s27 }
 0x381   : > { %2512 = vmatpush.bf16.msrb.mxu3 %v1261_v45  ;;  %v1735_v26 = vpop.permute.xlu1 %1734  ;;  %v6124_v14 = vpop.f32.mrf.mxu2 }
 0x382   : > { %v6115_v32 = vpop.permute.xlu0 %1605  ;;  %v1792_v52 = vsel %vm1782_vm3, %v5829_v40, %v1735_v26  ;;  %v1793_v41 = vsel %vm1782_vm3, %v1735_v26, %v6014_v53  ;;  %7303 = vst [vmem:[#allocation82_spill] sm:$0xff] %v6124_v14  ;;  %v6126_v45 = vpop.f32.mrf.mxu3  ;;  %v1544_v40 = vsel %vm1516_vm5, %v6019_v0, %v6045_v28 }
 0x383   : > { %v1661_v17 = vsel %vm1649_vm1, %v5984_v5, %v6115_v32  ;;  %2474 = vmatpush.bf16.msrb.mxu0 %v1792_v52  ;;  %2531 = vmatpush.bf16.msra.mxu2 %v1793_v41  ;;  %7304 = vst [vmem:[#allocation83_spill] sm:$0xff] %v6126_v45  ;;  %v6144_v41 = vpop.f32.mrf.mxu0 }
 0x384   : > { %2563 = vmatpush.bf16.msra.mxu1 %v1661_v17  ;;  %2513 = vmatmul.bf16.vlgmr.msrb.gmra.mxu3 %v5100_v56  ;;  %7306 = vst [vmem:[#allocation85_spill] sm:$0xff] %v6144_v41 }
 0x385   : > { %v6140_v5 = vpop.f32.mrf.mxu1 }
 0x386   : > { %1115 = vrot.lane.b32.xlu2 %v6062_v39, %s3928_s28  ;;  %3493 = vmatmul.msk.bf16.vlgmr.msrb.gmra.mxu0 %vm1909_vm8, %v5067_v21  ;;  %7305 = vst [vmem:[#allocation84_spill] sm:$0xff] %v6140_v5 }
 0x387   : > { %v6142_v52 = vpop.permute.xlu2 %1641  ;;  %3495 = vmatmul.msk.bf16.vlgmr.msra.gmra.mxu2 %vm1909_vm8, %v5067_v21 }
 0x388   : > { %1744 = vrot.lane.b32.xlu1 %v7284_v20, %s3930_s27  ;;  %1742 = vrot.lane.b32.xlu0 %v7263_v24, %s3930_s27  ;;  %v7310_v20 = vld [vmem:[#allocation69_spill] sm:$0xff] }
 0x389   : > { %2564 = vmatpush.bf16.msra.mxu1 %v1544_v40  ;;  %v6146_v27 = vpop.permute.xlu1 %1109  ;;  %v6154_v0 = vpop.f32.mrf.mxu2 }
 0x38a   : > { %v1108_v26 = vpop.permute.xlu0 %1107  ;;  %7307 = vst [vmem:[#allocation86_spill] sm:$0xff] %v6154_v0  ;;  %v6156_v40 = vpop.f32.mrf.mxu3 }
 0x38b   : > { %v1145_v17 = vsel %vm1117_vm0, %v5955_v55, %v1108_v26  ;;  %v1146_v14 = vsel %vm1117_vm0, %v1108_v26, %v6146_v27  ;;  %7308 = vst [vmem:[#allocation87_spill] sm:$0xff] %v6156_v40  ;;  %v7309_v55 = vld [vmem:[#allocation62_spill] sm:$0xff]  ;;  %v6182_v41 = vpop.f32.mrf.mxu0 }
 0x38c   : > { %2543 = vmatpush.bf16.msra.mxu0 %v1145_v17  ;;  %2600 = vmatpush.bf16.msrb.mxu2 %v1146_v14  ;;  %v1129_v26 = vsel %vm1117_vm0, %v7286_v42, %v7309_v55  ;;  %v1130_v14 = vsel %vm1117_vm0, %v7309_v55, %v7310_v20  ;;  %7311 = vst [vmem:[#allocation62_spill] sm:$0xff] %v6182_v41  ;;  %v7313_v40 = vld [vmem:[#allocation58_spill] sm:$0xff] }
 0x38d   : > { %2499 = vmatmul.bf16.gmra.mxu1 %v5176_v4  ;;  %v6171_v17 = vpop.f32.mrf.mxu1  ;;  %v1012_v55 = vsel %vm984_vm2, %v7289_v36, %v7313_v40  ;;  %v7315_v36 = vld [vmem:[#allocation47_spill] sm:$0xff] }
 0x38e   : > { %1381 = vrot.lane.b32.xlu2 %v6062_v39, %s3932_s25 }
 0x38f   : > { %v6173_v25 = vpop.permute.xlu2 %1609 }
 0x390   : > { %1480 = vrot.lane.b32.xlu1 %v6098_v29, %s3931_s18  ;;  %1514 = vrot.lane.b32.xlu0 %v6062_v39, %s3931_s18 }
 0x391   : > { %2544 = vmatpush.bf16.msra.mxu0 %v1129_v26  ;;  %2601 = vmatpush.bf16.msrb.mxu2 %v1130_v14  ;;  %v6175_v0 = vpop.permute.xlu1 %1373  ;;  %v6184_v42 = vpop.f32.mrf.mxu2  ;;  %v7314_v26 = vld [vmem:[#allocation57_spill] sm:$0xff] }
 0x392   : > { %v6177_v45 = vpop.permute.xlu0 %1472  ;;  %7312 = vst [vmem:[#allocation69_spill] sm:$0xff] %v6184_v42  ;;  %v1013_v14 = vsel %vm984_vm2, %v7313_v40, %v7314_v26  ;;  %v6192_v63 = vpop.f32.mrf.mxu3 }
 0x393   : > { %v1528_v5 = vsel %vm1516_vm5, %v6017_v38, %v6177_v45  ;;  %v996_v38 = vsel %vm984_vm2, %v7292_v7, %v7315_v36  ;;  %v6241_v30 = vpop.f32.mrf.mxu0 }
 0x394   : > { %2565 = vmatpush.bf16.msra.mxu1 %v1528_v5  ;;  %2518 = vmatmul.bf16.gmra.mxu3 %v5214_v6  ;;  %v1411_v5 = vsel %vm1383_vm6, %v5925_v2, %v6175_v0 }
 0x395   : > { %2545 = vmatpush.bf16.msra.mxu0 %v1012_v55  ;;  %2602 = vmatpush.bf16.msrb.mxu2 %v1013_v14  ;;  %v6209_v40 = vpop.f32.mrf.mxu1  ;;  %v7317_v55 = vld [vmem:[#allocation42_spill] sm:$0xff] }
 0x396   : > { %1248 = vrot.lane.b32.xlu2 %v6062_v39, %s3933_s24  ;;  %3494 = vmatmul.msk.bf16.gmra.mxu0 %vm1909_vm8, %v5110_v16  ;;  %7316 = vst [vmem:[#allocation58_spill] sm:$0xff] %v6209_v40  ;;  %v997_v14 = vsel %vm984_vm2, %v7315_v36, %v7317_v55 }
 0x397   : > { %3496 = vmatmul.msk.bf16.gmra.mxu2 %vm1909_vm8, %v5110_v16  ;;  %7322 = vst [vmem:[#allocation42_spill] sm:$0xff] %v6241_v30  ;;  %v7333_v30 = vld [vmem:[#allocation38_spill] sm:$0xff] }
 0x398   : > { %1780 = vrot.lane.b32.xlu1 %v6062_v39, %s3930_s27  ;;  %1347 = vrot.lane.b32.xlu0 %v6098_v29, %s3932_s25  ;;  %v6214_v39 = vpop.permute.xlu2 %1474 }
 0x399   : > { %2546 = vmatpush.bf16.msra.mxu0 %v996_v38  ;;  %2566 = vmatpush.bf16.msra.mxu1 %v1411_v5  ;;  %v6216_v42 = vpop.permute.xlu1 %1240  ;;  %v6225_v2 = vpop.f32.mrf.mxu2  ;;  %v7319_v38 = vld [vmem:[#allocation31_spill] sm:$0xff]  ;;  %v1395_v5 = vsel %vm1383_vm6, %v6051_v50, %v6076_v62 }
 0x39a   : > { %2603 = vmatpush.bf16.msrb.mxu2 %v997_v14  ;;  %v6218_v41 = vpop.permute.xlu0 %1772  ;;  %7318 = vst [vmem:[#allocation57_spill] sm:$0xff] %v6225_v2  ;;  %v879_v36 = vsel %vm851_vm4, %v7293_v8, %v7319_v38  ;;  %v1855_v14 = vld [vmem:[%s7049_s1] sm:$0xff]  ;;  %v6236_v40 = vpop.f32.mrf.mxu3 }
 0x39b   : > { %v1810_v7 = vsel %vm1782_vm3, %v5980_v61, %v6218_v41  ;;  %7320 = vst [vmem:[#allocation47_spill] sm:$0xff] %v6236_v40  ;;  %v7321_v61 = vld [vmem:[#allocation39_spill] sm:$0xff] }
 0x39c   : > { %2587 = vmatpush.bf16.msra.mxu3 %v1810_v7  ;;  %v880_v2 = vsel %vm851_vm4, %v7319_v38, %v7321_v61  ;;  %v7323_v50 = vld [vmem:[#allocation27_spill] sm:$0xff]  ;;  %v1278_v7 = vsel %vm1250_vm7, %v6049_v43, %v6216_v42  ;;  %v7324_v38 = vld [vmem:[#allocation26_spill] sm:$0xff] }
 0x39d   : > { %2547 = vmatpush.bf16.msra.mxu0 %v879_v36  ;;  %2567 = vmatpush.bf16.msra.mxu1 %v1395_v5  ;;  %v863_v8 = vsel %vm851_vm4, %v7296_v31, %v7323_v50  ;;  %v864_v36 = vsel %vm851_vm4, %v7323_v50, %v7324_v38  ;;  %v1858_v50 = vld [vmem:[%s7049_s1 + $0x18] sm:$0xff] }
 0x39e   : > { %2604 = vmatpush.bf16.msrb.mxu2 %v880_v2  ;;  %1861 = vperm.xlu2 %3751, %v1855_v14   ;;  %v1794_v2 = vsel %vm1782_vm3, %v6014_v53, %v6113_v34 }
 0x3a0   : > { %1214 = vrot.lane.b32.xlu1 %v6098_v29, %s3933_s24  ;;  %1746 = vrot.lane.b32.xlu0 %v6098_v29, %s3930_s27  ;;  %v6259_v5 = vpop.permute.xlu2 %1377  ;;  %v6261_v29 = vpop.f32.mrf.mxu1 }
 0x3a1   : > { %2548 = vmatpush.bf16.msra.mxu0 %v863_v8  ;;  %2568 = vmatpush.bf16.msra.mxu1 %v1278_v7  ;;  %7325 = vst [vmem:[#allocation31_spill] sm:$0xff] %v6261_v29  ;;  %v6273_v8 = vpop.f32.mrf.mxu2  ;;  %v1857_v7 = vld [vmem:[%s7049_s1 + $0x10] sm:$0xff] }
 0x3a2   : > { %2588 = vmatpush.bf16.msra.mxu3 %v1794_v2  ;;  %2605 = vmatpush.bf16.msrb.mxu2 %v864_v36  ;;  %v6263_v31 = vpop.permute.xlu1 %1206  ;;  %v6265_v14 = vpop.permute.xlu0 %1111  ;;  %7326 = vst [vmem:[#allocation39_spill] sm:$0xff] %v6273_v8 }
 0x3a3   : > { %v1147_v43 = vsel %vm1117_vm0, %v6146_v27, %v6265_v14  ;;  %v1262_v53 = vsel %vm1250_vm7, %v5953_v23, %v6263_v31  ;;  %v1856_v27 = vld [vmem:[%s7049_s1 + $0x8] sm:$0xff]  ;;  %v6285_v2 = vpop.f32.mrf.mxu3  ;;  %v6290_v23 = vpop.f32.mrf.mxu0 }
 0x3a4   : > { %7327 = vst [vmem:[#allocation27_spill] sm:$0xff] %v6285_v2 }
 0x3a5   : > { %2549 = vmatpush.bf16.msra.mxu0 %v7223_v18  ;;  %2569 = vmatpush.bf16.msra.mxu1 %v1262_v53  ;;  %7328 = vst [vmem:[#allocation26_spill] sm:$0xff] %v6290_v23  ;;  %v7329_v18 = vld [vmem:[#allocation68_spill] sm:$0xff] }
 0x3a6   : > { %2657 = vmatpush.bf16.msrb.mxu3 %v1147_v43  ;;  %2606 = vmatpush.bf16.msrb.mxu2 %v7232_v46  ;;  %v1131_v36 = vsel %vm1117_vm0, %v7310_v20, %v7329_v18  ;;  %v1678_v43 = vsel %vm1649_vm1, %v6079_v48, %v6142_v52 }
 0x3a7   : > { %3497 = vmatmul.msk.bf16.vlgmr.msra.gmra.mxu3 %vm1909_vm8, %v5067_v21  ;;  %1876 = vperm.xlu2 %3751, %v1858_v50  }
 0x3a8   : > { %1871 = vperm.xlu1 %3753, %v1857_v7   ;;  %1866 = vperm.xlu0 %3752, %v1856_v27   ;;  %v6299_v46 = vpop.permute.xlu2 %1343  ;;  %v6310_v48 = vpop.f32.mrf.mxu1 }
 0x3a9   : > { %2550 = vmatpush.bf16.msra.mxu0 %v7226_v54  ;;  %2570 = vmatmul.bf16.vlgmr.msra.gmra.mxu1 %v5100_v56  ;;  %v7330_v54 = vld [vmem:[#allocation53_spill] sm:$0xff] }
 0x3aa   : > { %2658 = vmatpush.bf16.msrb.mxu3 %v1131_v36  ;;  %v1608_v53 = vpop.permute.xlu1 %1607  ;;  %v6301_v50 = vpop.permute.xlu0 %1643  ;;  %2607 = vmatpush.bf16.msrb.mxu2 %v7235_v37  ;;  %v1014_v27 = vsel %vm984_vm2, %v7314_v26, %v7330_v54  ;;  %v7332_v36 = vld [vmem:[#allocation51_spill] sm:$0xff] }
 0x3ab   : > { %v1679_v7 = vsel %vm1649_vm1, %v6142_v52, %v6301_v50  ;;  %v1662_v20 = vsel %vm1649_vm1, %v6115_v32, %v1608_v53  ;;  %v1663_v37 = vsel %vm1649_vm1, %v1608_v53, %v6173_v25  ;;  %v6319_v52 = vpop.f32.mrf.mxu2  ;;  %v6321_v32 = vpop.f32.mrf.mxu3 }
 0x3ac   : > { %2551 = vmatmul.bf16.vlgmr.msra.gmra.mxu0 %v5120_v49  ;;  %7331 = vst [vmem:[#allocation68_spill] sm:$0xff] %v6319_v52 }
 0x3ad   : > { %2619 = vmatpush.bf16.msrb.mxu0 %v1678_v43  ;;  %2608 = vmatmul.bf16.vlgmr.msrb.gmra.mxu2 %v5120_v49  ;;  %v998_v43 = vsel %vm984_vm2, %v7317_v55, %v7332_v36  ;;  %v881_v55 = vsel %vm851_vm4, %v7321_v61, %v7333_v30 }
 0x3ae   : > { %2676 = vmatpush.bf16.msra.mxu2 %v1679_v7  ;;  %2659 = vmatpush.bf16.msrb.mxu3 %v1014_v27  ;;  %v6328_v7 = vpop.f32.mrf.mxu0 }
 0x3b0   : > { %v6326_v26 = vpop.permute.xlu2 %1113 }
 0x3b1   : > { %2620 = vmatpush.bf16.msrb.mxu0 %v1662_v20 }
 0x3b2   : > { %2677 = vmatpush.bf16.msra.mxu2 %v1663_v37  ;;  %2660 = vmatpush.bf16.msrb.mxu3 %v998_v43  ;;  %v6330_v27 = vpop.permute.xlu1 %1510  ;;  %v1509_v53 = vpop.permute.xlu0 %1508  ;;  %v1529_v43 = vsel %vm1516_vm5, %v6177_v45, %v6214_v39 }
 0x3b3   : > { %v1545_v8 = vsel %vm1516_vm5, %v6045_v28, %v1509_v53  ;;  %v1546_v20 = vsel %vm1516_vm5, %v1509_v53, %v6330_v27  ;;  %v6339_v37 = vpop.f32.mrf.mxu1  ;;  %v6346_v28 = vpop.f32.mrf.mxu2  ;;  %v7334_v53 = vld [vmem:[#allocation20_spill] sm:$0xff] }
 0x3b5   : > { %2621 = vmatpush.bf16.msrb.mxu0 %v1545_v8  ;;  %v865_v8 = vsel %vm851_vm4, %v7324_v38, %v7334_v53 }
 0x3b6   : > { %2678 = vmatpush.bf16.msra.mxu2 %v1546_v20  ;;  %2661 = vmatpush.bf16.msrb.mxu3 %v881_v55  ;;  %v6353_v20 = vpop.f32.mrf.mxu3 }
 0x3b7   : > { %3498 = vmatmul.msk.bf16.gmra.mxu3 %vm1909_vm8, %v5110_v16 }
 0x3b8   : > { %v6351_v61 = vpop.permute.xlu2 %1611 }
 0x3b9   : > { %2622 = vmatpush.bf16.msrb.mxu0 %v1529_v43  ;;  %v6362_v43 = vpop.f32.mrf.mxu0  ;;  %2575 = vmatmul.bf16.gmra.mxu1 %v5214_v6 }
 0x3ba   : > { %2662 = vmatpush.bf16.msrb.mxu3 %v865_v8  ;;  %v1376_v55 = vpop.permute.xlu1 %1375  ;;  %v6355_v40 = vpop.permute.xlu0 %1476 }
 0x3bb   : > { %v1412_v52 = vsel %vm1383_vm6, %v6175_v0, %v1376_v55  ;;  %v1530_v45 = vsel %vm1516_vm5, %v6214_v39, %v6355_v40  ;;  %v1413_v38 = vsel %vm1383_vm6, %v1376_v55, %v6259_v5  ;;  %v6370_v0 = vpop.f32.mrf.mxu1  ;;  %v6375_v39 = vpop.f32.mrf.mxu2 }
 0x3bc   : > { %2679 = vmatpush.bf16.msra.mxu2 %v1530_v45  ;;  %2556 = vmatmul.bf16.gmra.mxu0 %v5176_v4  ;;  %7335 = vst [vmem:[#allocation53_spill] sm:$0xff] %v6370_v0 }
 0x3bd   : > { %2623 = vmatpush.bf16.msrb.mxu0 %v1412_v52  ;;  %2613 = vmatmul.bf16.gmra.mxu2 %v5176_v4 }
 0x3be   : > { %2663 = vmatpush.bf16.msrb.mxu3 %v7238_v10 }
 0x3c0   : > { %2680 = vmatpush.bf16.msra.mxu2 %v1413_v38  ;;  %v6372_v8 = vpop.permute.xlu2 %1512  ;;  %v6386_v38 = vpop.f32.mrf.mxu3 }
 0x3c1   : > { %7336 = vst [vmem:[#allocation51_spill] sm:$0xff] %v6386_v38  ;;  %v1664_v38 = vsel %vm1649_vm1, %v6173_v25, %v6351_v61 }
 0x3c2   : > { %2664 = vmatpush.bf16.msrb.mxu3 %v7265_v35  ;;  %v1342_v52 = vpop.permute.xlu1 %1341  ;;  %v6377_v45 = vpop.permute.xlu0 %1774 }
 0x3c3   : > { %v1811_v10 = vsel %vm1782_vm3, %v6218_v41, %v6377_v45  ;;  %v1396_v55 = vsel %vm1383_vm6, %v6076_v62, %v1342_v52  ;;  %v1397_v0 = vsel %vm1383_vm6, %v1342_v52, %v6299_v46  ;;  %v6388_v35 = vpop.f32.mrf.mxu0  ;;  %v6393_v2 = vpop.f32.mrf.mxu1 }
 0x3c4   : > { %2624 = vmatpush.bf16.msrb.mxu0 %v1396_v55  ;;  %2644 = vmatpush.bf16.msrb.mxu1 %v1811_v10  ;;  %7337 = vst [vmem:[#allocation38_spill] sm:$0xff] %v6388_v35  ;;  %v6405_v10 = vpop.f32.mrf.mxu2 }
 0x3c5   : > { %2681 = vmatpush.bf16.msra.mxu2 %v1397_v0  ;;  %7338 = vst [vmem:[#allocation20_spill] sm:$0xff] %v6393_v2  ;;  %v1148_v0 = vsel %vm1117_vm0, %v6265_v14, %v6326_v26 }
 0x3c6   : > { %7339 = vst [vmem:[#allocation88_spill] sm:$0xff] %v6405_v10 }
 0x3c7   : > { %2665 = vmatmul.bf16.vlgmr.msrb.gmra.mxu3 %v5120_v49 }
 0x3c8   : > { %v6391_v23 = vpop.permute.xlu2 %1345  ;;  %v6407_v55 = vpop.f32.mrf.mxu3 }
 0x3c9   : > { %7340 = vst [vmem:[#allocation89_spill] sm:$0xff] %v6407_v55  ;;  %v7343_v55 = vld [vmem:[#allocation61_spill] sm:$0xff] }
 0x3ca   : > { %v6395_v41 = vpop.permute.xlu1 %1740  ;;  %v1646_v29 = vpop.permute.xlu0 %1645 }
 0x3cb   : > { %v1680_v62 = vsel %vm1649_vm1, %v6301_v50, %v1646_v29  ;;  %v1795_v52 = vsel %vm1782_vm3, %v6113_v34, %v6395_v41  ;;  %v6412_v50 = vpop.f32.mrf.mxu0  ;;  %v7342_v34 = vld [vmem:[#allocation63_spill] sm:$0xff]  ;;  %v6422_v25 = vpop.f32.mrf.mxu1 }
 0x3cc   : > { %2645 = vmatpush.bf16.msrb.mxu1 %v1795_v52  ;;  %2733 = vmatpush.bf16.msra.mxu3 %v1680_v62  ;;  %7341 = vst [vmem:[#allocation90_spill] sm:$0xff] %v6412_v50  ;;  %v1132_v14 = vsel %vm1117_vm0, %v7329_v18, %v7342_v34  ;;  %v1015_v18 = vsel %vm984_vm2, %v7330_v54, %v7343_v55 }
 0x3cf   : > { %3499 = vmatmul.msk.bf16.vlgmr.msrb.gmra.mxu1 %vm1909_vm8, %v5067_v21 }
 0x3d0   : > { %2714 = vmatpush.bf16.msra.mxu1 %v1148_v0  ;;  %2734 = vmatpush.bf16.msra.mxu3 %v1664_v38  ;;  %v1648_v62 = vpop.permute.xlu2 %1647  ;;  %v1547_v38 = vsel %vm1516_vm5, %v6330_v27, %v6372_v8 }
 0x3d2   : > { %v1245_v52 = vpop.permute.xlu1 %1244  ;;  %v1243_v0 = vpop.permute.xlu0 %1242 }
 0x3d3   : > { %v1279_v10 = vsel %vm1250_vm7, %v6216_v42, %v1243_v0  ;;  %v1280_v35 = vsel %vm1250_vm7, %v1243_v0, %v1245_v52  ;;  %v6433_v42 = vpop.f32.mrf.mxu3  ;;  %v7346_v0 = vld [vmem:[#allocation50_spill] sm:$0xff]  ;;  %v6438_v2 = vpop.f32.mrf.mxu0 }
 0x3d4   : > { %2715 = vmatpush.bf16.msra.mxu1 %v1132_v14  ;;  %2625 = vmatpush.bf16.msrb.mxu0 %v1279_v10  ;;  %v6431_v14 = vpop.f32.mrf.mxu2  ;;  %7345 = vst [vmem:[#allocation61_spill] sm:$0xff] %v6433_v42  ;;  %v6446_v42 = vpop.f32.mrf.mxu1 }
 0x3d5   : > { %2682 = vmatpush.bf16.msra.mxu2 %v1280_v35  ;;  %2735 = vmatpush.bf16.msra.mxu3 %v1547_v38  ;;  %7344 = vst [vmem:[#allocation63_spill] sm:$0xff] %v6431_v14  ;;  %v999_v35 = vsel %vm984_vm2, %v7332_v36, %v7346_v0  ;;  %v7348_v36 = vld [vmem:[#allocation30_spill] sm:$0xff] }
 0x3d7   : > { %2670 = vmatmul.bf16.gmra.mxu3 %v5176_v4 }
 0x3d8   : > { %2716 = vmatpush.bf16.msra.mxu1 %v1015_v18  ;;  %v1614_v10 = vpop.permute.xlu2 %1613  ;;  %v7347_v18 = vld [vmem:[#allocation32_spill] sm:$0xff] }
 0x3d9   : > { %v882_v14 = vsel %vm851_vm4, %v7333_v30, %v7347_v18 }
 0x3da   : > { %v1211_v27 = vpop.permute.xlu1 %1210  ;;  %v1209_v50 = vpop.permute.xlu0 %1208 }
 0x3db   : > { %v1263_v54 = vsel %vm1250_vm7, %v6263_v31, %v1209_v50  ;;  %v1264_v38 = vsel %vm1250_vm7, %v1209_v50, %v1211_v27 }
 0x3dc   : > { %2717 = vmatpush.bf16.msra.mxu1 %v999_v35  ;;  %2626 = vmatpush.bf16.msrb.mxu0 %v1263_v54  ;;  %v866_v35 = vsel %vm851_vm4, %v7334_v53, %v7348_v36  ;;  %v6455_v31 = vpop.f32.mrf.mxu2  ;;  %v6457_v54 = vpop.f32.mrf.mxu3  ;;  %v1681_v36 = vsel %vm1649_vm1, %v1646_v29, %v1648_v62 }
 0x3dd   : > { %2683 = vmatpush.bf16.msra.mxu2 %v1264_v38 }
 0x3df   : > { %2627 = vmatmul.bf16.vlgmr.msrb.gmra.mxu0 %v5100_v56  ;;  %3500 = vmatmul.msk.bf16.gmra.mxu1 %vm1909_vm8, %v5110_v16 }
 0x3e0   : > { %2718 = vmatpush.bf16.msra.mxu1 %v882_v14  ;;  %2684 = vmatmul.bf16.vlgmr.msra.gmra.mxu2 %v5100_v56  ;;  %v1116_v50 = vpop.permute.xlu2 %1115 }
 0x3e2   : > { %v6459_v30 = vpop.permute.xlu1 %1379  ;;  %v6461_v14 = vpop.permute.xlu0 %1478 }
 0x3e3   : > { %v1531_v38 = vsel %vm1516_vm5, %v6355_v40, %v6461_v14  ;;  %v6466_v18 = vpop.f32.mrf.mxu0  ;;  %v1414_v53 = vsel %vm1383_vm6, %v6259_v5, %v6459_v30 }
 0x3e4   : > { %2719 = vmatpush.bf16.msra.mxu1 %v866_v35  ;;  %2736 = vmatpush.bf16.msra.mxu3 %v1531_v38  ;;  %v6472_v35 = vpop.f32.mrf.mxu1  ;;  %v6485_v38 = vpop.f32.mrf.mxu3 }
 0x3e5   : > { %7349 = vst [vmem:[#allocation91_spill] sm:$0xff] %v6472_v35 }
 0x3e6   : > { %7350 = vst [vmem:[#allocation92_spill] sm:$0xff] %v6485_v38 }
 0x3e8   : > { %2720 = vmatpush.bf16.msra.mxu1 %v7259_v15  ;;  %2737 = vmatpush.bf16.msra.mxu3 %v1414_v53  ;;  %v6476_v16 = vpop.permute.xlu2 %1381  ;;  %v1398_v15 = vsel %vm1383_vm6, %v6299_v46, %v6391_v23 }
 0x3e9   : > { %v6489_v53 = vpop.f32.mrf.mxu2 }
 0x3ea   : > { %v6478_v0 = vpop.permute.xlu1 %1212  ;;  %v6480_v40 = vpop.permute.xlu0 %1246 }
 0x3eb   : > { %v6487_v5 = vpop.f32.mrf.mxu0  ;;  %v1281_v29 = vsel %vm1250_vm7, %v1245_v52, %v6480_v40  ;;  %v1265_v52 = vsel %vm1250_vm7, %v1211_v27, %v6478_v0 }
 0x3ec   : > { %2721 = vmatpush.bf16.msra.mxu1 %v7263_v24  ;;  %2738 = vmatpush.bf16.msra.mxu3 %v1398_v15  ;;  %7351 = vst [vmem:[#allocation93_spill] sm:$0xff] %v6487_v5  ;;  %v1665_v24 = vsel %vm1649_vm1, %v6351_v61, %v1614_v10  ;;  %v6500_v62 = vpop.f32.mrf.mxu1 }
 0x3ed   : > { %7352 = vst [vmem:[#allocation94_spill] sm:$0xff] %v6500_v62 }
 0x3ef   : > { %2632 = vmatmul.bf16.gmra.mxu0 %v5214_v6  ;;  %2722 = vmatmul.bf16.vlgmr.msra.gmra.mxu1 %v5120_v49 }
 0x3f0   : > { %2790 = vmatpush.bf16.msrb.mxu1 %v1681_v36  ;;  %2689 = vmatmul.bf16.gmra.mxu2 %v5214_v6  ;;  %v6498_v46 = vpop.permute.xlu2 %1248 }
 0x3f1   : > { %2739 = vmatpush.bf16.msra.mxu3 %v1281_v29  ;;  %v6514_v35 = vpop.f32.mrf.mxu2 }
 0x3f2   : > { %v6502_v36 = vpop.permute.xlu1 %1778  ;;  %v1777_v15 = vpop.permute.xlu0 %1776  ;;  %7354 = vst [vmem:[#allocation96_spill] sm:$0xff] %v6514_v35 }
 0x3f3   : > { %v1812_v61 = vsel %vm1782_vm3, %v6377_v45, %v1777_v15  ;;  %v1813_v10 = vsel %vm1782_vm3, %v1777_v15, %v6502_v36  ;;  %v6512_v29 = vpop.f32.mrf.mxu0  ;;  %v1149_v45 = vsel %vm1117_vm0, %v6326_v26, %v1116_v50  ;;  %v7355_v15 = vld [vmem:[#allocation70_spill] sm:$0xff] }
 0x3f4   : > { %2791 = vmatpush.bf16.msrb.mxu1 %v1665_v24  ;;  %v6510_v24 = vpop.f32.mrf.mxu3  ;;  %2701 = vmatpush.bf16.msra.mxu0 %v1812_v61  ;;  %v6524_v27 = vsel %vm1117_vm0, %v7342_v34, %v7355_v15 }
 0x3f5   : > { %7353 = vst [vmem:[#allocation95_spill] sm:$0xff] %v6510_v24  ;;  %2740 = vmatpush.bf16.msra.mxu3 %v1265_v52  ;;  %2758 = vmatpush.bf16.msrb.mxu2 %v1813_v10 }
 0x3f8   : > { %2741 = vmatmul.bf16.vlgmr.msra.gmra.mxu3 %v5100_v56  ;;  %v6519_v5 = vpop.permute.xlu2 %1861 }
 0x3f9   : > { %v1926_v52 = vadd.f32 %v5595_v3, %v6519_v5  ;;  %v1983_v10 = vadd.f32 %v5647_v60, %v6519_v5  ;;  %v2040_v24 = vadd.f32 %v5781_v9, %v6519_v5  ;;  %v2097_v26 = vadd.f32 %v5873_v12, %v6519_v5 }
 0x3fa   : > { %v6526_v61 = vpop.permute.xlu1 %1744  ;;  %v1743_v50 = vpop.permute.xlu0 %1742  ;;  %v2154_v35 = vadd.f32 %v5939_v58, %v6519_v5  ;;  %v2211_v34 = vadd.f32 %v6056_v1, %v6519_v5  ;;  %v2268_v15 = vadd.f32 %v6171_v17, %v6519_v5  ;;  %v2325_v3 = vadd.f32 %v6362_v43, %v6519_v5 }
 0x3fb   : > { %v1945_v60 = vadd.f32 %v5630_v22, %v1926_v52  ;;  %v2002_v9 = vadd.f32 %v5651_v57, %v1983_v10  ;;  %v2059_v12 = vadd.f32 %v5803_v59, %v2040_v24  ;;  %v2116_v58 = vadd.f32 %v5915_v47, %v2097_v26  ;;  %v6552_v38 = vpop.f32.mrf.mxu0  ;;  %v6554_v1 = vpop.f32.mrf.mxu1  ;;  %v7356_v52 = vld [vmem:[#allocation35_spill] sm:$0xff] }
 0x3fc   : > { %v2173_v17 = vadd.f32 %v6024_v11, %v2154_v35  ;;  %v2230_v49 = vadd.f32 %v6089_v13, %v2211_v34  ;;  %v2287_v43 = vadd.f32 %v6192_v63, %v2268_v15  ;;  %v2344_v62 = vadd.f32 %v6339_v37, %v2325_v3  ;;  %v6560_v56 = vpop.f32.mrf.mxu2  ;;  %v6566_v24 = vpop.f32.mrf.mxu3  ;;  %v7357_v35 = vld [vmem:[#allocation62_spill] sm:$0xff]  ;;  %v7358_v63 = vld [vmem:[#allocation57_spill] sm:$0xff] }
 0x3fd   : > { %v1964_v22 = vadd.f32 %v5544_v33, %v1945_v60  ;;  %v2021_v57 = vadd.f32 %v5731_v51, %v2002_v9  ;;  %v2078_v59 = vadd.f32 %v5811_v44, %v2059_v12  ;;  %v2135_v47 = vadd.f32 %v5937_v19, %v2116_v58 }
 0x3fe   : > { %v2192_v11 = vadd.f32 %v7356_v52, %v2173_v17  ;;  %v2249_v13 = vadd.f32 %v7357_v35, %v2230_v49  ;;  %v2306_v10 = vadd.f32 %v7358_v63, %v2287_v43  ;;  %v2363_v37 = vadd.f32 %v6353_v20, %v2344_v62  ;;  %v7360_v17 = vld [vmem:[#allocation17_spill] sm:$0xff] }
 0x3ff   : > { %v2382_v33 = vadd.f32 %v6375_v39, %v6519_v5  ;;  %v2828_v26 = vmax.f32 %v1964_v22, 0.0  ;;  %v2829_v51 = vmax.f32 %v2021_v57, 0.0  ;;  %v2830_v34 = vmax.f32 %v2078_v59, 0.0  ;;  %2727 = vmatmul.bf16.gmra.mxu1 %v5176_v4  ;;  %v7361_v22 = vld [vmem:[#allocation16_spill] sm:$0xff] }
 0x400   : > { %v2831_v44 = vmax.f32 %v2135_v47, 0.0  ;;  %v2832_v19 = vmax.f32 %v2192_v11, 0.0  ;;  %v2833_v15 = vmax.f32 %v2249_v13, 0.0  ;;  %v2834_v3 = vmax.f32 %v2306_v10, 0.0  ;;  %v7363_v47 = vld [vmem:[#allocation19_spill] sm:$0xff] }
 0x401   : > { %v6575_v60 = vpop.permute.xlu2 %1876  ;;  %v2401_v49 = vadd.f32 %v6466_v18, %v2382_v33  ;;  %v2835_v9 = vmax.f32 %v2363_v37, 0.0  ;;  %2892 = vst [vmem:[%s6579_s17] sm:$0xff] %v2828_v26  ;;  %v1796_v20 = vsel %vm1782_vm3, %v6395_v41, %v1743_v50  ;;  %v1797_v39 = vsel %vm1782_vm3, %v1743_v50, %v6526_v61  ;;  %v7359_v18 = vld [vmem:[#allocation7_spill] sm:$0xff]  ;;  %v7362_v50 = vld [vmem:[#allocation66_spill] sm:$0xff] }
 0x402   : > { %v6586_v62 = vpop.permute.xlu1 %1480  ;;  %v1515_v12 = vpop.permute.xlu0 %1514  ;;  %2893 = vst [vmem:[%s6579_s17 + $0x8] sm:$0xff] %v2829_v51  ;;  %2702 = vmatpush.bf16.msra.mxu0 %v1796_v20  ;;  %2759 = vmatpush.bf16.msrb.mxu2 %v1797_v39  ;;  %v1933_v58 = vadd.f32 %v7359_v18, %v6575_v60  ;;  %v1990_v43 = vadd.f32 %v7360_v17, %v6575_v60  ;;  %v7364_v13 = vld [vmem:[#allocation11_spill] sm:$0xff]  ;;  %v7369_v20 = vld [vmem:[#allocation85_spill] sm:$0xff]  ;;  %v7370_v18 = vld [vmem:[#allocation22_spill] sm:$0xff] }
 0x403   : > { %v2047_v41 = vadd.f32 %v7361_v22, %v6575_v60  ;;  %v2420_v57 = vadd.f32 %v6446_v42, %v2401_v49  ;;  %2894 = vst [vmem:[%s6579_s17 + $0x10] sm:$0xff] %v2830_v34  ;;  %v2104_v59 = vadd.f32 %v7362_v50, %v6575_v60  ;;  %v2161_v52 = vadd.f32 %v7363_v47, %v6575_v60  ;;  %v6601_v11 = vpop.f32.mrf.mxu0  ;;  %v2495_v35 = vpop.f32.mrf.mxu1  ;;  %v7365_v10 = vld [vmem:[#allocation59_spill] sm:$0xff]  ;;  %v7368_v34 = vld [vmem:[#allocation52_spill] sm:$0xff]  ;;  %v7371_v17 = vld [vmem:[#allocation45_spill] sm:$0xff] }
 0x404   : > { %2895 = vst [vmem:[%s6579_s17 + $0x18] sm:$0xff] %v2831_v44  ;;  %v1952_v63 = vadd.f32 %v7364_v13, %v1933_v58  ;;  %v2009_v37 = vadd.f32 %v7365_v10, %v1990_v43  ;;  %v7366_v42 = vld [vmem:[#allocation67_spill] sm:$0xff]  ;;  %v2275_v39 = vadd.f32 %v6310_v48, %v6575_v60  ;;  %v7372_v22 = vld [vmem:[#allocation9_spill] sm:$0xff]  ;;  %v6621_v50 = vpop.f32.mrf.mxu2  ;;  %v7375_v48 = vld [vmem:[#allocation84_spill] sm:$0xff]  ;;  %v2332_v10 = vadd.f32 %v6438_v2, %v6575_v60 }
 0x405   : > { %v2066_v33 = vadd.f32 %v7366_v42, %v2047_v41  ;;  %v2836_v51 = vmax.f32 %v2420_v57, 0.0  ;;  %2896 = vst [vmem:[%s6579_s17 + $0x20] sm:$0xff] %v2832_v19  ;;  %3501 = vmatmul.msk.bf16.vlgmr.msra.gmra.mxu0 %vm1909_vm8, %v5067_v21  ;;  %v2123_v49 = vadd.f32 %v7368_v34, %v2104_v59  ;;  %v2180_v44 = vadd.f32 %v7369_v20, %v2161_v52  ;;  %v7373_v57 = vld [vmem:[#allocation69_spill] sm:$0xff]  ;;  %v7374_v59 = vld [vmem:[#allocation48_spill] sm:$0xff] }
 0x406   : > { %2771 = vmatpush.bf16.msrb.mxu0 %v1149_v45  ;;  %3564 = vmatpush.bf16.msra.mxu2 %v1149_v45  ;;  %v7367_v45 = vld [vmem:[#allocation87_spill] sm:$0xff]  ;;  %2897 = vst [vmem:[%s6579_s17 + $0x28] sm:$0xff] %v2833_v15  ;;  %v1971_v58 = vadd.f32 %v7370_v18, %v1952_v63  ;;  %v2028_v43 = vadd.f32 %v7371_v17, %v2009_v37 }
 0x407   : > { %v2218_v26 = vadd.f32 %v7367_v45, %v6575_v60  ;;  %v2085_v41 = vadd.f32 %v7372_v22, %v2066_v33  ;;  %2898 = vst [vmem:[%s6579_s17 + $0x30] sm:$0xff] %v2834_v3  ;;  %v2142_v47 = vadd.f32 %v7374_v59, %v2123_v49  ;;  %v2199_v15 = vadd.f32 %v7375_v48, %v2180_v44  ;;  %v2514_v13 = vpop.f32.mrf.mxu3  ;;  %v7377_v49 = vld [vmem:[#allocation61_spill] sm:$0xff] }
 0x408   : > { %v2294_v52 = vadd.f32 %v6321_v32, %v2275_v39  ;;  %2899 = vst [vmem:[%s6579_s17 + $0x38] sm:$0xff] %v2835_v9  ;;  %v2876_v37 = vmax.f32 %v1971_v58, 0.0  ;;  %v2877_v3 = vmax.f32 %v2028_v43, 0.0  ;;  %3503 = vmatmul.msk.bf16.vlgmr.msrb.gmra.mxu2 %vm1909_vm8, %v5067_v21  ;;  %2746 = vmatmul.bf16.gmra.mxu3 %v5214_v6  ;;  %v7376_v9 = vld [vmem:[#allocation60_spill] sm:$0xff]  ;;  %v2351_v45 = vadd.f32 %v6422_v25, %v2332_v10  ;;  %v7378_v58 = vld [vmem:[#allocation43_spill] sm:$0xff]  ;;  %v7380_v59 = vld [vmem:[#allocation41_spill] sm:$0xff] }
 0x409   : > { %v2237_v19 = vadd.f32 %v7373_v57, %v2218_v26  ;;  %2900 = vst [vmem:[%s6579_s17 + $0x40] sm:$0xff] %v2836_v51  ;;  %v2878_v32 = vmax.f32 %v2085_v41, 0.0  ;;  %v2879_v42 = vmax.f32 %v2142_v47, 0.0  ;;  %v2880_v26 = vmax.f32 %v2199_v15, 0.0  ;;  %v7381_v47 = vld [vmem:[#allocation32_spill] sm:$0xff]  ;;  %v7384_v10 = vld [vmem:[#allocation30_spill] sm:$0xff] }
 0x40a   : > { %2772 = vmatpush.bf16.msrb.mxu0 %v6524_v27  ;;  %3565 = vmatpush.bf16.msra.mxu2 %v6524_v27  ;;  %v2313_v27 = vadd.f32 %v6346_v28, %v2294_v52  ;;  %v1781_v33 = vpop.permute.xlu1 %1780  ;;  %v1348_v2 = vpop.permute.xlu0 %1347  ;;  %2940 = vst [vmem:[%s6579_s17 + $0x180] sm:$0xff] %v2876_v37  ;;  %v2389_v34 = vadd.f32 %v6455_v31, %v6575_v60 }
 0x40b   : > { %v2256_v63 = vadd.f32 %v6328_v7, %v2237_v19  ;;  %v1016_v7 = vsel %vm984_vm2, %v7343_v55, %v7376_v9  ;;  %v1548_v28 = vsel %vm1516_vm5, %v6372_v8, %v1515_v12  ;;  %2941 = vst [vmem:[%s6579_s17 + $0x188] sm:$0xff] %v2877_v3  ;;  %v2439_v55 = vadd.f32 %v6457_v54, %v6519_v5  ;;  %v6655_v8 = vpop.f32.mrf.mxu0  ;;  %v6660_v39 = vpop.f32.mrf.mxu1 }
 0x40c   : > { %2792 = vmatpush.bf16.msrb.mxu1 %v1548_v28  ;;  %v2370_v20 = vadd.f32 %v7377_v49, %v2351_v45  ;;  %v2882_v25 = vmax.f32 %v2313_v27, 0.0  ;;  %2942 = vst [vmem:[%s6579_s17 + $0x190] sm:$0xff] %v2878_v32  ;;  %v2408_v44 = vadd.f32 %v6552_v38, %v2389_v34  ;;  %v1814_v31 = vsel %vm1782_vm3, %v6502_v36, %v1781_v33  ;;  %v7379_v36 = vld [vmem:[#allocation50_spill] sm:$0xff] }
 0x40d   : > { %v2881_v51 = vmax.f32 %v2256_v63, 0.0  ;;  %2943 = vst [vmem:[%s6579_s17 + $0x198] sm:$0xff] %v2879_v42  ;;  %v2458_v12 = vadd.f32 %v6489_v53, %v2439_v55  ;;  %2815 = vmatpush.bf16.msrb.mxu3 %v1814_v31  ;;  %v2496_v54 = vadd.f32 %v2495_v35, %v6519_v5  ;;  %v1532_v38 = vsel %vm1516_vm5, %v6461_v14, %v6586_v62  ;;  %v2533_v14 = vpop.f32.mrf.mxu2  ;;  %v7383_v63 = vld [vmem:[#allocation29_spill] sm:$0xff]  ;;  %v7392_v49 = vld [vmem:[#allocation90_spill] sm:$0xff] }
 0x40e   : > { %2773 = vmatpush.bf16.msrb.mxu0 %v1016_v7  ;;  %3566 = vmatpush.bf16.msra.mxu2 %v1016_v7  ;;  %v2883_v18 = vmax.f32 %v2370_v20, 0.0  ;;  %2944 = vst [vmem:[%s6579_s17 + $0x1a0] sm:$0xff] %v2880_v26  ;;  %v1000_v17 = vsel %vm984_vm2, %v7379_v36, %v7378_v58  ;;  %v2427_v43 = vadd.f32 %v6554_v1, %v2408_v44  ;;  %v7386_v7 = vld [vmem:[#allocation21_spill] sm:$0xff]  ;;  %v7397_v36 = vld [vmem:[#allocation15_spill] sm:$0xff] }
 0x40f   : > { %2945 = vst [vmem:[%s6579_s17 + $0x1a8] sm:$0xff] %v2881_v51  ;;  %v2477_v53 = vadd.f32 %v6601_v11, %v2458_v12  ;;  %v6672_v35 = vpop.f32.mrf.mxu3  ;;  %v2515_v41 = vadd.f32 %v2514_v13, %v2496_v54  ;;  %v1415_v1 = vsel %vm1383_vm6, %v6459_v30, %v6476_v16  ;;  %v883_v11 = vsel %vm851_vm4, %v7381_v47, %v7380_v59  ;;  %v7382_v13 = vld [vmem:[#allocation72_spill] sm:$0xff]  ;;  %v7391_v51 = vld [vmem:[#allocation31_spill] sm:$0xff]  ;;  %v7394_v31 = vld [vmem:[#allocation13_spill] sm:$0xff] }
 0x410   : > { %2793 = vmatpush.bf16.msrb.mxu1 %v1532_v38  ;;  %2946 = vst [vmem:[%s6579_s17 + $0x1b0] sm:$0xff] %v2882_v25  ;;  %v2884_v22 = vmax.f32 %v2427_v43, 0.0  ;;  %v1399_v30 = vsel %vm1383_vm6, %v6391_v23, %v1348_v2  ;;  %v867_v37 = vsel %vm851_vm4, %v7384_v10, %v7383_v63  ;;  %v1282_v27 = vsel %vm1250_vm7, %v6480_v40, %v6498_v46  ;;  %v7387_v40 = vld [vmem:[#allocation28_spill] sm:$0xff]  ;;  %v7388_v2 = vld [vmem:[#allocation10_spill] sm:$0xff]  ;;  %v7403_v47 = vld [vmem:[#allocation49_spill] sm:$0xff] }
 0x411   : > { %2947 = vst [vmem:[%s6579_s17 + $0x1b8] sm:$0xff] %v2883_v18  ;;  %v2837_v62 = vmax.f32 %v2477_v53, 0.0  ;;  %v2534_v15 = vadd.f32 %v2533_v14, %v2515_v41  ;;  %v6713_v42 = vadd.f32 %v6566_v24, %v6575_v60  ;;  %v7390_v24 = vld [vmem:[#allocation83_spill] sm:$0xff]  ;;  %v7393_v25 = vld [vmem:[#allocation34_spill] sm:$0xff]  ;;  %v7406_v63 = vld [vmem:[#allocation81_spill] sm:$0xff] }
 0x412   : > { %2774 = vmatpush.bf16.msrb.mxu0 %v1000_v17  ;;  %3567 = vmatpush.bf16.msra.mxu2 %v1000_v17  ;;  %v1215_v57 = vpop.permute.xlu1 %1214  ;;  %v1747_v19 = vpop.permute.xlu0 %1746  ;;  %2948 = vst [vmem:[%s6579_s17 + $0x1c0] sm:$0xff] %v2884_v22  ;;  %v7395_v54 = vld [vmem:[#allocation18_spill] sm:$0xff]  ;;  %v7398_v17 = vld [vmem:[#allocation80_spill] sm:$0xff]  ;;  %v7400_v41 = vld [vmem:[#allocation27_spill] sm:$0xff] }
 0x413   : > { %v1798_v48 = vsel %vm1782_vm3, %v6526_v61, %v1747_v19  ;;  %2901 = vst [vmem:[%s6579_s17 + $0x48] sm:$0xff] %v2837_v62  ;;  %v2838_v52 = vmax.f32 %v2534_v15, 0.0  ;;  %v6688_v16 = vpop.f32.mrf.mxu1  ;;  %v6695_v61 = vpop.f32.mrf.mxu0  ;;  %v1266_v23 = vsel %vm1250_vm7, %v6478_v0, %v1215_v57  ;;  %v7389_v0 = vld [vmem:[#allocation76_spill] sm:$0xff]  ;;  %v7396_v38 = vld [vmem:[#allocation74_spill] sm:$0xff] }
 0x414   : > { %2794 = vmatpush.bf16.msrb.mxu1 %v1415_v1  ;;  %2816 = vmatpush.bf16.msrb.mxu3 %v1798_v48  ;;  %v7399_v53 = vld [vmem:[#allocation86_spill] sm:$0xff]  ;;  %v7401_v62 = vld [vmem:[#allocation20_spill] sm:$0xff]  ;;  %v7402_v1 = vld [vmem:[#allocation25_spill] sm:$0xff] }
 0x415   : > { %3502 = vmatmul.msk.bf16.gmra.mxu0 %vm1909_vm8, %v7382_v13  ;;  %2902 = vst [vmem:[%s6579_s17 + $0x50] sm:$0xff] %v2838_v52  ;;  %v6723_v26 = vpop.f32.mrf.mxu2  ;;  %v7404_v48 = vld [vmem:[#allocation24_spill] sm:$0xff]  ;;  %v7405_v52 = vld [vmem:[#allocation75_spill] sm:$0xff] }
 0x416   : > { %2775 = vmatpush.bf16.msrb.mxu0 %v883_v11  ;;  %3568 = vmatpush.bf16.msra.mxu2 %v883_v11 }
 0x417   : > { %v6700_v3 = vpop.f32.mrf.mxu3 }
 0x418   : > { %2795 = vmatpush.bf16.msrb.mxu1 %v1399_v30  ;;  %3505 = vmatmul.msk.bf16.vlgmr.msrb.gmra.mxu3 %vm1909_vm8, %v5067_v21  ;;  %v7385_v21 = vld [vmem:[#allocation14_spill] sm:$0xff] }
 0x419   : > { %3504 = vmatmul.msk.bf16.gmra.mxu2 %vm1909_vm8, %v7382_v13 }
 0x41a   : > { %2776 = vmatpush.bf16.msrb.mxu0 %v867_v37  ;;  %3569 = vmatpush.bf16.msra.mxu2 %v867_v37  ;;  %v6709_v32 = vpop.permute.xlu1 %1871  ;;  %v7407_v37 = vld [vmem:[#allocation26_spill] sm:$0xff] }
 0x41b   : > { %v1931_v9 = vadd.f32 %v7385_v21, %v6709_v32  ;;  %v1988_v33 = vadd.f32 %v7386_v7, %v6709_v32  ;;  %v2045_v46 = vadd.f32 %v7387_v40, %v6709_v32  ;;  %v2102_v45 = vadd.f32 %v7388_v2, %v6709_v32  ;;  %v6743_v19 = vpop.f32.mrf.mxu1  ;;  %v7408_v21 = vld [vmem:[#allocation68_spill] sm:$0xff]  ;;  %v7409_v7 = vld [vmem:[#allocation89_spill] sm:$0xff]  ;;  %v6753_v40 = vpop.permute.xlu0 %1866 }
 0x41c   : > { %2796 = vmatpush.bf16.msrb.mxu1 %v1282_v27  ;;  %v2159_v34 = vadd.f32 %v7389_v0, %v6709_v32  ;;  %v2216_v28 = vadd.f32 %v7390_v24, %v6709_v32  ;;  %v2273_v55 = vadd.f32 %v7391_v51, %v6709_v32  ;;  %v2330_v20 = vadd.f32 %v7392_v49, %v6709_v32  ;;  %v6757_v24 = vpop.f32.mrf.mxu0 }
 0x41d   : > { %v1950_v44 = vadd.f32 %v7393_v25, %v1931_v9  ;;  %v2007_v12 = vadd.f32 %v7394_v31, %v1988_v33  ;;  %v2064_v18 = vadd.f32 %v7395_v54, %v2045_v46  ;;  %v2121_v58 = vadd.f32 %v7396_v38, %v2102_v45  ;;  %v7410_v46 = vld [vmem:[#allocation63_spill] sm:$0xff]  ;;  %v7412_v31 = vld [vmem:[#allocation8_spill] sm:$0xff]  ;;  %v7413_v54 = vld [vmem:[#allocation54_spill] sm:$0xff] }
 0x41e   : > { %2777 = vmatpush.bf16.msrb.mxu0 %v7397_v36  ;;  %v2178_v43 = vadd.f32 %v7398_v17, %v2159_v34  ;;  %v2235_v22 = vadd.f32 %v7399_v53, %v2216_v28  ;;  %v2292_v14 = vadd.f32 %v7400_v41, %v2273_v55  ;;  %v2349_v57 = vadd.f32 %v7401_v62, %v2330_v20  ;;  %v7414_v38 = vld [vmem:[#allocation71_spill] sm:$0xff] }
 0x41f   : > { %3570 = vmatpush.bf16.msra.mxu2 %v7397_v36  ;;  %v1969_v59 = vadd.f32 %v7402_v1, %v1950_v44  ;;  %v2026_v11 = vadd.f32 %v7403_v47, %v2007_v12  ;;  %v2083_v15 = vadd.f32 %v7404_v48, %v2064_v18  ;;  %v2140_v30 = vadd.f32 %v7405_v52, %v2121_v58  ;;  %v6760_v28 = vpop.f32.mrf.mxu3  ;;  %v7415_v58 = vld [vmem:[#allocation56_spill] sm:$0xff]  ;;  %v7416_v17 = vld [vmem:[#allocation55_spill] sm:$0xff]  ;;  %v7423_v52 = vld [vmem:[#allocation46_spill] sm:$0xff] }
 0x420   : > { %2797 = vmatpush.bf16.msrb.mxu1 %v1266_v23  ;;  %v2197_v10 = vadd.f32 %v7406_v63, %v2178_v43  ;;  %v2254_v27 = vadd.f32 %v7407_v37, %v2235_v22  ;;  %v2311_v9 = vadd.f32 %v7408_v21, %v2292_v14  ;;  %v2368_v33 = vadd.f32 %v7409_v7, %v2349_v57  ;;  %v7411_v23 = vld [vmem:[#allocation12_spill] sm:$0xff]  ;;  %v7418_v22 = vld [vmem:[#allocation79_spill] sm:$0xff]  ;;  %v7419_v14 = vld [vmem:[#allocation94_spill] sm:$0xff] }
 0x421   : > { %v2387_v2 = vadd.f32 %v7410_v46, %v6709_v32  ;;  %v2860_v45 = vmax.f32 %v1969_v59, 0.0  ;;  %v2861_v0 = vmax.f32 %v2026_v11, 0.0  ;;  %v2862_v34 = vmax.f32 %v2083_v15, 0.0  ;;  %v7420_v57 = vld [vmem:[#allocation65_spill] sm:$0xff]  ;;  %v7422_v11 = vld [vmem:[#allocation58_spill] sm:$0xff]  ;;  %v6785_v15 = vpop.f32.mrf.mxu2  ;;  %v7424_v63 = vld [vmem:[#allocation40_spill] sm:$0xff] }
 0x422   : > { %2778 = vmatpush.bf16.msrb.mxu0 %v7411_v23  ;;  %v2863_v51 = vmax.f32 %v2140_v30, 0.0  ;;  %v2864_v55 = vmax.f32 %v2197_v10, 0.0  ;;  %v2865_v49 = vmax.f32 %v2254_v27, 0.0  ;;  %v2866_v20 = vmax.f32 %v2311_v9, 0.0  ;;  %v7421_v59 = vld [vmem:[#allocation37_spill] sm:$0xff]  ;;  %v7426_v21 = vld [vmem:[#allocation82_spill] sm:$0xff] }
 0x423   : > { %3571 = vmatpush.bf16.msra.mxu2 %v7411_v23  ;;  %v2406_v25 = vadd.f32 %v6512_v29, %v2387_v2  ;;  %v2867_v44 = vmax.f32 %v2368_v33, 0.0  ;;  %2924 = vst [vmem:[%s6579_s17 + $0x100] sm:$0xff] %v2860_v45  ;;  %v1928_v12 = vadd.f32 %v7412_v31, %v6753_v40  ;;  %v1985_v18 = vadd.f32 %v7413_v54, %v6753_v40  ;;  %v7417_v29 = vld [vmem:[#allocation23_spill] sm:$0xff]  ;;  %v7425_v37 = vld [vmem:[#allocation77_spill] sm:$0xff]  ;;  %v7427_v33 = vld [vmem:[#allocation44_spill] sm:$0xff] }
 0x424   : > { %2798 = vmatmul.bf16.vlgmr.msrb.gmra.mxu1 %v7414_v38  ;;  %2925 = vst [vmem:[%s6579_s17 + $0x108] sm:$0xff] %v2861_v0  ;;  %v2042_v36 = vadd.f32 %v7415_v58, %v6753_v40  ;;  %v2099_v43 = vadd.f32 %v7416_v17, %v6753_v40  ;;  %v2156_v53 = vadd.f32 %v7417_v29, %v6753_v40  ;;  %v7428_v2 = vld [vmem:[#allocation64_spill] sm:$0xff]  ;;  %v7429_v0 = vld [vmem:[#allocation47_spill] sm:$0xff]  ;;  %v7430_v23 = vld [vmem:[#allocation73_spill] sm:$0xff] }
 0x425   : > { %v2213_v41 = vadd.f32 %v7418_v22, %v6753_v40  ;;  %v2425_v62 = vadd.f32 %v7419_v14, %v2406_v25  ;;  %2926 = vst [vmem:[%s6579_s17 + $0x110] sm:$0xff] %v2862_v34  ;;  %v1947_v1 = vadd.f32 %v7420_v57, %v1928_v12  ;;  %v2004_v47 = vadd.f32 %v7421_v59, %v1985_v18  ;;  %v7432_v31 = vld [vmem:[#allocation36_spill] sm:$0xff]  ;;  %v7433_v54 = vld [vmem:[#allocation78_spill] sm:$0xff]  ;;  %v7438_v14 = vld [vmem:[#allocation39_spill] sm:$0xff] }
 0x426   : > { %v2270_v48 = vadd.f32 %v7422_v11, %v6753_v40  ;;  %2927 = vst [vmem:[%s6579_s17 + $0x118] sm:$0xff] %v2863_v51  ;;  %v2061_v30 = vadd.f32 %v7423_v52, %v2042_v36  ;;  %v2118_v10 = vadd.f32 %v7424_v63, %v2099_v43  ;;  %v2175_v27 = vadd.f32 %v7425_v37, %v2156_v53  ;;  %v7431_v51 = vld [vmem:[#allocation33_spill] sm:$0xff]  ;;  %v7434_v38 = vld [vmem:[#allocation42_spill] sm:$0xff]  ;;  %v7436_v43 = vld [vmem:[#allocation88_spill] sm:$0xff] }
 0x427   : > { %v2232_v9 = vadd.f32 %v7426_v21, %v2213_v41  ;;  %v2868_v7 = vmax.f32 %v2425_v62, 0.0  ;;  %2928 = vst [vmem:[%s6579_s17 + $0x120] sm:$0xff] %v2864_v55  ;;  %v1966_v46 = vadd.f32 %v7427_v33, %v1947_v1  ;;  %v2023_v45 = vadd.f32 %v7428_v2, %v2004_v47  ;;  %2779 = vmatmul.bf16.vlgmr.msrb.gmra.mxu0 %v7430_v23  ;;  %v2571_v55 = vpop.f32.mrf.mxu1  ;;  %v7435_v36 = vld [vmem:[#allocation38_spill] sm:$0xff]  ;;  %v7437_v53 = vld [vmem:[#allocation92_spill] sm:$0xff]  ;;  %v7440_v11 = vld [vmem:[#allocation93_spill] sm:$0xff] }
 0x428   : > { %v2289_v34 = vadd.f32 %v7429_v0, %v2270_v48  ;;  %2929 = vst [vmem:[%s6579_s17 + $0x128] sm:$0xff] %v2865_v49  ;;  %v2080_v25 = vadd.f32 %v7431_v51, %v2061_v30  ;;  %v2137_v12 = vadd.f32 %v7432_v31, %v2118_v10  ;;  %v2194_v18 = vadd.f32 %v7433_v54, %v2175_v27  ;;  %v7441_v52 = vld [vmem:[#allocation96_spill] sm:$0xff]  ;;  %v7442_v37 = vld [vmem:[#allocation95_spill] sm:$0xff] }
 0x429   : > { %v2251_v58 = vadd.f32 %v7434_v38, %v2232_v9  ;;  %2930 = vst [vmem:[%s6579_s17 + $0x130] sm:$0xff] %v2866_v20  ;;  %v2327_v17 = vadd.f32 %v7435_v36, %v6753_v40  ;;  %v2384_v29 = vadd.f32 %v7436_v43, %v6753_v40  ;;  %v2441_v49 = vadd.f32 %v7437_v53, %v6753_v40  ;;  %v2552_v22 = vpop.f32.mrf.mxu0  ;;  %v7439_v20 = vld [vmem:[#allocation53_spill] sm:$0xff]  ;;  %v7444_v9 = vld [vmem:[#allocation91_spill] sm:$0xff] }
 0x42a   : > { %v2590_v41 = vpop.f32.mrf.mxu3  ;;  %2931 = vst [vmem:[%s6579_s17 + $0x138] sm:$0xff] %v2867_v44  ;;  %v2308_v62 = vadd.f32 %v7438_v14, %v2289_v34  ;;  %v2844_v57 = vmax.f32 %v1966_v46, 0.0  ;;  %v2845_v1 = vmax.f32 %v2023_v45, 0.0  ;;  %v2846_v59 = vmax.f32 %v2080_v25, 0.0  ;;  %2784 = vmatmul.bf16.vlgmr.msra.gmra.mxu2 %v5176_v4  ;;  %3506 = vmatmul.msk.bf16.gmra.mxu3 %vm1909_vm8, %v7382_v13  ;;  %v7443_v13 = vld [vmem:[#allocation51_spill] sm:$0xff] }
 0x42b   : > { %2932 = vst [vmem:[%s6579_s17 + $0x140] sm:$0xff] %v2868_v7  ;;  %v2346_v47 = vadd.f32 %v7439_v20, %v2327_v17  ;;  %v2403_v48 = vadd.f32 %v7440_v11, %v2384_v29  ;;  %v2460_v30 = vadd.f32 %v7441_v52, %v2441_v49  ;;  %v2847_v44 = vmax.f32 %v2137_v12, 0.0 }
 0x42c   : > { %v2848_v63 = vmax.f32 %v2194_v18, 0.0  ;;  %v2849_v10 = vmax.f32 %v2251_v58, 0.0  ;;  %2908 = vst [vmem:[%s6579_s17 + $0x80] sm:$0xff] %v2844_v57  ;;  %v2444_v27 = vadd.f32 %v7442_v37, %v6709_v32  ;;  %v2465_v4 = vadd.f32 %v6621_v50, %v6713_v42 }
 0x42d   : > { %v2365_v21 = vadd.f32 %v7443_v13, %v2346_v47  ;;  %v2422_v7 = vadd.f32 %v7444_v9, %v2403_v48  ;;  %v2479_v33 = vadd.f32 %v6655_v8, %v2460_v30  ;;  %2909 = vst [vmem:[%s6579_s17 + $0x88] sm:$0xff] %v2845_v1  ;;  %v2498_v46 = vadd.f32 %v6660_v39, %v6753_v40  ;;  %v2540_v39 = vpop.f32.mrf.mxu2 }
 0x42e   : > { %v2850_v2 = vmax.f32 %v2308_v62, 0.0  ;;  %2910 = vst [vmem:[%s6579_s17 + $0x90] sm:$0xff] %v2846_v59  ;;  %v2463_v45 = vadd.f32 %v6560_v56, %v2444_v27  ;;  %v2501_v0 = vadd.f32 %v6688_v16, %v6709_v32  ;;  %v2503_v50 = vadd.f32 %v6743_v19, %v6575_v60 }
 0x42f   : > { %v2851_v42 = vmax.f32 %v2365_v21, 0.0  ;;  %v2852_v34 = vmax.f32 %v2422_v7, 0.0  ;;  %2911 = vst [vmem:[%s6579_s17 + $0x98] sm:$0xff] %v2847_v44  ;;  %v2484_v8 = vadd.f32 %v6757_v24, %v2465_v4  ;;  %v2517_v23 = vadd.f32 %v6672_v35, %v2498_v46  ;;  %v2573_v19 = vpop.f32.mrf.mxu1 }
 0x430   : > { %2912 = vst [vmem:[%s6579_s17 + $0xa0] sm:$0xff] %v2848_v63  ;;  %v2482_v56 = vadd.f32 %v6695_v61, %v2463_v45  ;;  %v2520_v51 = vadd.f32 %v6700_v3, %v2501_v0  ;;  %v2553_v16 = vadd.f32 %v2552_v22, %v6519_v5  ;;  %v2522_v25 = vadd.f32 %v6760_v28, %v2503_v50 }
 0x431   : > { %v2853_v31 = vmax.f32 %v2479_v33, 0.0  ;;  %2913 = vst [vmem:[%s6579_s17 + $0xa8] sm:$0xff] %v2849_v10  ;;  %v2536_v24 = vadd.f32 %v6723_v26, %v2517_v23  ;;  %v2554_v12 = vpop.f32.mrf.mxu0  ;;  %v2885_v28 = vmax.f32 %v2484_v8, 0.0 }
 0x432   : > { %v2592_v35 = vpop.f32.mrf.mxu3  ;;  %2914 = vst [vmem:[%s6579_s17 + $0xb0] sm:$0xff] %v2850_v2  ;;  %v2869_v54 = vmax.f32 %v2482_v56, 0.0  ;;  %v2539_v61 = vadd.f32 %v6785_v15, %v2520_v51  ;;  %v2572_v3 = vadd.f32 %v2571_v55, %v2553_v16  ;;  %v2541_v18 = vadd.f32 %v2540_v39, %v2522_v25 }
 0x433   : > { %2915 = vst [vmem:[%s6579_s17 + $0xb8] sm:$0xff] %v2851_v42  ;;  %v2555_v38 = vadd.f32 %v2554_v12, %v6753_v40  ;;  %v2854_v26 = vmax.f32 %v2536_v24, 0.0 }
 0x434   : > { %2803 = vmatmul.bf16.gmra.mxu1 %v5214_v6  ;;  %2916 = vst [vmem:[%s6579_s17 + $0xc0] sm:$0xff] %v2852_v34  ;;  %v2591_v58 = vadd.f32 %v2590_v41, %v2572_v3  ;;  %v2870_v36 = vmax.f32 %v2539_v61, 0.0  ;;  %v2886_v15 = vmax.f32 %v2541_v18, 0.0 }
 0x435   : > { %2917 = vst [vmem:[%s6579_s17 + $0xc8] sm:$0xff] %v2853_v31  ;;  %v2574_v17 = vadd.f32 %v2573_v19, %v2555_v38  ;;  %v2609_v41 = vpop.f32.mrf.mxu2 }
 0x436   : > { %2933 = vst [vmem:[%s6579_s17 + $0x148] sm:$0xff] %v2869_v54  ;;  %v2839_v55 = vmax.f32 %v2591_v58, 0.0  ;;  %v2610_v37 = vadd.f32 %v2609_v41, %v6519_v5 }
 0x437   : > { %2949 = vst [vmem:[%s6579_s17 + $0x1c8] sm:$0xff] %v2885_v28  ;;  %v2593_v43 = vadd.f32 %v2592_v35, %v2574_v17  ;;  %v2576_v29 = vpop.f32.mrf.mxu1 }
 0x438   : > { %2918 = vst [vmem:[%s6579_s17 + $0xd0] sm:$0xff] %v2854_v26 }
 0x439   : > { %2934 = vst [vmem:[%s6579_s17 + $0x150] sm:$0xff] %v2870_v36  ;;  %v2855_v6 = vmax.f32 %v2593_v43, 0.0  ;;  %v2557_v53 = vpop.f32.mrf.mxu0 }
 0x43a   : > { %2950 = vst [vmem:[%s6579_s17 + $0x1d0] sm:$0xff] %v2886_v15  ;;  %v2595_v49 = vpop.f32.mrf.mxu3  ;;  %v2558_v22 = vadd.f32 %v2557_v53, %v6709_v32 }
 0x43b   : > { %2903 = vst [vmem:[%s6579_s17 + $0x58] sm:$0xff] %v2839_v55 }
 0x43c   : > { %2919 = vst [vmem:[%s6579_s17 + $0xd8] sm:$0xff] %v2855_v6  ;;  %v2577_v14 = vadd.f32 %v2576_v29, %v2558_v22 }
 0x43d   : > { %v2611_v48 = vpop.f32.mrf.mxu2 }
 0x43e   : > { %v2596_v62 = vadd.f32 %v2595_v49, %v2577_v14  ;;  %v2612_v46 = vadd.f32 %v2611_v48, %v6753_v40 }
 0x43f   : > { %v2578_v59 = vpop.f32.mrf.mxu1 }
 0x440   : > { %v2871_v57 = vmax.f32 %v2596_v62, 0.0 }
 0x441   : > { %v2559_v1 = vpop.f32.mrf.mxu0 }
 0x442   : > { %v2560_v20 = vadd.f32 %v2559_v1, %v6575_v60  ;;  %2935 = vst [vmem:[%s6579_s17 + $0x158] sm:$0xff] %v2871_v57  ;;  %v2597_v47 = vpop.f32.mrf.mxu3 }
 0x444   : > { %v2579_v11 = vadd.f32 %v2578_v59, %v2560_v20 }
 0x445   : > { %v2614_v44 = vpop.f32.mrf.mxu2 }
 0x446   : > { %v2598_v52 = vadd.f32 %v2597_v47, %v2579_v11  ;;  %v2615_v23 = vadd.f32 %v2614_v44, %v6709_v32 }
 0x448   : > { %v2887_v30 = vmax.f32 %v2598_v52, 0.0 }
 0x44a   : > { %2951 = vst [vmem:[%s6579_s17 + $0x1d8] sm:$0xff] %v2887_v30  ;;  %v2666_v10 = vpop.f32.mrf.mxu3 }
 0x44b   : > { %v2667_v38 = vadd.f32 %v2666_v10, %v6519_v5 }
 0x44c   : > { %v2647_v63 = vpop.f32.mrf.mxu1 }
 0x44d   : > { %v2616_v27 = vpop.f32.mrf.mxu2 }
 0x44e   : > { %v2617_v24 = vadd.f32 %v2616_v27, %v6575_v60 }
 0x452   : > { %v2668_v9 = vpop.f32.mrf.mxu3 }
 0x453   : > { %v2669_v6 = vadd.f32 %v2668_v9, %v6753_v40 }
 0x454   : > { %v2649_v13 = vpop.f32.mrf.mxu1 }
 0x45a   : > { %v2671_v34 = vpop.f32.mrf.mxu3 }
 0x45b   : > { %v2672_v47 = vadd.f32 %v2671_v34, %v6709_v32 }
 0x45c   : > { %v2628_v4 = vpop.f32.mrf.mxu0  ;;  %v2652_v50 = vpop.f32.mrf.mxu1 }
 0x45d   : > { %v2629_v21 = vadd.f32 %v2628_v4, %v2610_v37 }
 0x45f   : > { %v2648_v7 = vadd.f32 %v2647_v63, %v2629_v21 }
 0x461   : > { %v2840_v33 = vmax.f32 %v2648_v7, 0.0 }
 0x462   : > { %v2673_v31 = vpop.f32.mrf.mxu3 }
 0x463   : > { %2904 = vst [vmem:[%s6579_s17 + $0x60] sm:$0xff] %v2840_v33  ;;  %v2685_v45 = vpop.f32.mrf.mxu2 }
 0x464   : > { %v2630_v2 = vpop.f32.mrf.mxu0  ;;  %v2654_v25 = vpop.f32.mrf.mxu1  ;;  %v2686_v26 = vadd.f32 %v2685_v45, %v2667_v38 }
 0x465   : > { %v2631_v0 = vadd.f32 %v2630_v2, %v2612_v46 }
 0x467   : > { %v2650_v42 = vadd.f32 %v2649_v13, %v2631_v0  ;;  %v2674_v13 = vadd.f32 %v2673_v31, %v6575_v60 }
 0x469   : > { %v2856_v8 = vmax.f32 %v2650_v42, 0.0 }
 0x46b   : > { %2920 = vst [vmem:[%s6579_s17 + $0xe0] sm:$0xff] %v2856_v8  ;;  %v2687_v51 = vpop.f32.mrf.mxu2 }
 0x46c   : > { %v2633_v39 = vpop.f32.mrf.mxu0  ;;  %v2723_v18 = vpop.f32.mrf.mxu1  ;;  %v2688_v53 = vadd.f32 %v2687_v51, %v2669_v6 }
 0x46d   : > { %v2634_v56 = vadd.f32 %v2633_v39, %v2615_v23  ;;  %v2724_v29 = vadd.f32 %v2723_v18, %v6519_v5 }
 0x46f   : > { %v2653_v16 = vadd.f32 %v2652_v50, %v2634_v56 }
 0x471   : > { %v2872_v19 = vmax.f32 %v2653_v16, 0.0 }
 0x473   : > { %2936 = vst [vmem:[%s6579_s17 + $0x160] sm:$0xff] %v2872_v19  ;;  %v2690_v61 = vpop.f32.mrf.mxu2 }
 0x474   : > { %v2635_v12 = vpop.f32.mrf.mxu0  ;;  %v2725_v55 = vpop.f32.mrf.mxu1  ;;  %v2691_v48 = vadd.f32 %v2690_v61, %v2672_v47  ;;  %v2996_v47 = vld [vmem:[%s6579_s17 + $0x48] sm:$0xff] (%p4017_p8) }
 0x475   : > { %v2636_v35 = vadd.f32 %v2635_v12, %v2617_v24  ;;  %v2726_v11 = vadd.f32 %v2725_v55, %v6753_v40  ;;  %2997 = vst [vmem:[%s6904_s6 + $0x48] sm:$0xff] (%p4017_p8), %v2996_v47 }
 0x477   : > { %v2655_v54 = vadd.f32 %v2654_v25, %v2636_v35 }
 0x479   : > { %v2888_v3 = vmax.f32 %v2655_v54, 0.0 }
 0x47b   : > { %v2742_v28 = vpop.f32.mrf.mxu3  ;;  %2952 = vst [vmem:[%s6579_s17 + $0x1e0] sm:$0xff] %v2888_v3  ;;  %v2692_v58 = vpop.f32.mrf.mxu2 }
 0x47c   : > { %v2743_v22 = vadd.f32 %v2742_v28, %v2724_v29  ;;  %v2728_v59 = vpop.f32.mrf.mxu1  ;;  %v2693_v7 = vadd.f32 %v2692_v58, %v2674_v13  ;;  %v3018_v13 = vld [vmem:[%s6579_s17 + $0xa0] sm:$0xff] (%p4017_p8) }
 0x47d   : > { %v2729_v21 = vadd.f32 %v2728_v59, %v6709_v32  ;;  %v2992_v59 = vld [vmem:[%s6579_s17 + $0x38] sm:$0xff] (%p4017_p8)  ;;  %3019 = vst [vmem:[%s6904_s6 + $0x120] sm:$0xff] (%p4017_p8), %v3018_v13 }
 0x47e   : > { %2993 = vst [vmem:[%s6904_s6 + $0x38] sm:$0xff] (%p4017_p8), %v2992_v59 }
 0x482   : > { %v2704_v17 = vpop.f32.mrf.mxu0 }
 0x483   : > { %v2744_v36 = vpop.f32.mrf.mxu3  ;;  %v2705_v15 = vadd.f32 %v2704_v17, %v2686_v26 }
 0x484   : > { %v2745_v30 = vadd.f32 %v2744_v36, %v2726_v11  ;;  %v2730_v9 = vpop.f32.mrf.mxu1  ;;  %v2998_v11 = vld [vmem:[%s6579_s17 + $0x50] sm:$0xff] (%p4017_p8) }
 0x485   : > { %v2841_v43 = vmax.f32 %v2705_v15, 0.0  ;;  %v2731_v23 = vadd.f32 %v2730_v9, %v6575_v60  ;;  %2999 = vst [vmem:[%s6904_s6 + $0x50] sm:$0xff] (%p4017_p8), %v2998_v11  ;;  %v3022_v9 = vld [vmem:[%s6579_s17 + $0xb0] sm:$0xff] (%p4017_p8) }
 0x486   : > { %3023 = vst [vmem:[%s6904_s6 + $0x130] sm:$0xff] (%p4017_p8), %v3022_v9 }
 0x487   : > { %2905 = vst [vmem:[%s6579_s17 + $0x68] sm:$0xff] %v2841_v43 }
 0x48a   : > { %v2706_v49 = vpop.f32.mrf.mxu0 }
 0x48b   : > { %v2707_v41 = vadd.f32 %v2706_v49, %v2688_v53  ;;  %v2761_v14 = vpop.f32.mrf.mxu2  ;;  %v2747_v62 = vpop.f32.mrf.mxu3 }
 0x48c   : > { %v2762_v57 = vadd.f32 %v2761_v14, %v2743_v22  ;;  %v2748_v2 = vadd.f32 %v2747_v62, %v2729_v21  ;;  %v2984_v14 = vld [vmem:[%s6579_s17 + $0x18] sm:$0xff] (%p4017_p8)  ;;  %v2986_v62 = vld [vmem:[%s6579_s17 + $0x20] sm:$0xff] (%p4017_p8)  ;;  %v3020_v21 = vld [vmem:[%s6579_s17 + $0xa8] sm:$0xff] (%p4017_p8) }
 0x48d   : > { %v2857_v1 = vmax.f32 %v2707_v41, 0.0  ;;  %v2982_v41 = vld [vmem:[%s6579_s17 + $0x10] sm:$0xff] (%p4017_p8)  ;;  %2985 = vst [vmem:[%s6904_s6 + $0x18] sm:$0xff] (%p4017_p8), %v2984_v14 }
 0x48e   : > { %v2842_v20 = vmax.f32 %v2762_v57, 0.0  ;;  %2983 = vst [vmem:[%s6904_s6 + $0x10] sm:$0xff] (%p4017_p8), %v2982_v41  ;;  %v2988_v57 = vld [vmem:[%s6579_s17 + $0x28] sm:$0xff] (%p4017_p8) }
 0x48f   : > { %2921 = vst [vmem:[%s6579_s17 + $0xe8] sm:$0xff] %v2857_v1  ;;  %v2990_v1 = vld [vmem:[%s6579_s17 + $0x30] sm:$0xff] (%p4017_p8) }
 0x490   : > { %2906 = vst [vmem:[%s6579_s17 + $0x70] sm:$0xff] %v2842_v20  ;;  %v2994_v20 = vld [vmem:[%s6579_s17 + $0x40] sm:$0xff] (%p4017_p8) }
 0x491   : > { %2987 = vst [vmem:[%s6904_s6 + $0x20] sm:$0xff] (%p4017_p8), %v2986_v62 }
 0x492   : > { %v2709_v52 = vpop.f32.mrf.mxu0  ;;  %2989 = vst [vmem:[%s6904_s6 + $0x28] sm:$0xff] (%p4017_p8), %v2988_v57 }
 0x493   : > { %v2710_v44 = vadd.f32 %v2709_v52, %v2691_v48  ;;  %v2763_v63 = vpop.f32.mrf.mxu2  ;;  %v2749_v10 = vpop.f32.mrf.mxu3  ;;  %2991 = vst [vmem:[%s6904_s6 + $0x30] sm:$0xff] (%p4017_p8), %v2990_v1  ;;  %v3000_v48 = vld [vmem:[%s6579_s17 + $0x58] sm:$0xff] (%p4017_p8)  ;;  %v3002_v52 = vld [vmem:[%s6579_s17 + $0x60] sm:$0xff] (%p4017_p8) }
 0x494   : > { %v2764_v37 = vadd.f32 %v2763_v63, %v2745_v30  ;;  %v2750_v39 = vadd.f32 %v2749_v10, %v2731_v23  ;;  %2995 = vst [vmem:[%s6904_s6 + $0x40] sm:$0xff] (%p4017_p8), %v2994_v20  ;;  %v3004_v30 = vld [vmem:[%s6579_s17 + $0x68] sm:$0xff] (%p4017_p8)  ;;  %v3010_v10 = vld [vmem:[%s6579_s17 + $0x80] sm:$0xff] (%p4017_p8) }
 0x495   : > { %v2873_v27 = vmax.f32 %v2710_v44, 0.0  ;;  %3001 = vst [vmem:[%s6904_s6 + $0x58] sm:$0xff] (%p4017_p8), %v3000_v48  ;;  %v3044_v23 = vld [vmem:[%s6579_s17 + $0x108] sm:$0xff] (%p4017_p8) }
 0x496   : > { %v2858_v4 = vmax.f32 %v2764_v37, 0.0  ;;  %3003 = vst [vmem:[%s6904_s6 + $0x60] sm:$0xff] (%p4017_p8), %v3002_v52  ;;  %v3012_v37 = vld [vmem:[%s6579_s17 + $0x88] sm:$0xff] (%p4017_p8) }
 0x497   : > { %2937 = vst [vmem:[%s6579_s17 + $0x168] sm:$0xff] %v2873_v27  ;;  %v3006_v44 = vld [vmem:[%s6579_s17 + $0x70] sm:$0xff] (%p4017_p8) }
 0x498   : > { %2922 = vst [vmem:[%s6579_s17 + $0xf0] sm:$0xff] %v2858_v4  ;;  %v3014_v27 = vld [vmem:[%s6579_s17 + $0x90] sm:$0xff] (%p4017_p8)  ;;  %v3016_v4 = vld [vmem:[%s6579_s17 + $0x98] sm:$0xff] (%p4017_p8) }
 0x499   : > { %3005 = vst [vmem:[%s6904_s6 + $0x68] sm:$0xff] (%p4017_p8), %v3004_v30 }
 0x49a   : > { %v2711_v33 = vpop.f32.mrf.mxu0  ;;  %3007 = vst [vmem:[%s6904_s6 + $0x70] sm:$0xff] (%p4017_p8), %v3006_v44 }
 0x49b   : > { %v2712_v46 = vadd.f32 %v2711_v33, %v2693_v7  ;;  %v2818_v45 = vpop.f32.mrf.mxu3  ;;  %3011 = vst [vmem:[%s6904_s6 + $0x100] sm:$0xff] (%p4017_p8), %v3010_v10  ;;  %v3024_v7 = vld [vmem:[%s6579_s17 + $0xb8] sm:$0xff] (%p4017_p8)  ;;  %v3026_v33 = vld [vmem:[%s6579_s17 + $0xc0] sm:$0xff] (%p4017_p8) }
 0x49c   : > { %v2766_v0 = vpop.f32.mrf.mxu2  ;;  %3013 = vst [vmem:[%s6904_s6 + $0x108] sm:$0xff] (%p4017_p8), %v3012_v37 }
 0x49d   : > { %v2889_v50 = vmax.f32 %v2712_v46, 0.0  ;;  %v2767_v42 = vadd.f32 %v2766_v0, %v2748_v2  ;;  %3015 = vst [vmem:[%s6904_s6 + $0x110] sm:$0xff] (%p4017_p8), %v3014_v27  ;;  %v3028_v46 = vld [vmem:[%s6579_s17 + $0xc8] sm:$0xff] (%p4017_p8)  ;;  %v3030_v2 = vld [vmem:[%s6579_s17 + $0xd0] sm:$0xff] (%p4017_p8)  ;;  %v3034_v0 = vld [vmem:[%s6579_s17 + $0xe0] sm:$0xff] (%p4017_p8) }
 0x49e   : > { %3017 = vst [vmem:[%s6904_s6 + $0x118] sm:$0xff] (%p4017_p8), %v3016_v4 }
 0x49f   : > { %2953 = vst [vmem:[%s6579_s17 + $0x1e8] sm:$0xff] %v2889_v50  ;;  %v2874_v34 = vmax.f32 %v2767_v42, 0.0  ;;  %v3036_v50 = vld [vmem:[%s6579_s17 + $0xe8] sm:$0xff] (%p4017_p8)  ;;  %v3038_v42 = vld [vmem:[%s6579_s17 + $0xf0] sm:$0xff] (%p4017_p8) }
 0x4a0   : > { %3021 = vst [vmem:[%s6904_s6 + $0x128] sm:$0xff] (%p4017_p8), %v3020_v21 }
 0x4a1   : > { %v2799_v8 = vpop.f32.mrf.mxu1  ;;  %2938 = vst [vmem:[%s6579_s17 + $0x170] sm:$0xff] %v2874_v34 }
 0x4a2   : > { %3025 = vst [vmem:[%s6904_s6 + $0x138] sm:$0xff] (%p4017_p8), %v3024_v7 }
 0x4a3   : > { %v2820_v51 = vpop.f32.mrf.mxu3  ;;  %3027 = vst [vmem:[%s6904_s6 + $0x140] sm:$0xff] (%p4017_p8), %v3026_v33 }
 0x4a4   : > { %v2780_v56 = vpop.f32.mrf.mxu0  ;;  %v2768_v16 = vpop.f32.mrf.mxu2  ;;  %3029 = vst [vmem:[%s6904_s6 + $0x148] sm:$0xff] (%p4017_p8), %v3028_v46 }
 0x4a5   : > { %v2781_v25 = vadd.f32 %v2780_v56, %v6519_v5  ;;  %v2769_v19 = vadd.f32 %v2768_v16, %v2750_v39  ;;  %3031 = vst [vmem:[%s6904_s6 + $0x150] sm:$0xff] (%p4017_p8), %v3030_v2  ;;  %v3046_v39 = vld [vmem:[%s6579_s17 + $0x110] sm:$0xff] (%p4017_p8)  ;;  %v3048_v56 = vld [vmem:[%s6579_s17 + $0x118] sm:$0xff] (%p4017_p8)  ;;  %v3052_v16 = vld [vmem:[%s6579_s17 + $0x128] sm:$0xff] (%p4017_p8) }
 0x4a6   : > { %3035 = vst [vmem:[%s6904_s6 + $0x160] sm:$0xff] (%p4017_p8), %v3034_v0 }
 0x4a7   : > { %v2800_v31 = vadd.f32 %v2799_v8, %v2781_v25  ;;  %v2890_v24 = vmax.f32 %v2769_v19, 0.0  ;;  %3037 = vst [vmem:[%s6904_s6 + $0x168] sm:$0xff] (%p4017_p8), %v3036_v50  ;;  %v3042_v8 = vld [vmem:[%s6579_s17 + $0x100] sm:$0xff] (%p4017_p8)  ;;  %v3054_v25 = vld [vmem:[%s6579_s17 + $0x130] sm:$0xff] (%p4017_p8)  ;;  %v3056_v19 = vld [vmem:[%s6579_s17 + $0x138] sm:$0xff] (%p4017_p8) }
 0x4a8   : > { %3039 = vst [vmem:[%s6904_s6 + $0x170] sm:$0xff] (%p4017_p8), %v3038_v42 }
 0x4a9   : > { %v2801_v12 = vpop.f32.mrf.mxu1  ;;  %v2819_v35 = vadd.f32 %v2818_v45, %v2800_v31  ;;  %2954 = vst [vmem:[%s6579_s17 + $0x1f0] sm:$0xff] %v2890_v24  ;;  %v3032_v45 = vld [vmem:[%s6579_s17 + $0xd8] sm:$0xff] (%p4017_p8)  ;;  %v3058_v31 = vld [vmem:[%s6579_s17 + $0x140] sm:$0xff] (%p4017_p8)  ;;  %v3060_v24 = vld [vmem:[%s6579_s17 + $0x148] sm:$0xff] (%p4017_p8) }
 0x4aa   : > { %3033 = vst [vmem:[%s6904_s6 + $0x158] sm:$0xff] (%p4017_p8), %v3032_v45 }
 0x4ab   : > { %v2843_v54 = vmax.f32 %v2819_v35, 0.0  ;;  %3043 = vst [vmem:[%s6904_s6 + $0x200] sm:$0xff] (%p4017_p8), %v3042_v8  ;;  %v3064_v35 = vld [vmem:[%s6579_s17 + $0x158] sm:$0xff] (%p4017_p8) }
 0x4ac   : > { %v2782_v61 = vpop.f32.mrf.mxu0  ;;  %3045 = vst [vmem:[%s6904_s6 + $0x208] sm:$0xff] (%p4017_p8), %v3044_v23 }
 0x4ad   : > { %2907 = vst [vmem:[%s6579_s17 + $0x78] sm:$0xff] %v2843_v54  ;;  %v2783_v3 = vadd.f32 %v2782_v61, %v6753_v40  ;;  %v2785_v18 = vpop.f32.mrf.mxu2  ;;  %v2823_v38 = vpop.f32.mrf.mxu3  ;;  %v3066_v54 = vld [vmem:[%s6579_s17 + $0x160] sm:$0xff] (%p4017_p8)  ;;  %v3068_v61 = vld [vmem:[%s6579_s17 + $0x168] sm:$0xff] (%p4017_p8) }
 0x4ae   : > { %v2786_v28 = vadd.f32 %v2785_v18, %v6709_v32  ;;  %v2980_v32 = vld [vmem:[%s6579_s17 + $0x8] sm:$0xff] (%p4017_p8)  ;;  %3047 = vst [vmem:[%s6904_s6 + $0x210] sm:$0xff] (%p4017_p8), %v3046_v39 }
 0x4af   : > { %v2802_v26 = vadd.f32 %v2801_v12, %v2783_v3  ;;  %2981 = vst [vmem:[%s6904_s6 + $0x8] sm:$0xff] (%p4017_p8), %v2980_v32  ;;  %v3062_v12 = vld [vmem:[%s6579_s17 + $0x150] sm:$0xff] (%p4017_p8) }
 0x4b0   : > { %3049 = vst [vmem:[%s6904_s6 + $0x218] sm:$0xff] (%p4017_p8), %v3048_v56  ;;  %v3070_v3 = vld [vmem:[%s6579_s17 + $0x170] sm:$0xff] (%p4017_p8) }
 0x4b1   : > { %v2804_v5 = vpop.f32.mrf.mxu1  ;;  %v2821_v58 = vadd.f32 %v2820_v51, %v2802_v26  ;;  %v3050_v51 = vld [vmem:[%s6579_s17 + $0x120] sm:$0xff] (%p4017_p8)  ;;  %3053 = vst [vmem:[%s6904_s6 + $0x228] sm:$0xff] (%p4017_p8), %v3052_v16  ;;  %v3078_v26 = vld [vmem:[%s6579_s17 + $0x190] sm:$0xff] (%p4017_p8) }
 0x4b2   : > { %v2805_v36 = vadd.f32 %v2804_v5, %v2786_v28  ;;  %3051 = vst [vmem:[%s6904_s6 + $0x220] sm:$0xff] (%p4017_p8), %v3050_v51  ;;  %v3074_v28 = vld [vmem:[%s6579_s17 + $0x180] sm:$0xff] (%p4017_p8)  ;;  %v3080_v5 = vld [vmem:[%s6579_s17 + $0x198] sm:$0xff] (%p4017_p8) }
 0x4b3   : > { %v2859_v17 = vmax.f32 %v2821_v58, 0.0  ;;  %3055 = vst [vmem:[%s6904_s6 + $0x230] sm:$0xff] (%p4017_p8), %v3054_v25  ;;  %v3082_v58 = vld [vmem:[%s6579_s17 + $0x1a0] sm:$0xff] (%p4017_p8) }
 0x4b4   : > { %v2824_v15 = vadd.f32 %v2823_v38, %v2805_v36  ;;  %v3008_v63 = vld [vmem:[%s6579_s17 + $0x78] sm:$0xff] (%p4017_p8)  ;;  %3057 = vst [vmem:[%s6904_s6 + $0x238] sm:$0xff] (%p4017_p8), %v3056_v19  ;;  %v3076_v38 = vld [vmem:[%s6579_s17 + $0x188] sm:$0xff] (%p4017_p8) }
 0x4b5   : > { %2923 = vst [vmem:[%s6579_s17 + $0xf8] sm:$0xff] %v2859_v17  ;;  %v2787_v43 = vpop.f32.mrf.mxu2  ;;  %v2825_v53 = vpop.f32.mrf.mxu3  ;;  %v3084_v36 = vld [vmem:[%s6579_s17 + $0x1a8] sm:$0xff] (%p4017_p8)  ;;  %v3086_v17 = vld [vmem:[%s6579_s17 + $0x1b0] sm:$0xff] (%p4017_p8) }
 0x4b6   : > { %v2875_v55 = vmax.f32 %v2824_v15, 0.0  ;;  %v2788_v29 = vadd.f32 %v2787_v43, %v6575_v60  ;;  %v2978_v60 = vld [vmem:[%s6579_s17] sm:$0xff] (%p4017_p8)  ;;  %3009 = vst [vmem:[%s6904_s6 + $0x78] sm:$0xff] (%p4017_p8), %v3008_v63  ;;  %v3088_v15 = vld [vmem:[%s6579_s17 + $0x1b8] sm:$0xff] (%p4017_p8)  ;;  %v3092_v43 = vld [vmem:[%s6579_s17 + $0x1c8] sm:$0xff] (%p4017_p8) }
 0x4b7   : > { %2979 = vst [vmem:[%s6904_s6] sm:$0xff] (%p4017_p8), %v2978_v60 }
 0x4b8   : > { %2939 = vst [vmem:[%s6579_s17 + $0x178] sm:$0xff] %v2875_v55  ;;  %v3090_v55 = vld [vmem:[%s6579_s17 + $0x1c0] sm:$0xff] (%p4017_p8) }
 0x4b9   : > { %v2806_v6 = vpop.f32.mrf.mxu1  ;;  %3059 = vst [vmem:[%s6904_s6 + $0x240] sm:$0xff] (%p4017_p8), %v3058_v31 }
 0x4ba   : > { %v2807_v40 = vadd.f32 %v2806_v6, %v2788_v29  ;;  %3061 = vst [vmem:[%s6904_s6 + $0x248] sm:$0xff] (%p4017_p8), %v3060_v24  ;;  %v3094_v29 = vld [vmem:[%s6579_s17 + $0x1d0] sm:$0xff] (%p4017_p8)  ;;  %v3096_v6 = vld [vmem:[%s6579_s17 + $0x1d8] sm:$0xff] (%p4017_p8) }
 0x4bb   : > { %3063 = vst [vmem:[%s6904_s6 + $0x250] sm:$0xff] (%p4017_p8), %v3062_v12 }
 0x4bc   : > { %v2826_v49 = vadd.f32 %v2825_v53, %v2807_v40  ;;  %2962 = sbr.rel (!%p4017_p8) target bundleno = 1235 (0x4d3), region = 147  ;;  %v3040_v34 = vld [vmem:[%s6579_s17 + $0xf8] sm:$0xff] (%p4017_p8)  ;;  %3065 = vst [vmem:[%s6904_s6 + $0x258] sm:$0xff] (%p4017_p8), %v3064_v35  ;;  %v3098_v53 = vld [vmem:[%s6579_s17 + $0x1e0] sm:$0xff] (%p4017_p8)  ;;  %v3100_v40 = vld [vmem:[%s6579_s17 + $0x1e8] sm:$0xff] (%p4017_p8) }
 0x4bd   : > { %3041 = vst [vmem:[%s6904_s6 + $0x178] sm:$0xff] (%p4017_p8), %v3040_v34 }
 0x4be   : > { %v2891_v22 = vmax.f32 %v2826_v49, 0.0  ;;  %3067 = vst [vmem:[%s6904_s6 + $0x260] sm:$0xff] (%p4017_p8), %v3066_v54  ;;  %v3102_v49 = vld [vmem:[%s6579_s17 + $0x1f0] sm:$0xff] (%p4017_p8) }
 0x4bf   : > { %v3072_v18 = vld [vmem:[%s6579_s17 + $0x178] sm:$0xff] (%p4017_p8)  ;;  %3069 = vst [vmem:[%s6904_s6 + $0x268] sm:$0xff] (%p4017_p8), %v3068_v61 }
 0x4c0   : > { %2955 = vst [vmem:[%s6579_s17 + $0x1f8] sm:$0xff] %v2891_v22 }
 0x4c1   : > { %3071 = vst [vmem:[%s6904_s6 + $0x270] sm:$0xff] %v3070_v3 }
 0x4c2   : > { %3073 = vst [vmem:[%s6904_s6 + $0x278] sm:$0xff] %v3072_v18 }
 0x4c3   : > { %3075 = vst [vmem:[%s6904_s6 + $0x300] sm:$0xff] %v3074_v28 }
 0x4c4   : > { %3077 = vst [vmem:[%s6904_s6 + $0x308] sm:$0xff] %v3076_v38 }
 0x4c5   : > { %3079 = vst [vmem:[%s6904_s6 + $0x310] sm:$0xff] %v3078_v26 }
 0x4c6   : > { %3081 = vst [vmem:[%s6904_s6 + $0x318] sm:$0xff] %v3080_v5 }
 0x4c7   : > { %3083 = vst [vmem:[%s6904_s6 + $0x320] sm:$0xff] %v3082_v58  ;;  %v3104_v22 = vld [vmem:[%s6579_s17 + $0x1f8] sm:$0xff] }
 0x4c8   : > { %3085 = vst [vmem:[%s6904_s6 + $0x328] sm:$0xff] %v3084_v36 }
 0x4c9   : > { %3087 = vst [vmem:[%s6904_s6 + $0x330] sm:$0xff] %v3086_v17 }
 0x4ca   : > { %3089 = vst [vmem:[%s6904_s6 + $0x338] sm:$0xff] %v3088_v15 }
 0x4cb   : > { %3091 = vst [vmem:[%s6904_s6 + $0x340] sm:$0xff] %v3090_v55 }
 0x4cc   : > { %3093 = vst [vmem:[%s6904_s6 + $0x348] sm:$0xff] %v3092_v43 }
 0x4cd   : > { %3095 = vst [vmem:[%s6904_s6 + $0x350] sm:$0xff] %v3094_v29 }
 0x4ce   : > { %3097 = vst [vmem:[%s6904_s6 + $0x358] sm:$0xff] %v3096_v6 }
 0x4cf   : > { %3099 = vst [vmem:[%s6904_s6 + $0x360] sm:$0xff] %v3098_v53 }
 0x4d0   : > { %3101 = vst [vmem:[%s6904_s6 + $0x368] sm:$0xff] %v3100_v40 }
 0x4d1   : > { %3103 = vst [vmem:[%s6904_s6 + $0x370] sm:$0xff] %v3102_v49 }
 0x4d2   : > { %3105 = vst [vmem:[%s6904_s6 + $0x378] sm:$0xff] %v3104_v22 }
 0x4d3 PF: > { %s7446_s17 = sld [smem:[#allocation5_spill]]  ;;  %p11_p8 = scmp.ge.s32.totalorder %s3987_s21, 4  }
 0x4d4   : > { %s7447_s18 = sld [smem:[#allocation6_spill]]  ;;  %s7448_s15 = smov %s3846_s16 }
 0x4d5   : > { %s7449_s16 = smov %s4012_s5  ;;  %s7450_s19 = smov %s3987_s21 }
 0x4d6   :  { %13 = sbr.rel (!%p11_p8) target bundleno = 5 (0x5), region = 271 }

</bundles_post_ra>
